<compile_context>
chip_gen: v7x
topology: tpu7x:2x2x1
jax: 0.10.0
libtpu: 0.0.40
codegen_flags: <defaults>
</compile_context>

<pallas_src>
import functools
import math

import jax
import jax.numpy as jnp
from jax import lax
from jax.experimental import pallas as pl
from jax.experimental.pallas import tpu as pltpu


_NEG = -1e9  # finite "-inf": exp underflows to exactly 0 after max-subtraction


# --------------------------------------------------------------------------
# BlockSpec helpers
# --------------------------------------------------------------------------
def _const_spec(shape):
    """Whole-array block, same block every grid step (stays VMEM resident)."""
    nd = len(shape)
    return pl.BlockSpec(tuple(shape), lambda *_: (0,) * nd)


def _layer_spec(shape_wo_layer):
    """Layer-indexed block (leading layer dim squeezed out of the kernel)."""
    nd = len(shape_wo_layer)
    return pl.BlockSpec((None,) + tuple(shape_wo_layer),
                        lambda l: (l,) + (0,) * nd)


# --------------------------------------------------------------------------
# Shared in-kernel math
# --------------------------------------------------------------------------
def _layernorm(x, w, b, eps=1e-5):
    mu = jnp.mean(x, axis=-1, keepdims=True)
    xc = x - mu
    var = jnp.mean(xc * xc, axis=-1, keepdims=True)
    return xc * lax.rsqrt(var + eps) * w + b


# --------------------------------------------------------------------------
# Kernel 1: one-hot embedding matmul * sqrt(d_model) + positional encoding
# --------------------------------------------------------------------------
def _embed_scale_pe_kernel(ids_ref, emb_ref, pe_ref, o_ref):
    n, d = o_ref.shape
    v = emb_ref.shape[0]
    ids = ids_ref[...]                                            # (BS, 1) int32
    onehot = (lax.broadcasted_iota(jnp.int32, (n, v), 1) == ids
              ).astype(emb_ref.dtype)                             # (BS, V)
    x = jnp.dot(onehot, emb_ref[...], preferred_element_type=jnp.float32)
    o_ref[...] = x * jnp.float32(math.sqrt(d)) + pe_ref[...]


def embed_scale_pe(ids, emb, pe):
    B, S = ids.shape
    V, D = emb.shape
    ids_col = ids.reshape(B * S, 1).astype(jnp.int32)
    pe_rows = jnp.tile(pe[:S].astype(emb.dtype), (B, 1))          # (BS, D)
    return pl.pallas_call(
        _embed_scale_pe_kernel,
        out_shape=jax.ShapeDtypeStruct((B * S, D), jnp.float32),
        grid=(1,),
        in_specs=[_const_spec((B * S, 1)), _const_spec((V, D)),
                  _const_spec((B * S, D))],
        out_specs=_const_spec((B * S, D)),
    )(ids_col, emb, pe_rows)


# --------------------------------------------------------------------------
# Additive attention bias (causal + key padding), built ONCE in the wrapper
# --------------------------------------------------------------------------
def build_attn_bias(ids, pad_id):
    B, S = ids.shape
    qpos = jnp.arange(S, dtype=jnp.int32)[:, None]
    kpos = jnp.arange(S, dtype=jnp.int32)[None, :]
    causal = jnp.where(kpos > qpos, _NEG, 0.0).astype(jnp.float32)        # (S,S)
    pad = jnp.where((ids == pad_id)[:, None, :], _NEG, 0.0).astype(jnp.float32)
    return causal[None] + pad                                             # (B,S,S)


# --------------------------------------------------------------------------
# Kernel 2: all decoder layers in one pallas_call (grid over layers)
# --------------------------------------------------------------------------
def _decoder_stack_kernel(x0_ref, bias_ref, wq_ref, wk_ref, wv_ref,
                          bq_ref, bk_ref, bv_ref, wo_ref, bo_ref,
                          w1_ref, b1_ref, w2_ref, b2_ref,
                          ln1w_ref, ln1b_ref, ln2w_ref, ln2b_ref,
                          o_ref, x_scr, *, seq, num_heads):
    f32 = jnp.float32
    l = pl.program_id(0)

    @pl.when(l == 0)
    def _():
        x_scr[...] = x0_ref[...]          # activation stays VMEM-resident

    x = x_scr[...]                                            # (B*S, D)
    n, D = x.shape
    S, H = seq, num_heads
    B = n // S
    dh = D // H
    inv_sqrt_dh = f32(1.0 / math.sqrt(dh))

    wq, wk, wv = wq_ref[...], wk_ref[...], wv_ref[...]        # (H, D, dh)
    bq, bk, bv = bq_ref[...], bk_ref[...], bv_ref[...]        # (H, 1, dh)
    wo = wo_ref[...]                                          # (H, dh, D)

    # --- multi-head self-attention (head-batched, no lane slicing / concat) ---
    attn_rows = []
    for b in range(B):
        xb = x[b * S:(b + 1) * S, :]                          # (S, D) sublane slice
        xh = jnp.broadcast_to(xb, (H, S, D))
        q = jnp.einsum("hsd,hde->hse", xh, wq, preferred_element_type=f32) + bq
        k = jnp.einsum("hsd,hde->hse", xh, wk, preferred_element_type=f32) + bk
        v = jnp.einsum("hsd,hde->hse", xh, wv, preferred_element_type=f32) + bv
        s = jnp.einsum("hqe,hke->hqk", q, k, preferred_element_type=f32)
        s = s * inv_sqrt_dh + bias_ref[b]                     # (H, S, S)
        m = jnp.max(s, axis=-1, keepdims=True)
        p = jnp.exp(s - m)
        a = p * pl.reciprocal(jnp.sum(p, axis=-1, keepdims=True), approx=True)
        ctx = jnp.einsum("hqk,hke->hqe", a, v, preferred_element_type=f32)
        acc = jnp.dot(ctx[0], wo[0], preferred_element_type=f32)   # (S, D)
        for h in range(1, H):
            acc = acc + jnp.dot(ctx[h], wo[h], preferred_element_type=f32)
        attn_rows.append(acc)
    attn = jnp.concatenate(attn_rows, axis=0) + bo_ref[...]   # (B*S, D)

    # TODO(synk): dropout is identity (eval-mode forward).
    x1 = _layernorm(x + attn, ln1w_ref[...], ln1b_ref[...])

    # --- feed-forward (batch-fused M = B*S rows) ---
    h1 = jnp.maximum(jnp.dot(x1, w1_ref[...], preferred_element_type=f32)
                     + b1_ref[...], 0.0)
    h2 = jnp.dot(h1, w2_ref[...], preferred_element_type=f32) + b2_ref[...]
    x_new = _layernorm(x1 + h2, ln2w_ref[...], ln2b_ref[...])

    x_scr[...] = x_new

    @pl.when(l == pl.num_programs(0) - 1)
    def _():
        o_ref[...] = x_new


def decoder_stack(x0, bias, layers, *, num_heads, seq):
    n, D = x0.shape
    L = len(layers)
    H = num_heads
    dh = D // H

    # ---- layout plumbing (once, outside the grid): per-head splits + stacking
    def qkv_split(w_inT, i):                                  # (H, D, dh)
        return w_inT[:, i * D:(i + 1) * D].reshape(D, H, dh).transpose(1, 0, 2)

    def qkv_bias_split(b_in, i):                              # (H, 1, dh)
        return b_in[0, i * D:(i + 1) * D].reshape(H, 1, dh)

    def stack(f):
        return jnp.stack([f(lp) for lp in layers])

    wq = stack(lambda lp: qkv_split(lp["w_inT"], 0))
    wk = stack(lambda lp: qkv_split(lp["w_inT"], 1))
    wv = stack(lambda lp: qkv_split(lp["w_inT"], 2))
    bq = stack(lambda lp: qkv_bias_split(lp["b_in"], 0))
    bk = stack(lambda lp: qkv_bias_split(lp["b_in"], 1))
    bv = stack(lambda lp: qkv_bias_split(lp["b_in"], 2))
    wo = stack(lambda lp: lp["w_outT"].reshape(H, dh, D))     # (L, H, dh, D)
    bo = stack(lambda lp: lp["b_out"])
    w1 = stack(lambda lp: lp["w1T"])
    b1 = stack(lambda lp: lp["b1"])
    w2 = stack(lambda lp: lp["w2T"])
    b2 = stack(lambda lp: lp["b2"])
    ln1w = stack(lambda lp: lp["ln1w"])
    ln1b = stack(lambda lp: lp["ln1b"])
    ln2w = stack(lambda lp: lp["ln2w"])
    ln2b = stack(lambda lp: lp["ln2b"])

    weights = (wq, wk, wv, bq, bk, bv, wo, bo, w1, b1, w2, b2,
               ln1w, ln1b, ln2w, ln2b)
    in_specs = ([_const_spec(x0.shape), _const_spec(bias.shape)]
                + [_layer_spec(w.shape[1:]) for w in weights])

    kernel = functools.partial(_decoder_stack_kernel, seq=seq, num_heads=H)
    return pl.pallas_call(
        kernel,
        out_shape=jax.ShapeDtypeStruct((n, D), jnp.float32),
        grid=(L,),
        in_specs=in_specs,
        out_specs=_const_spec((n, D)),
        scratch_shapes=[pltpu.VMEM((n, D), jnp.float32)],
        compiler_params=pltpu.CompilerParams(dimension_semantics=("arbitrary",)),
    )(x0, bias, *weights)


# --------------------------------------------------------------------------
# Kernel 3: final LayerNorm + vocab projection (batch-fused M = B*S rows)
# --------------------------------------------------------------------------
def _final_norm_proj_kernel(x_ref, lnw_ref, lnb_ref, wpT_ref, bp_ref, o_ref):
    xn = _layernorm(x_ref[...], lnw_ref[...], lnb_ref[...])
    o_ref[...] = (jnp.dot(xn, wpT_ref[...], preferred_element_type=jnp.float32)
                  + bp_ref[...])


def final_norm_projection(x, lnw, lnb, wpT, bp):
    n, D = x.shape
    V = wpT.shape[1]
    # TODO(synk): for realistic vocab sizes tile V with a second ("parallel")
    # 128/256-lane grid axis; V=128 fits a single const weight block here.
    return pl.pallas_call(
        _final_norm_proj_kernel,
        out_shape=jax.ShapeDtypeStruct((n, V), jnp.float32),
        grid=(1,),
        in_specs=[_const_spec((n, D)), _const_spec(lnw.shape),
                  _const_spec(lnb.shape), _const_spec(wpT.shape),
                  _const_spec(bp.shape)],
        out_specs=_const_spec((n, V)),
    )(x, lnw, lnb, wpT, bp)


# --------------------------------------------------------------------------
# Full forward
# --------------------------------------------------------------------------
def generator_transformer_forward(ids, params, *, num_heads, pad_id):
    B, S = ids.shape
    ids = ids.astype(jnp.int32)
    x0 = embed_scale_pe(ids, params["emb"], params["pe"])      # (B*S, D)
    bias = build_attn_bias(ids, pad_id)                        # (B, S, S)
    x = decoder_stack(x0, bias, params["layers"], num_heads=num_heads, seq=S)
    logits = final_norm_projection(x, params["lnw"], params["lnb"],
                                   params["wpT"], params["bp"])
    return logits.reshape(B, S, -1)


# --------------------------------------------------------------------------
# Parameters (weights stored pre-transposed: Linear(x) = x @ W^T + b)
# --------------------------------------------------------------------------
def make_positional_encoding(d_model, max_len):
    position = jnp.arange(max_len, dtype=jnp.float32)[:, None]
    div_term = jnp.exp(jnp.arange(0, d_model, 2, dtype=jnp.float32)
                       * (-math.log(10000.0) / d_model))
    ang = position * div_term
    pe = jnp.zeros((max_len, d_model), jnp.float32)
    pe = pe.at[:, 0::2].set(jnp.sin(ang))
    pe = pe.at[:, 1::2].set(jnp.cos(ang))
    return pe


def init_params(key, *, vocab, d_model, num_heads, d_ff, num_layers, max_len,
                pad_id):
    keys = iter(jax.random.split(key, 128))

    def nrm(shape, scale):
        return scale * jax.random.normal(next(keys), shape, jnp.float32)

    params = {
        "emb": nrm((vocab, d_model), 0.5).at[pad_id].set(0.0),  # padding_idx row
        "pe": make_positional_encoding(d_model, max_len),
        "layers": [],
        "lnw": 1.0 + nrm((1, d_model), 0.05),
        "lnb": nrm((1, d_model), 0.05),
        "wpT": nrm((d_model, vocab), 0.08),
        "bp": nrm((1, vocab), 0.02),
    }
    for _ in range(num_layers):
        params["layers"].append({
            "w_inT": nrm((d_model, 3 * d_model), 0.08),
            "b_in": nrm((1, 3 * d_model), 0.02),
            "w_outT": nrm((d_model, d_model), 0.08),
            "b_out": nrm((1, d_model), 0.02),
            "w1T": nrm((d_model, d_ff), 0.08),
            "b1": nrm((1, d_ff), 0.02),
            "w2T": nrm((d_ff, d_model), 0.06),
            "b2": nrm((1, d_model), 0.02),
            "ln1w": 1.0 + nrm((1, d_model), 0.05),
            "ln1b": nrm((1, d_model), 0.05),
            "ln2w": 1.0 + nrm((1, d_model), 0.05),
            "ln2b": nrm((1, d_model), 0.05),
        })
    return params


# --------------------------------------------------------------------------
# Pure-JAX reference (same math, PyTorch-faithful combined-weight layout)
# --------------------------------------------------------------------------
def reference_forward(ids, params, *, num_heads, pad_id):
    hp = lax.Precision.HIGHEST
    B, S = ids.shape
    D = params["emb"].shape[1]
    H, dh = num_heads, D // num_heads
    x = params["emb"][ids] * math.sqrt(D) + params["pe"][:S][None]
    bias = build_attn_bias(ids, pad_id)[:, None]               # (B, 1, S, S)
    for lp in params["layers"]:
        qkv = jnp.matmul(x, lp["w_inT"], precision=hp) + lp["b_in"]
        q, k, v = jnp.split(qkv, 3, axis=-1)
        to_h = lambda t: t.reshape(B, S, H, dh).transpose(0, 2, 1, 3)
        qh, kh, vh = to_h(q), to_h(k), to_h(v)
        s = jnp.einsum("bhqd,bhkd->bhqk", qh, kh, precision=hp) / math.sqrt(dh)
        a = jax.nn.softmax(s + bias, axis=-1)
        o = jnp.einsum("bhqk,bhkd->bhqd", a, vh, precision=hp)
        o = o.transpose(0, 2, 1, 3).reshape(B, S, D)
        o = jnp.matmul(o, lp["w_outT"], precision=hp) + lp["b_out"]
        x = _layernorm(x + o, lp["ln1w"], lp["ln1b"])
        h = jnp.maximum(jnp.matmul(x, lp["w1T"], precision=hp) + lp["b1"], 0.0)
        h = jnp.matmul(h, lp["w2T"], precision=hp) + lp["b2"]
        x = _layernorm(x + h, lp["ln2w"], lp["ln2b"])
    x = _layernorm(x, params["lnw"], params["lnb"])
    return jnp.matmul(x, params["wpT"], precision=hp) + params["bp"]


if __name__ == "__main__":
    VOCAB, D_MODEL, NUM_HEADS, D_FF = 128, 128, 4, 256
    NUM_LAYERS, MAX_LEN, PAD_ID = 2, 64, 0
    B, S = 2, 8

    pkey, tkey = jax.random.split(jax.random.PRNGKey(0))
    params = init_params(pkey, vocab=VOCAB, d_model=D_MODEL, num_heads=NUM_HEADS,
                         d_ff=D_FF, num_layers=NUM_LAYERS, max_len=MAX_LEN,
                         pad_id=PAD_ID)

    # Right-padded token ids (position 0 is always a real token, so no attention
    # row is fully masked — same validity requirement as the PyTorch module).
    ids = jax.random.randint(tkey, (B, S), 1, VOCAB, dtype=jnp.int32)
    ids = ids.at[0, S - 2:].set(PAD_ID)

    fwd = jax.jit(functools.partial(generator_transformer_forward,
                                    num_heads=NUM_HEADS, pad_id=PAD_ID))
    logits = jax.block_until_ready(fwd(ids, params))

    ref = jax.block_until_ready(
        reference_forward(ids, params, num_heads=NUM_HEADS, pad_id=PAD_ID))

    assert logits.shape == (B, S, VOCAB)
    assert bool(jnp.all(jnp.isfinite(logits)))
    assert jnp.allclose(logits, ref, atol=2e-2, rtol=2e-2), (
        f"max abs err {float(jnp.max(jnp.abs(logits - ref)))}")

    print("KERNEL_OK")
</pallas_src>

<mosaic_0001>
module attributes {stable_mosaic.version = 11 : i64} {
  func.func @_embed_scale_pe_kernel(%arg0: i32, %arg1: memref<16x1xi32, #tpu.memory_space<vmem>>, %arg2: memref<128x128xf32, #tpu.memory_space<vmem>>, %arg3: memref<16x128xf32, #tpu.memory_space<vmem>>, %arg4: memref<16x128xf32, #tpu.memory_space<vmem>>) attributes {dimension_semantics = [#tpu.dimension_semantics<arbitrary>], iteration_bounds = array<i64: 1>, scalar_prefetch = 0 : i64, scratch_operands = 0 : i64, tpu.core_type = #tpu.core_type<tc>, window_params = [{pipeline_mode = #tpu.pipeline_mode<synchronous>, transform_indices = @transform_0, window_bounds = array<i64: 16, 1>}, {pipeline_mode = #tpu.pipeline_mode<synchronous>, transform_indices = @transform_1, window_bounds = array<i64: 128, 128>}, {pipeline_mode = #tpu.pipeline_mode<synchronous>, transform_indices = @transform_2, window_bounds = array<i64: 16, 128>}, {pipeline_mode = #tpu.pipeline_mode<synchronous>, transform_indices = @transform_3, window_bounds = array<i64: 16, 128>}]} {
    %c0 = arith.constant 0 : index
    %c0_0 = arith.constant 0 : index
    %0 = vector.load %arg1[%c0, %c0_0] : memref<16x1xi32, #tpu.memory_space<vmem>>, vector<16x1xi32>
    %1 = tpu.iota {dimensions = array<i32: 1>} : vector<16x128xi32>
    %2 = vector.broadcast %0 : vector<16x1xi32> to vector<16x128xi32>
    %3 = arith.cmpi eq, %1, %2 : vector<16x128xi32>
    %4 = arith.extui %3 : vector<16x128xi1> to vector<16x128xi32>
    %5 = arith.sitofp %4 : vector<16x128xi32> to vector<16x128xf32>
    %c0_1 = arith.constant 0 : index
    %c0_2 = arith.constant 0 : index
    %6 = vector.load %arg2[%c0_1, %c0_2] : memref<128x128xf32, #tpu.memory_space<vmem>>, vector<128x128xf32>
    %cst = arith.constant dense<0.000000e+00> : vector<16x128xf32>
    %7 = tpu.matmul %5, %6, %cst {dimension_numbers = #tpu.dot_dimension_numbers<[1], [0], [0], [1], [0, 0, 1, 1], [], []>} : vector<16x128xf32>, vector<128x128xf32>, vector<16x128xf32> -> vector<16x128xf32>
    %cst_3 = arith.constant 11.3137083 : f32
    %8 = vector.broadcast %cst_3 : f32 to vector<16x128xf32>
    %9 = arith.mulf %7, %8 : vector<16x128xf32>
    %c0_4 = arith.constant 0 : index
    %c0_5 = arith.constant 0 : index
    %10 = vector.load %arg3[%c0_4, %c0_5] : memref<16x128xf32, #tpu.memory_space<vmem>>, vector<16x128xf32>
    %11 = arith.addf %9, %10 : vector<16x128xf32>
    %c0_6 = arith.constant 0 : index
    %c0_7 = arith.constant 0 : index
    %12 = vector.load %arg4[%c0_6, %c0_7] : memref<16x128xf32, #tpu.memory_space<vmem>>, vector<16x128xf32>
    tpu.vector_store %arg4[%c0_6, %c0_7], %11 {strides = array<i32>} : memref<16x128xf32, #tpu.memory_space<vmem>>, vector<16x128xf32>,
    return
  }
  func.func @transform_0(%arg0: i32) -> (i32, i32) {
    %c0_i32 = arith.constant 0 : i32
    %c0_i32_0 = arith.constant 0 : i32
    %c0_i32_1 = arith.constant 0 : i32
    return %c0_i32, %c0_i32_0 : i32, i32
  }
  func.func @transform_1(%arg0: i32) -> (i32, i32) {
    %c0_i32 = arith.constant 0 : i32
    %c0_i32_0 = arith.constant 0 : i32
    %c0_i32_1 = arith.constant 0 : i32
    return %c0_i32, %c0_i32_0 : i32, i32
  }
  func.func @transform_2(%arg0: i32) -> (i32, i32) {
    %c0_i32 = arith.constant 0 : i32
    %c0_i32_0 = arith.constant 0 : i32
    %c0_i32_1 = arith.constant 0 : i32
    return %c0_i32, %c0_i32_0 : i32, i32
  }
  func.func @transform_3(%arg0: i32) -> (i32, i32) {
    %c0_i32 = arith.constant 0 : i32
    %c0_i32_0 = arith.constant 0 : i32
    %c0_i32_1 = arith.constant 0 : i32
    return %c0_i32, %c0_i32_0 : i32, i32
  }
}

module attributes {stable_mosaic.version = 11 : i64} {
  func.func @_final_norm_proj_kernel(%arg0: i32, %arg1: memref<16x128xf32, #tpu.memory_space<vmem>>, %arg2: memref<1x128xf32, #tpu.memory_space<vmem>>, %arg3: memref<1x128xf32, #tpu.memory_space<vmem>>, %arg4: memref<128x128xf32, #tpu.memory_space<vmem>>, %arg5: memref<1x128xf32, #tpu.memory_space<vmem>>, %arg6: memref<16x128xf32, #tpu.memory_space<vmem>>) attributes {dimension_semantics = [#tpu.dimension_semantics<arbitrary>], iteration_bounds = array<i64: 1>, scalar_prefetch = 0 : i64, scratch_operands = 0 : i64, tpu.core_type = #tpu.core_type<tc>, window_params = [{pipeline_mode = #tpu.pipeline_mode<synchronous>, transform_indices = @transform_0, window_bounds = array<i64: 16, 128>}, {pipeline_mode = #tpu.pipeline_mode<synchronous>, transform_indices = @transform_1, window_bounds = array<i64: 1, 128>}, {pipeline_mode = #tpu.pipeline_mode<synchronous>, transform_indices = @transform_2, window_bounds = array<i64: 1, 128>}, {pipeline_mode = #tpu.pipeline_mode<synchronous>, transform_indices = @transform_3, window_bounds = array<i64: 128, 128>}, {pipeline_mode = #tpu.pipeline_mode<synchronous>, transform_indices = @transform_4, window_bounds = array<i64: 1, 128>}, {pipeline_mode = #tpu.pipeline_mode<synchronous>, transform_indices = @transform_5, window_bounds = array<i64: 16, 128>}]} {
    %c0 = arith.constant 0 : index
    %c0_0 = arith.constant 0 : index
    %0 = vector.load %arg1[%c0, %c0_0] : memref<16x128xf32, #tpu.memory_space<vmem>>, vector<16x128xf32>
    %c0_1 = arith.constant 0 : index
    %c0_2 = arith.constant 0 : index
    %1 = vector.load %arg2[%c0_1, %c0_2] : memref<1x128xf32, #tpu.memory_space<vmem>>, vector<1x128xf32>
    %c0_3 = arith.constant 0 : index
    %c0_4 = arith.constant 0 : index
    %2 = vector.load %arg3[%c0_3, %c0_4] : memref<1x128xf32, #tpu.memory_space<vmem>>, vector<1x128xf32>
    %cst = arith.constant dense<0.000000e+00> : vector<16xf32>
    %3 = vector.multi_reduction <add>, %0, %cst [1] : vector<16x128xf32> to vector<16xf32>
    %4 = vector.shape_cast %3 : vector<16xf32> to vector<16x1xf32>
    %cst_5 = arith.constant 1.280000e+02 : f32
    %5 = vector.broadcast %cst_5 : f32 to vector<16x1xf32>
    %6 = arith.divf %4, %5 : vector<16x1xf32>
    %7 = vector.broadcast %6 : vector<16x1xf32> to vector<16x128xf32>
    %8 = arith.subf %0, %7 : vector<16x128xf32>
    %9 = arith.mulf %8, %8 : vector<16x128xf32>
    %cst_6 = arith.constant dense<0.000000e+00> : vector<16xf32>
    %10 = vector.multi_reduction <add>, %9, %cst_6 [1] : vector<16x128xf32> to vector<16xf32>
    %11 = vector.shape_cast %10 : vector<16xf32> to vector<16x1xf32>
    %cst_7 = arith.constant 1.280000e+02 : f32
    %12 = vector.broadcast %cst_7 : f32 to vector<16x1xf32>
    %13 = arith.divf %11, %12 : vector<16x1xf32>
    %cst_8 = arith.constant 9.99999974E-6 : f32
    %14 = vector.broadcast %cst_8 : f32 to vector<16x1xf32>
    %15 = arith.addf %13, %14 : vector<16x1xf32>
    %16 = math.rsqrt %15 : vector<16x1xf32>
    %17 = vector.broadcast %16 : vector<16x1xf32> to vector<16x128xf32>
    %18 = arith.mulf %8, %17 : vector<16x128xf32>
    %19 = vector.broadcast %1 : vector<1x128xf32> to vector<16x128xf32>
    %20 = arith.mulf %18, %19 : vector<16x128xf32>
    %21 = vector.broadcast %2 : vector<1x128xf32> to vector<16x128xf32>
    %22 = arith.addf %20, %21 : vector<16x128xf32>
    %c0_9 = arith.constant 0 : index
    %c0_10 = arith.constant 0 : index
    %23 = vector.load %arg4[%c0_9, %c0_10] : memref<128x128xf32, #tpu.memory_space<vmem>>, vector<128x128xf32>
    %cst_11 = arith.constant dense<0.000000e+00> : vector<16x128xf32>
    %24 = tpu.matmul %22, %23, %cst_11 {dimension_numbers = #tpu.dot_dimension_numbers<[1], [0], [0], [1], [0, 0, 1, 1], [], []>} : vector<16x128xf32>, vector<128x128xf32>, vector<16x128xf32> -> vector<16x128xf32>
    %c0_12 = arith.constant 0 : index
    %c0_13 = arith.constant 0 : index
    %25 = vector.load %arg5[%c0_12, %c0_13] : memref<1x128xf32, #tpu.memory_space<vmem>>, vector<1x128xf32>
    %26 = vector.broadcast %25 : vector<1x128xf32> to vector<16x128xf32>
    %27 = arith.addf %24, %26 : vector<16x128xf32>
    %c0_14 = arith.constant 0 : index
    %c0_15 = arith.constant 0 : index
    %28 = vector.load %arg6[%c0_14, %c0_15] : memref<16x128xf32, #tpu.memory_space<vmem>>, vector<16x128xf32>
    tpu.vector_store %arg6[%c0_14, %c0_15], %27 {strides = array<i32>} : memref<16x128xf32, #tpu.memory_space<vmem>>, vector<16x128xf32>,
    return
  }
  func.func @transform_0(%arg0: i32) -> (i32, i32) {
    %c0_i32 = arith.constant 0 : i32
    %c0_i32_0 = arith.constant 0 : i32
    %c0_i32_1 = arith.constant 0 : i32
    return %c0_i32, %c0_i32_0 : i32, i32
  }
  func.func @transform_1(%arg0: i32) -> (i32, i32) {
    %c0_i32 = arith.constant 0 : i32
    %c0_i32_0 = arith.constant 0 : i32
    %c0_i32_1 = arith.constant 0 : i32
    return %c0_i32, %c0_i32_0 : i32, i32
  }
  func.func @transform_2(%arg0: i32) -> (i32, i32) {
    %c0_i32 = arith.constant 0 : i32
    %c0_i32_0 = arith.constant 0 : i32
    %c0_i32_1 = arith.constant 0 : i32
    return %c0_i32, %c0_i32_0 : i32, i32
  }
  func.func @transform_3(%arg0: i32) -> (i32, i32) {
    %c0_i32 = arith.constant 0 : i32
    %c0_i32_0 = arith.constant 0 : i32
    %c0_i32_1 = arith.constant 0 : i32
    return %c0_i32, %c0_i32_0 : i32, i32
  }
  func.func @transform_4(%arg0: i32) -> (i32, i32) {
    %c0_i32 = arith.constant 0 : i32
    %c0_i32_0 = arith.constant 0 : i32
    %c0_i32_1 = arith.constant 0 : i32
    return %c0_i32, %c0_i32_0 : i32, i32
  }
  func.func @transform_5(%arg0: i32) -> (i32, i32) {
    %c0_i32 = arith.constant 0 : i32
    %c0_i32_0 = arith.constant 0 : i32
    %c0_i32_1 = arith.constant 0 : i32
    return %c0_i32, %c0_i32_0 : i32, i32
  }
}

module attributes {stable_mosaic.version = 11 : i64} {
  func.func @_decoder_stack_kernel(%arg0: i32, %arg1: memref<16x128xf32, #tpu.memory_space<vmem>>, %arg2: memref<2x8x8xf32, #tpu.memory_space<vmem>>, %arg3: memref<1x4x128x32xf32, #tpu.memory_space<vmem>>, %arg4: memref<1x4x128x32xf32, #tpu.memory_space<vmem>>, %arg5: memref<1x4x128x32xf32, #tpu.memory_space<vmem>>, %arg6: memref<1x4x1x32xf32, #tpu.memory_space<vmem>>, %arg7: memref<1x4x1x32xf32, #tpu.memory_space<vmem>>, %arg8: memref<1x4x1x32xf32, #tpu.memory_space<vmem>>, %arg9: memref<1x4x32x128xf32, #tpu.memory_space<vmem>>, %arg10: memref<1x1x128xf32, #tpu.memory_space<vmem>>, %arg11: memref<1x128x256xf32, #tpu.memory_space<vmem>>, %arg12: memref<1x1x256xf32, #tpu.memory_space<vmem>>, %arg13: memref<1x256x128xf32, #tpu.memory_space<vmem>>, %arg14: memref<1x1x128xf32, #tpu.memory_space<vmem>>, %arg15: memref<1x1x128xf32, #tpu.memory_space<vmem>>, %arg16: memref<1x1x128xf32, #tpu.memory_space<vmem>>, %arg17: memref<1x1x128xf32, #tpu.memory_space<vmem>>, %arg18: memref<1x1x128xf32, #tpu.memory_space<vmem>>, %arg19: memref<16x128xf32, #tpu.memory_space<vmem>>, %arg20: memref<16x128xf32, #tpu.memory_space<vmem>>) attributes {dimension_semantics = [#tpu.dimension_semantics<arbitrary>], iteration_bounds = array<i64: 2>, scalar_prefetch = 0 : i64, scratch_operands = 1 : i64, tpu.core_type = #tpu.core_type<tc>, window_params = [{pipeline_mode = #tpu.pipeline_mode<synchronous>, transform_indices = @transform_0, window_bounds = array<i64: 16, 128>}, {pipeline_mode = #tpu.pipeline_mode<synchronous>, transform_indices = @transform_1, window_bounds = array<i64: 2, 8, 8>}, {transform_indices = @transform_2, window_bounds = array<i64: 1, 4, 128, 32>}, {transform_indices = @transform_3, window_bounds = array<i64: 1, 4, 128, 32>}, {transform_indices = @transform_4, window_bounds = array<i64: 1, 4, 128, 32>}, {transform_indices = @transform_5, window_bounds = array<i64: 1, 4, 1, 32>}, {transform_indices = @transform_6, window_bounds = array<i64: 1, 4, 1, 32>}, {transform_indices = @transform_7, window_bounds = array<i64: 1, 4, 1, 32>}, {transform_indices = @transform_8, window_bounds = array<i64: 1, 4, 32, 128>}, {transform_indices = @transform_9, window_bounds = array<i64: 1, 1, 128>}, {transform_indices = @transform_10, window_bounds = array<i64: 1, 128, 256>}, {transform_indices = @transform_11, window_bounds = array<i64: 1, 1, 256>}, {transform_indices = @transform_12, window_bounds = array<i64: 1, 256, 128>}, {transform_indices = @transform_13, window_bounds = array<i64: 1, 1, 128>}, {transform_indices = @transform_14, window_bounds = array<i64: 1, 1, 128>}, {transform_indices = @transform_15, window_bounds = array<i64: 1, 1, 128>}, {transform_indices = @transform_16, window_bounds = array<i64: 1, 1, 128>}, {transform_indices = @transform_17, window_bounds = array<i64: 1, 1, 128>}, {pipeline_mode = #tpu.pipeline_mode<synchronous>, transform_indices = @transform_18, window_bounds = array<i64: 16, 128>}]} {
    %c0_i32 = arith.constant 0 : i32
    %0 = arith.cmpi eq, %arg0, %c0_i32 : i32
    %1 = arith.extui %0 : i1 to i32
    %c0_i32_0 = arith.constant 0 : i32
    %2 = arith.cmpi ne, %1, %c0_i32_0 : i32
    scf.if %2 {
      %c0_101 = arith.constant 0 : index
      %c0_102 = arith.constant 0 : index
      %201 = vector.load %arg1[%c0_101, %c0_102] : memref<16x128xf32, #tpu.memory_space<vmem>>, vector<16x128xf32>
      %c0_103 = arith.constant 0 : index
      %c0_104 = arith.constant 0 : index
      %202 = vector.load %arg20[%c0_103, %c0_104] : memref<16x128xf32, #tpu.memory_space<vmem>>, vector<16x128xf32>
      tpu.vector_store %arg20[%c0_103, %c0_104], %201 {strides = array<i32>} : memref<16x128xf32, #tpu.memory_space<vmem>>, vector<16x128xf32>,
    } else {
    }
    %c0 = arith.constant 0 : index
    %c0_1 = arith.constant 0 : index
    %3 = vector.load %arg20[%c0, %c0_1] : memref<16x128xf32, #tpu.memory_space<vmem>>, vector<16x128xf32>
    %c0_2 = arith.constant 0 : index
    %c0_3 = arith.constant 0 : index
    %c0_4 = arith.constant 0 : index
    %c0_5 = arith.constant 0 : index
    %4 = vector.load %arg3[%c0_2, %c0_3, %c0_4, %c0_5] : memref<1x4x128x32xf32, #tpu.memory_space<vmem>>, vector<1x4x128x32xf32>
    %5 = vector.shape_cast %4 : vector<1x4x128x32xf32> to vector<4x128x32xf32>
    %c0_6 = arith.constant 0 : index
    %c0_7 = arith.constant 0 : index
    %c0_8 = arith.constant 0 : index
    %c0_9 = arith.constant 0 : index
    %6 = vector.load %arg4[%c0_6, %c0_7, %c0_8, %c0_9] : memref<1x4x128x32xf32, #tpu.memory_space<vmem>>, vector<1x4x128x32xf32>
    %7 = vector.shape_cast %6 : vector<1x4x128x32xf32> to vector<4x128x32xf32>
    %c0_10 = arith.constant 0 : index
    %c0_11 = arith.constant 0 : index
    %c0_12 = arith.constant 0 : index
    %c0_13 = arith.constant 0 : index
    %8 = vector.load %arg5[%c0_10, %c0_11, %c0_12, %c0_13] : memref<1x4x128x32xf32, #tpu.memory_space<vmem>>, vector<1x4x128x32xf32>
    %9 = vector.shape_cast %8 : vector<1x4x128x32xf32> to vector<4x128x32xf32>
    %c0_14 = arith.constant 0 : index
    %c0_15 = arith.constant 0 : index
    %c0_16 = arith.constant 0 : index
    %c0_17 = arith.constant 0 : index
    %10 = vector.load %arg6[%c0_14, %c0_15, %c0_16, %c0_17] : memref<1x4x1x32xf32, #tpu.memory_space<vmem>>, vector<1x4x1x32xf32>
    %11 = vector.shape_cast %10 : vector<1x4x1x32xf32> to vector<4x1x32xf32>
    %c0_18 = arith.constant 0 : index
    %c0_19 = arith.constant 0 : index
    %c0_20 = arith.constant 0 : index
    %c0_21 = arith.constant 0 : index
    %12 = vector.load %arg7[%c0_18, %c0_19, %c0_20, %c0_21] : memref<1x4x1x32xf32, #tpu.memory_space<vmem>>, vector<1x4x1x32xf32>
    %13 = vector.shape_cast %12 : vector<1x4x1x32xf32> to vector<4x1x32xf32>
    %c0_22 = arith.constant 0 : index
    %c0_23 = arith.constant 0 : index
    %c0_24 = arith.constant 0 : index
    %c0_25 = arith.constant 0 : index
    %14 = vector.load %arg8[%c0_22, %c0_23, %c0_24, %c0_25] : memref<1x4x1x32xf32, #tpu.memory_space<vmem>>, vector<1x4x1x32xf32>
    %15 = vector.shape_cast %14 : vector<1x4x1x32xf32> to vector<4x1x32xf32>
    %c0_26 = arith.constant 0 : index
    %c0_27 = arith.constant 0 : index
    %c0_28 = arith.constant 0 : index
    %c0_29 = arith.constant 0 : index
    %16 = vector.load %arg9[%c0_26, %c0_27, %c0_28, %c0_29] : memref<1x4x32x128xf32, #tpu.memory_space<vmem>>, vector<1x4x32x128xf32>
    %17 = vector.shape_cast %16 : vector<1x4x32x128xf32> to vector<4x32x128xf32>
    %18 = vector.extract_strided_slice %3 {offsets = [0, 0], sizes = [8, 128], strides = [1, 1]} : vector<16x128xf32> to vector<8x128xf32>
    %19 = vector.shape_cast %18 : vector<8x128xf32> to vector<1x8x128xf32>
    %20 = vector.broadcast %19 : vector<1x8x128xf32> to vector<4x8x128xf32>
    "tpu.trace_start"() <{level = 10 : i32, message = "hsd,hde->hse"}> : () -> ()
    %cst = arith.constant dense<0.000000e+00> : vector<4x8x32xf32>
    %21 = tpu.matmul %20, %5, %cst {dimension_numbers = #tpu.dot_dimension_numbers<[2], [1], [1], [2], [0, 0, 0, 1, 1, 2], [0], [0]>} : vector<4x8x128xf32>, vector<4x128x32xf32>, vector<4x8x32xf32> -> vector<4x8x32xf32>
    "tpu.trace_stop"() : () -> ()
    %22 = vector.broadcast %11 : vector<4x1x32xf32> to vector<4x8x32xf32>
    %23 = arith.addf %21, %22 : vector<4x8x32xf32>
    "tpu.trace_start"() <{level = 10 : i32, message = "hsd,hde->hse"}> : () -> ()
    %cst_30 = arith.constant dense<0.000000e+00> : vector<4x8x32xf32>
    %24 = tpu.matmul %20, %7, %cst_30 {dimension_numbers = #tpu.dot_dimension_numbers<[2], [1], [1], [2], [0, 0, 0, 1, 1, 2], [0], [0]>} : vector<4x8x128xf32>, vector<4x128x32xf32>, vector<4x8x32xf32> -> vector<4x8x32xf32>
    "tpu.trace_stop"() : () -> ()
    %25 = vector.broadcast %13 : vector<4x1x32xf32> to vector<4x8x32xf32>
    %26 = arith.addf %24, %25 : vector<4x8x32xf32>
    "tpu.trace_start"() <{level = 10 : i32, message = "hsd,hde->hse"}> : () -> ()
    %cst_31 = arith.constant dense<0.000000e+00> : vector<4x8x32xf32>
    %27 = tpu.matmul %20, %9, %cst_31 {dimension_numbers = #tpu.dot_dimension_numbers<[2], [1], [1], [2], [0, 0, 0, 1, 1, 2], [0], [0]>} : vector<4x8x128xf32>, vector<4x128x32xf32>, vector<4x8x32xf32> -> vector<4x8x32xf32>
    "tpu.trace_stop"() : () -> ()
    %28 = vector.broadcast %15 : vector<4x1x32xf32> to vector<4x8x32xf32>
    %29 = arith.addf %27, %28 : vector<4x8x32xf32>
    "tpu.trace_start"() <{level = 10 : i32, message = "hqe,hke->hqk"}> : () -> ()
    %cst_32 = arith.constant dense<0.000000e+00> : vector<4x8x8xf32>
    %30 = tpu.matmul %23, %26, %cst_32 {dimension_numbers = #tpu.dot_dimension_numbers<[2], [2], [1], [1], [0, 0, 0, 1, 1, 1], [0], [0]>} : vector<4x8x32xf32>, vector<4x8x32xf32>, vector<4x8x8xf32> -> vector<4x8x8xf32>
    "tpu.trace_stop"() : () -> ()
    %cst_33 = arith.constant 0.176776692 : f32
    %31 = vector.broadcast %cst_33 : f32 to vector<4x8x8xf32>
    %32 = arith.mulf %30, %31 : vector<4x8x8xf32>
    %c0_34 = arith.constant 0 : index
    %c0_35 = arith.constant 0 : index
    %c0_36 = arith.constant 0 : index
    %33 = vector.load %arg2[%c0_34, %c0_35, %c0_36] : memref<2x8x8xf32, #tpu.memory_space<vmem>>, vector<1x8x8xf32>
    %34 = vector.shape_cast %33 : vector<1x8x8xf32> to vector<8x8xf32>
    %35 = vector.shape_cast %34 : vector<8x8xf32> to vector<1x8x8xf32>
    %36 = vector.broadcast %35 : vector<1x8x8xf32> to vector<4x8x8xf32>
    %37 = arith.addf %32, %36 : vector<4x8x8xf32>
    %cst_37 = arith.constant dense<0xFF800000> : vector<4x8xf32>
    %38 = vector.multi_reduction <maximumf>, %37, %cst_37 [2] : vector<4x8x8xf32> to vector<4x8xf32>
    %39 = vector.shape_cast %38 : vector<4x8xf32> to vector<4x8x1xf32>
    %40 = vector.broadcast %39 : vector<4x8x1xf32> to vector<4x8x8xf32>
    %41 = arith.subf %37, %40 : vector<4x8x8xf32>
    %42 = math.exp %41 : vector<4x8x8xf32>
    %cst_38 = arith.constant dense<0.000000e+00> : vector<4x8xf32>
    %43 = vector.multi_reduction <add>, %42, %cst_38 [2] : vector<4x8x8xf32> to vector<4x8xf32>
    %44 = vector.shape_cast %43 : vector<4x8xf32> to vector<4x8x1xf32>
    %45 = tpu.reciprocal %44 {approx = true} : vector<4x8x1xf32> -> vector<4x8x1xf32>
    %46 = vector.broadcast %45 : vector<4x8x1xf32> to vector<4x8x8xf32>
    %47 = arith.mulf %42, %46 : vector<4x8x8xf32>
    "tpu.trace_start"() <{level = 10 : i32, message = "hqk,hke->hqe"}> : () -> ()
    %cst_39 = arith.constant dense<0.000000e+00> : vector<4x8x32xf32>
    %48 = tpu.matmul %47, %29, %cst_39 {dimension_numbers = #tpu.dot_dimension_numbers<[2], [1], [1], [2], [0, 0, 0, 1, 1, 2], [0], [0]>} : vector<4x8x8xf32>, vector<4x8x32xf32>, vector<4x8x32xf32> -> vector<4x8x32xf32>
    "tpu.trace_stop"() : () -> ()
    %49 = vector.extract_strided_slice %48 {offsets = [0, 0, 0], sizes = [1, 8, 32], strides = [1, 1, 1]} : vector<4x8x32xf32> to vector<1x8x32xf32>
    %50 = vector.shape_cast %49 : vector<1x8x32xf32> to vector<8x32xf32>
    %51 = vector.extract_strided_slice %17 {offsets = [0, 0, 0], sizes = [1, 32, 128], strides = [1, 1, 1]} : vector<4x32x128xf32> to vector<1x32x128xf32>
    %52 = vector.shape_cast %51 : vector<1x32x128xf32> to vector<32x128xf32>
    %cst_40 = arith.constant dense<0.000000e+00> : vector<8x128xf32>
    %53 = tpu.matmul %50, %52, %cst_40 {dimension_numbers = #tpu.dot_dimension_numbers<[1], [0], [0], [1], [0, 0, 1, 1], [], []>} : vector<8x32xf32>, vector<32x128xf32>, vector<8x128xf32> -> vector<8x128xf32>
    %54 = vector.extract_strided_slice %48 {offsets = [1, 0, 0], sizes = [1, 8, 32], strides = [1, 1, 1]} : vector<4x8x32xf32> to vector<1x8x32xf32>
    %55 = vector.shape_cast %54 : vector<1x8x32xf32> to vector<8x32xf32>
    %56 = vector.extract_strided_slice %17 {offsets = [1, 0, 0], sizes = [1, 32, 128], strides = [1, 1, 1]} : vector<4x32x128xf32> to vector<1x32x128xf32>
    %57 = vector.shape_cast %56 : vector<1x32x128xf32> to vector<32x128xf32>
    %cst_41 = arith.constant dense<0.000000e+00> : vector<8x128xf32>
    %58 = tpu.matmul %55, %57, %cst_41 {dimension_numbers = #tpu.dot_dimension_numbers<[1], [0], [0], [1], [0, 0, 1, 1], [], []>} : vector<8x32xf32>, vector<32x128xf32>, vector<8x128xf32> -> vector<8x128xf32>
    %59 = arith.addf %53, %58 : vector<8x128xf32>
    %60 = vector.extract_strided_slice %48 {offsets = [2, 0, 0], sizes = [1, 8, 32], strides = [1, 1, 1]} : vector<4x8x32xf32> to vector<1x8x32xf32>
    %61 = vector.shape_cast %60 : vector<1x8x32xf32> to vector<8x32xf32>
    %62 = vector.extract_strided_slice %17 {offsets = [2, 0, 0], sizes = [1, 32, 128], strides = [1, 1, 1]} : vector<4x32x128xf32> to vector<1x32x128xf32>
    %63 = vector.shape_cast %62 : vector<1x32x128xf32> to vector<32x128xf32>
    %cst_42 = arith.constant dense<0.000000e+00> : vector<8x128xf32>
    %64 = tpu.matmul %61, %63, %cst_42 {dimension_numbers = #tpu.dot_dimension_numbers<[1], [0], [0], [1], [0, 0, 1, 1], [], []>} : vector<8x32xf32>, vector<32x128xf32>, vector<8x128xf32> -> vector<8x128xf32>
    %65 = arith.addf %59, %64 : vector<8x128xf32>
    %66 = vector.extract_strided_slice %48 {offsets = [3, 0, 0], sizes = [1, 8, 32], strides = [1, 1, 1]} : vector<4x8x32xf32> to vector<1x8x32xf32>
    %67 = vector.shape_cast %66 : vector<1x8x32xf32> to vector<8x32xf32>
    %68 = vector.extract_strided_slice %17 {offsets = [3, 0, 0], sizes = [1, 32, 128], strides = [1, 1, 1]} : vector<4x32x128xf32> to vector<1x32x128xf32>
    %69 = vector.shape_cast %68 : vector<1x32x128xf32> to vector<32x128xf32>
    %cst_43 = arith.constant dense<0.000000e+00> : vector<8x128xf32>
    %70 = tpu.matmul %67, %69, %cst_43 {dimension_numbers = #tpu.dot_dimension_numbers<[1], [0], [0], [1], [0, 0, 1, 1], [], []>} : vector<8x32xf32>, vector<32x128xf32>, vector<8x128xf32> -> vector<8x128xf32>
    %71 = arith.addf %65, %70 : vector<8x128xf32>
    %72 = vector.extract_strided_slice %3 {offsets = [8, 0], sizes = [8, 128], strides = [1, 1]} : vector<16x128xf32> to vector<8x128xf32>
    %73 = vector.shape_cast %72 : vector<8x128xf32> to vector<1x8x128xf32>
    %74 = vector.broadcast %73 : vector<1x8x128xf32> to vector<4x8x128xf32>
    "tpu.trace_start"() <{level = 10 : i32, message = "hsd,hde->hse"}> : () -> ()
    %cst_44 = arith.constant dense<0.000000e+00> : vector<4x8x32xf32>
    %75 = tpu.matmul %74, %5, %cst_44 {dimension_numbers = #tpu.dot_dimension_numbers<[2], [1], [1], [2], [0, 0, 0, 1, 1, 2], [0], [0]>} : vector<4x8x128xf32>, vector<4x128x32xf32>, vector<4x8x32xf32> -> vector<4x8x32xf32>
    "tpu.trace_stop"() : () -> ()
    %76 = vector.broadcast %11 : vector<4x1x32xf32> to vector<4x8x32xf32>
    %77 = arith.addf %75, %76 : vector<4x8x32xf32>
    "tpu.trace_start"() <{level = 10 : i32, message = "hsd,hde->hse"}> : () -> ()
    %cst_45 = arith.constant dense<0.000000e+00> : vector<4x8x32xf32>
    %78 = tpu.matmul %74, %7, %cst_45 {dimension_numbers = #tpu.dot_dimension_numbers<[2], [1], [1], [2], [0, 0, 0, 1, 1, 2], [0], [0]>} : vector<4x8x128xf32>, vector<4x128x32xf32>, vector<4x8x32xf32> -> vector<4x8x32xf32>
    "tpu.trace_stop"() : () -> ()
    %79 = vector.broadcast %13 : vector<4x1x32xf32> to vector<4x8x32xf32>
    %80 = arith.addf %78, %79 : vector<4x8x32xf32>
    "tpu.trace_start"() <{level = 10 : i32, message = "hsd,hde->hse"}> : () -> ()
    %cst_46 = arith.constant dense<0.000000e+00> : vector<4x8x32xf32>
    %81 = tpu.matmul %74, %9, %cst_46 {dimension_numbers = #tpu.dot_dimension_numbers<[2], [1], [1], [2], [0, 0, 0, 1, 1, 2], [0], [0]>} : vector<4x8x128xf32>, vector<4x128x32xf32>, vector<4x8x32xf32> -> vector<4x8x32xf32>
    "tpu.trace_stop"() : () -> ()
    %82 = vector.broadcast %15 : vector<4x1x32xf32> to vector<4x8x32xf32>
    %83 = arith.addf %81, %82 : vector<4x8x32xf32>
    "tpu.trace_start"() <{level = 10 : i32, message = "hqe,hke->hqk"}> : () -> ()
    %cst_47 = arith.constant dense<0.000000e+00> : vector<4x8x8xf32>
    %84 = tpu.matmul %77, %80, %cst_47 {dimension_numbers = #tpu.dot_dimension_numbers<[2], [2], [1], [1], [0, 0, 0, 1, 1, 1], [0], [0]>} : vector<4x8x32xf32>, vector<4x8x32xf32>, vector<4x8x8xf32> -> vector<4x8x8xf32>
    "tpu.trace_stop"() : () -> ()
    %cst_48 = arith.constant 0.176776692 : f32
    %85 = vector.broadcast %cst_48 : f32 to vector<4x8x8xf32>
    %86 = arith.mulf %84, %85 : vector<4x8x8xf32>
    %c1 = arith.constant 1 : index
    %c0_49 = arith.constant 0 : index
    %c0_50 = arith.constant 0 : index
    %87 = vector.load %arg2[%c1, %c0_49, %c0_50] : memref<2x8x8xf32, #tpu.memory_space<vmem>>, vector<1x8x8xf32>
    %88 = vector.shape_cast %87 : vector<1x8x8xf32> to vector<8x8xf32>
    %89 = vector.shape_cast %88 : vector<8x8xf32> to vector<1x8x8xf32>
    %90 = vector.broadcast %89 : vector<1x8x8xf32> to vector<4x8x8xf32>
    %91 = arith.addf %86, %90 : vector<4x8x8xf32>
    %cst_51 = arith.constant dense<0xFF800000> : vector<4x8xf32>
    %92 = vector.multi_reduction <maximumf>, %91, %cst_51 [2] : vector<4x8x8xf32> to vector<4x8xf32>
    %93 = vector.shape_cast %92 : vector<4x8xf32> to vector<4x8x1xf32>
    %94 = vector.broadcast %93 : vector<4x8x1xf32> to vector<4x8x8xf32>
    %95 = arith.subf %91, %94 : vector<4x8x8xf32>
    %96 = math.exp %95 : vector<4x8x8xf32>
    %cst_52 = arith.constant dense<0.000000e+00> : vector<4x8xf32>
    %97 = vector.multi_reduction <add>, %96, %cst_52 [2] : vector<4x8x8xf32> to vector<4x8xf32>
    %98 = vector.shape_cast %97 : vector<4x8xf32> to vector<4x8x1xf32>
    %99 = tpu.reciprocal %98 {approx = true} : vector<4x8x1xf32> -> vector<4x8x1xf32>
    %100 = vector.broadcast %99 : vector<4x8x1xf32> to vector<4x8x8xf32>
    %101 = arith.mulf %96, %100 : vector<4x8x8xf32>
    "tpu.trace_start"() <{level = 10 : i32, message = "hqk,hke->hqe"}> : () -> ()
    %cst_53 = arith.constant dense<0.000000e+00> : vector<4x8x32xf32>
    %102 = tpu.matmul %101, %83, %cst_53 {dimension_numbers = #tpu.dot_dimension_numbers<[2], [1], [1], [2], [0, 0, 0, 1, 1, 2], [0], [0]>} : vector<4x8x8xf32>, vector<4x8x32xf32>, vector<4x8x32xf32> -> vector<4x8x32xf32>
    "tpu.trace_stop"() : () -> ()
    %103 = vector.extract_strided_slice %102 {offsets = [0, 0, 0], sizes = [1, 8, 32], strides = [1, 1, 1]} : vector<4x8x32xf32> to vector<1x8x32xf32>
    %104 = vector.shape_cast %103 : vector<1x8x32xf32> to vector<8x32xf32>
    %105 = vector.extract_strided_slice %17 {offsets = [0, 0, 0], sizes = [1, 32, 128], strides = [1, 1, 1]} : vector<4x32x128xf32> to vector<1x32x128xf32>
    %106 = vector.shape_cast %105 : vector<1x32x128xf32> to vector<32x128xf32>
    %cst_54 = arith.constant dense<0.000000e+00> : vector<8x128xf32>
    %107 = tpu.matmul %104, %106, %cst_54 {dimension_numbers = #tpu.dot_dimension_numbers<[1], [0], [0], [1], [0, 0, 1, 1], [], []>} : vector<8x32xf32>, vector<32x128xf32>, vector<8x128xf32> -> vector<8x128xf32>
    %108 = vector.extract_strided_slice %102 {offsets = [1, 0, 0], sizes = [1, 8, 32], strides = [1, 1, 1]} : vector<4x8x32xf32> to vector<1x8x32xf32>
    %109 = vector.shape_cast %108 : vector<1x8x32xf32> to vector<8x32xf32>
    %110 = vector.extract_strided_slice %17 {offsets = [1, 0, 0], sizes = [1, 32, 128], strides = [1, 1, 1]} : vector<4x32x128xf32> to vector<1x32x128xf32>
    %111 = vector.shape_cast %110 : vector<1x32x128xf32> to vector<32x128xf32>
    %cst_55 = arith.constant dense<0.000000e+00> : vector<8x128xf32>
    %112 = tpu.matmul %109, %111, %cst_55 {dimension_numbers = #tpu.dot_dimension_numbers<[1], [0], [0], [1], [0, 0, 1, 1], [], []>} : vector<8x32xf32>, vector<32x128xf32>, vector<8x128xf32> -> vector<8x128xf32>
    %113 = arith.addf %107, %112 : vector<8x128xf32>
    %114 = vector.extract_strided_slice %102 {offsets = [2, 0, 0], sizes = [1, 8, 32], strides = [1, 1, 1]} : vector<4x8x32xf32> to vector<1x8x32xf32>
    %115 = vector.shape_cast %114 : vector<1x8x32xf32> to vector<8x32xf32>
    %116 = vector.extract_strided_slice %17 {offsets = [2, 0, 0], sizes = [1, 32, 128], strides = [1, 1, 1]} : vector<4x32x128xf32> to vector<1x32x128xf32>
    %117 = vector.shape_cast %116 : vector<1x32x128xf32> to vector<32x128xf32>
    %cst_56 = arith.constant dense<0.000000e+00> : vector<8x128xf32>
    %118 = tpu.matmul %115, %117, %cst_56 {dimension_numbers = #tpu.dot_dimension_numbers<[1], [0], [0], [1], [0, 0, 1, 1], [], []>} : vector<8x32xf32>, vector<32x128xf32>, vector<8x128xf32> -> vector<8x128xf32>
    %119 = arith.addf %113, %118 : vector<8x128xf32>
    %120 = vector.extract_strided_slice %102 {offsets = [3, 0, 0], sizes = [1, 8, 32], strides = [1, 1, 1]} : vector<4x8x32xf32> to vector<1x8x32xf32>
    %121 = vector.shape_cast %120 : vector<1x8x32xf32> to vector<8x32xf32>
    %122 = vector.extract_strided_slice %17 {offsets = [3, 0, 0], sizes = [1, 32, 128], strides = [1, 1, 1]} : vector<4x32x128xf32> to vector<1x32x128xf32>
    %123 = vector.shape_cast %122 : vector<1x32x128xf32> to vector<32x128xf32>
    %cst_57 = arith.constant dense<0.000000e+00> : vector<8x128xf32>
    %124 = tpu.matmul %121, %123, %cst_57 {dimension_numbers = #tpu.dot_dimension_numbers<[1], [0], [0], [1], [0, 0, 1, 1], [], []>} : vector<8x32xf32>, vector<32x128xf32>, vector<8x128xf32> -> vector<8x128xf32>
    %125 = arith.addf %119, %124 : vector<8x128xf32>
    %126 = tpu.concatenate %71, %125 in 0 : vector<8x128xf32>, vector<8x128xf32> -> vector<16x128xf32>
    %c0_58 = arith.constant 0 : index
    %c0_59 = arith.constant 0 : index
    %c0_60 = arith.constant 0 : index
    %127 = vector.load %arg10[%c0_58, %c0_59, %c0_60] : memref<1x1x128xf32, #tpu.memory_space<vmem>>, vector<1x1x128xf32>
    %128 = vector.shape_cast %127 : vector<1x1x128xf32> to vector<1x128xf32>
    %129 = vector.broadcast %128 : vector<1x128xf32> to vector<16x128xf32>
    %130 = arith.addf %126, %129 : vector<16x128xf32>
    %131 = arith.addf %3, %130 : vector<16x128xf32>
    %c0_61 = arith.constant 0 : index
    %c0_62 = arith.constant 0 : index
    %c0_63 = arith.constant 0 : index
    %132 = vector.load %arg15[%c0_61, %c0_62, %c0_63] : memref<1x1x128xf32, #tpu.memory_space<vmem>>, vector<1x1x128xf32>
    %133 = vector.shape_cast %132 : vector<1x1x128xf32> to vector<1x128xf32>
    %c0_64 = arith.constant 0 : index
    %c0_65 = arith.constant 0 : index
    %c0_66 = arith.constant 0 : index
    %134 = vector.load %arg16[%c0_64, %c0_65, %c0_66] : memref<1x1x128xf32, #tpu.memory_space<vmem>>, vector<1x1x128xf32>
    %135 = vector.shape_cast %134 : vector<1x1x128xf32> to vector<1x128xf32>
    %cst_67 = arith.constant dense<0.000000e+00> : vector<16xf32>
    %136 = vector.multi_reduction <add>, %131, %cst_67 [1] : vector<16x128xf32> to vector<16xf32>
    %137 = vector.shape_cast %136 : vector<16xf32> to vector<16x1xf32>
    %cst_68 = arith.constant 1.280000e+02 : f32
    %138 = vector.broadcast %cst_68 : f32 to vector<16x1xf32>
    %139 = arith.divf %137, %138 : vector<16x1xf32>
    %140 = vector.broadcast %139 : vector<16x1xf32> to vector<16x128xf32>
    %141 = arith.subf %131, %140 : vector<16x128xf32>
    %142 = arith.mulf %141, %141 : vector<16x128xf32>
    %cst_69 = arith.constant dense<0.000000e+00> : vector<16xf32>
    %143 = vector.multi_reduction <add>, %142, %cst_69 [1] : vector<16x128xf32> to vector<16xf32>
    %144 = vector.shape_cast %143 : vector<16xf32> to vector<16x1xf32>
    %cst_70 = arith.constant 1.280000e+02 : f32
    %145 = vector.broadcast %cst_70 : f32 to vector<16x1xf32>
    %146 = arith.divf %144, %145 : vector<16x1xf32>
    %cst_71 = arith.constant 9.99999974E-6 : f32
    %147 = vector.broadcast %cst_71 : f32 to vector<16x1xf32>
    %148 = arith.addf %146, %147 : vector<16x1xf32>
    %149 = math.rsqrt %148 : vector<16x1xf32>
    %150 = vector.broadcast %149 : vector<16x1xf32> to vector<16x128xf32>
    %151 = arith.mulf %141, %150 : vector<16x128xf32>
    %152 = vector.broadcast %133 : vector<1x128xf32> to vector<16x128xf32>
    %153 = arith.mulf %151, %152 : vector<16x128xf32>
    %154 = vector.broadcast %135 : vector<1x128xf32> to vector<16x128xf32>
    %155 = arith.addf %153, %154 : vector<16x128xf32>
    %c0_72 = arith.constant 0 : index
    %c0_73 = arith.constant 0 : index
    %c0_74 = arith.constant 0 : index
    %156 = vector.load %arg11[%c0_72, %c0_73, %c0_74] : memref<1x128x256xf32, #tpu.memory_space<vmem>>, vector<1x128x256xf32>
    %157 = vector.shape_cast %156 : vector<1x128x256xf32> to vector<128x256xf32>
    %cst_75 = arith.constant dense<0.000000e+00> : vector<16x256xf32>
    %158 = tpu.matmul %155, %157, %cst_75 {dimension_numbers = #tpu.dot_dimension_numbers<[1], [0], [0], [1], [0, 0, 1, 1], [], []>} : vector<16x128xf32>, vector<128x256xf32>, vector<16x256xf32> -> vector<16x256xf32>
    %c0_76 = arith.constant 0 : index
    %c0_77 = arith.constant 0 : index
    %c0_78 = arith.constant 0 : index
    %159 = vector.load %arg12[%c0_76, %c0_77, %c0_78] : memref<1x1x256xf32, #tpu.memory_space<vmem>>, vector<1x1x256xf32>
    %160 = vector.shape_cast %159 : vector<1x1x256xf32> to vector<1x256xf32>
    %161 = vector.broadcast %160 : vector<1x256xf32> to vector<16x256xf32>
    %162 = arith.addf %158, %161 : vector<16x256xf32>
    %cst_79 = arith.constant 0.000000e+00 : f32
    %163 = vector.broadcast %cst_79 : f32 to vector<16x256xf32>
    %164 = arith.maximumf %162, %163 : vector<16x256xf32>
    %c0_80 = arith.constant 0 : index
    %c0_81 = arith.constant 0 : index
    %c0_82 = arith.constant 0 : index
    %165 = vector.load %arg13[%c0_80, %c0_81, %c0_82] : memref<1x256x128xf32, #tpu.memory_space<vmem>>, vector<1x256x128xf32>
    %166 = vector.shape_cast %165 : vector<1x256x128xf32> to vector<256x128xf32>
    %cst_83 = arith.constant dense<0.000000e+00> : vector<16x128xf32>
    %167 = tpu.matmul %164, %166, %cst_83 {dimension_numbers = #tpu.dot_dimension_numbers<[1], [0], [0], [1], [0, 0, 1, 1], [], []>} : vector<16x256xf32>, vector<256x128xf32>, vector<16x128xf32> -> vector<16x128xf32>
    %c0_84 = arith.constant 0 : index
    %c0_85 = arith.constant 0 : index
    %c0_86 = arith.constant 0 : index
    %168 = vector.load %arg14[%c0_84, %c0_85, %c0_86] : memref<1x1x128xf32, #tpu.memory_space<vmem>>, vector<1x1x128xf32>
    %169 = vector.shape_cast %168 : vector<1x1x128xf32> to vector<1x128xf32>
    %170 = vector.broadcast %169 : vector<1x128xf32> to vector<16x128xf32>
    %171 = arith.addf %167, %170 : vector<16x128xf32>
    %172 = arith.addf %155, %171 : vector<16x128xf32>
    %c0_87 = arith.constant 0 : index
    %c0_88 = arith.constant 0 : index
    %c0_89 = arith.constant 0 : index
    %173 = vector.load %arg17[%c0_87, %c0_88, %c0_89] : memref<1x1x128xf32, #tpu.memory_space<vmem>>, vector<1x1x128xf32>
    %174 = vector.shape_cast %173 : vector<1x1x128xf32> to vector<1x128xf32>
    %c0_90 = arith.constant 0 : index
    %c0_91 = arith.constant 0 : index
    %c0_92 = arith.constant 0 : index
    %175 = vector.load %arg18[%c0_90, %c0_91, %c0_92] : memref<1x1x128xf32, #tpu.memory_space<vmem>>, vector<1x1x128xf32>
    %176 = vector.shape_cast %175 : vector<1x1x128xf32> to vector<1x128xf32>
    %cst_93 = arith.constant dense<0.000000e+00> : vector<16xf32>
    %177 = vector.multi_reduction <add>, %172, %cst_93 [1] : vector<16x128xf32> to vector<16xf32>
    %178 = vector.shape_cast %177 : vector<16xf32> to vector<16x1xf32>
    %cst_94 = arith.constant 1.280000e+02 : f32
    %179 = vector.broadcast %cst_94 : f32 to vector<16x1xf32>
    %180 = arith.divf %178, %179 : vector<16x1xf32>
    %181 = vector.broadcast %180 : vector<16x1xf32> to vector<16x128xf32>
    %182 = arith.subf %172, %181 : vector<16x128xf32>
    %183 = arith.mulf %182, %182 : vector<16x128xf32>
    %cst_95 = arith.constant dense<0.000000e+00> : vector<16xf32>
    %184 = vector.multi_reduction <add>, %183, %cst_95 [1] : vector<16x128xf32> to vector<16xf32>
    %185 = vector.shape_cast %184 : vector<16xf32> to vector<16x1xf32>
    %cst_96 = arith.constant 1.280000e+02 : f32
    %186 = vector.broadcast %cst_96 : f32 to vector<16x1xf32>
    %187 = arith.divf %185, %186 : vector<16x1xf32>
    %cst_97 = arith.constant 9.99999974E-6 : f32
    %188 = vector.broadcast %cst_97 : f32 to vector<16x1xf32>
    %189 = arith.addf %187, %188 : vector<16x1xf32>
    %190 = math.rsqrt %189 : vector<16x1xf32>
    %191 = vector.broadcast %190 : vector<16x1xf32> to vector<16x128xf32>
    %192 = arith.mulf %182, %191 : vector<16x128xf32>
    %193 = vector.broadcast %174 : vector<1x128xf32> to vector<16x128xf32>
    %194 = arith.mulf %192, %193 : vector<16x128xf32>
    %195 = vector.broadcast %176 : vector<1x128xf32> to vector<16x128xf32>
    %196 = arith.addf %194, %195 : vector<16x128xf32>
    %c0_98 = arith.constant 0 : index
    %c0_99 = arith.constant 0 : index
    %197 = vector.load %arg20[%c0_98, %c0_99] : memref<16x128xf32, #tpu.memory_space<vmem>>, vector<16x128xf32>
    tpu.vector_store %arg20[%c0_98, %c0_99], %196 {strides = array<i32>} : memref<16x128xf32, #tpu.memory_space<vmem>>, vector<16x128xf32>,
    %c1_i32 = arith.constant 1 : i32
    %198 = arith.cmpi eq, %arg0, %c1_i32 : i32
    %199 = arith.extui %198 : i1 to i32
    %c0_i32_100 = arith.constant 0 : i32
    %200 = arith.cmpi ne, %199, %c0_i32_100 : i32
    scf.if %200 {
      %c0_101 = arith.constant 0 : index
      %c0_102 = arith.constant 0 : index
      %201 = vector.load %arg19[%c0_101, %c0_102] : memref<16x128xf32, #tpu.memory_space<vmem>>, vector<16x128xf32>
      tpu.vector_store %arg19[%c0_101, %c0_102], %196 {strides = array<i32>} : memref<16x128xf32, #tpu.memory_space<vmem>>, vector<16x128xf32>,
    } else {
    }
    return
  }
  func.func @transform_0(%arg0: i32) -> (i32, i32) {
    %c0_i32 = arith.constant 0 : i32
    %c0_i32_0 = arith.constant 0 : i32
    %c0_i32_1 = arith.constant 0 : i32
    return %c0_i32, %c0_i32_0 : i32, i32
  }
  func.func @transform_1(%arg0: i32) -> (i32, i32, i32) {
    %c0_i32 = arith.constant 0 : i32
    %c0_i32_0 = arith.constant 0 : i32
    %c0_i32_1 = arith.constant 0 : i32
    %c0_i32_2 = arith.constant 0 : i32
    return %c0_i32, %c0_i32_0, %c0_i32_1 : i32, i32, i32
  }
  func.func @transform_2(%arg0: i32) -> (i32, i32, i32, i32) {
    %c0_i32 = arith.constant 0 : i32
    %c0_i32_0 = arith.constant 0 : i32
    %c0_i32_1 = arith.constant 0 : i32
    %c0_i32_2 = arith.constant 0 : i32
    return %arg0, %c0_i32, %c0_i32_0, %c0_i32_1 : i32, i32, i32, i32
  }
  func.func @transform_3(%arg0: i32) -> (i32, i32, i32, i32) {
    %c0_i32 = arith.constant 0 : i32
    %c0_i32_0 = arith.constant 0 : i32
    %c0_i32_1 = arith.constant 0 : i32
    %c0_i32_2 = arith.constant 0 : i32
    return %arg0, %c0_i32, %c0_i32_0, %c0_i32_1 : i32, i32, i32, i32
  }
  func.func @transform_4(%arg0: i32) -> (i32, i32, i32, i32) {
    %c0_i32 = arith.constant 0 : i32
    %c0_i32_0 = arith.constant 0 : i32
    %c0_i32_1 = arith.constant 0 : i32
    %c0_i32_2 = arith.constant 0 : i32
    return %arg0, %c0_i32, %c0_i32_0, %c0_i32_1 : i32, i32, i32, i32
  }
  func.func @transform_5(%arg0: i32) -> (i32, i32, i32, i32) {
    %c0_i32 = arith.constant 0 : i32
    %c0_i32_0 = arith.constant 0 : i32
    %c0_i32_1 = arith.constant 0 : i32
    %c0_i32_2 = arith.constant 0 : i32
    return %arg0, %c0_i32, %c0_i32_0, %c0_i32_1 : i32, i32, i32, i32
  }
  func.func @transform_6(%arg0: i32) -> (i32, i32, i32, i32) {
    %c0_i32 = arith.constant 0 : i32
    %c0_i32_0 = arith.constant 0 : i32
    %c0_i32_1 = arith.constant 0 : i32
    %c0_i32_2 = arith.constant 0 : i32
    return %arg0, %c0_i32, %c0_i32_0, %c0_i32_1 : i32, i32, i32, i32
  }
  func.func @transform_7(%arg0: i32) -> (i32, i32, i32, i32) {
    %c0_i32 = arith.constant 0 : i32
    %c0_i32_0 = arith.constant 0 : i32
    %c0_i32_1 = arith.constant 0 : i32
    %c0_i32_2 = arith.constant 0 : i32
    return %arg0, %c0_i32, %c0_i32_0, %c0_i32_1 : i32, i32, i32, i32
  }
  func.func @transform_8(%arg0: i32) -> (i32, i32, i32, i32) {
    %c0_i32 = arith.constant 0 : i32
    %c0_i32_0 = arith.constant 0 : i32
    %c0_i32_1 = arith.constant 0 : i32
    %c0_i32_2 = arith.constant 0 : i32
    return %arg0, %c0_i32, %c0_i32_0, %c0_i32_1 : i32, i32, i32, i32
  }
  func.func @transform_9(%arg0: i32) -> (i32, i32, i32) {
    %c0_i32 = arith.constant 0 : i32
    %c0_i32_0 = arith.constant 0 : i32
    %c0_i32_1 = arith.constant 0 : i32
    return %arg0, %c0_i32, %c0_i32_0 : i32, i32, i32
  }
  func.func @transform_10(%arg0: i32) -> (i32, i32, i32) {
    %c0_i32 = arith.constant 0 : i32
    %c0_i32_0 = arith.constant 0 : i32
    %c0_i32_1 = arith.constant 0 : i32
    return %arg0, %c0_i32, %c0_i32_0 : i32, i32, i32
  }
  func.func @transform_11(%arg0: i32) -> (i32, i32, i32) {
    %c0_i32 = arith.constant 0 : i32
    %c0_i32_0 = arith.constant 0 : i32
    %c0_i32_1 = arith.constant 0 : i32
    return %arg0, %c0_i32, %c0_i32_0 : i32, i32, i32
  }
  func.func @transform_12(%arg0: i32) -> (i32, i32, i32) {
    %c0_i32 = arith.constant 0 : i32
    %c0_i32_0 = arith.constant 0 : i32
    %c0_i32_1 = arith.constant 0 : i32
    return %arg0, %c0_i32, %c0_i32_0 : i32, i32, i32
  }
  func.func @transform_13(%arg0: i32) -> (i32, i32, i32) {
    %c0_i32 = arith.constant 0 : i32
    %c0_i32_0 = arith.constant 0 : i32
    %c0_i32_1 = arith.constant 0 : i32
    return %arg0, %c0_i32, %c0_i32_0 : i32, i32, i32
  }
  func.func @transform_14(%arg0: i32) -> (i32, i32, i32) {
    %c0_i32 = arith.constant 0 : i32
    %c0_i32_0 = arith.constant 0 : i32
    %c0_i32_1 = arith.constant 0 : i32
    return %arg0, %c0_i32, %c0_i32_0 : i32, i32, i32
  }
  func.func @transform_15(%arg0: i32) -> (i32, i32, i32) {
    %c0_i32 = arith.constant 0 : i32
    %c0_i32_0 = arith.constant 0 : i32
    %c0_i32_1 = arith.constant 0 : i32
    return %arg0, %c0_i32, %c0_i32_0 : i32, i32, i32
  }
  func.func @transform_16(%arg0: i32) -> (i32, i32, i32) {
    %c0_i32 = arith.constant 0 : i32
    %c0_i32_0 = arith.constant 0 : i32
    %c0_i32_1 = arith.constant 0 : i32
    return %arg0, %c0_i32, %c0_i32_0 : i32, i32, i32
  }
  func.func @transform_17(%arg0: i32) -> (i32, i32, i32) {
    %c0_i32 = arith.constant 0 : i32
    %c0_i32_0 = arith.constant 0 : i32
    %c0_i32_1 = arith.constant 0 : i32
    return %arg0, %c0_i32, %c0_i32_0 : i32, i32, i32
  }
  func.func @transform_18(%arg0: i32) -> (i32, i32) {
    %c0_i32 = arith.constant 0 : i32
    %c0_i32_0 = arith.constant 0 : i32
    %c0_i32_1 = arith.constant 0 : i32
    return %c0_i32, %c0_i32_0 : i32, i32
  }
}

</mosaic_0001>

<bundles_post_ra>
// kernel: squeeze.6
= control target key start
LH: loop header
LB: loop body
LE: loop exit
PB: predicated region body
PF: predicated region fallthrough
CT: control target
= control target key end

     0   :  { %s37_s8 = smov 32   ;;  %vm7_vm0 = vcmask 261120   ;;  %s38_s9 = smov 64   ;;  %s55_s0 = inlined_call_operand.vmem [shape: f32[128], index: 0, kind: input, shape index: {}]   ;;  %s56_s1 = inlined_call_operand.vmem [shape: f32[1,4,1,32], index: 1, kind: output, shape index: {}]  }
   0x1   :  { %v4_v0 = vld [vmem:[%s55_s0] sm:$0x1]  ;;  %s36_s0 = smov 96  }
   0x2   :  { %5 = vst [vmem:[#allocation1] sm:$0x1] %v4_v0 }
   0x9   :  { %v9_v1 = vld [vmem:[#allocation1] sm:$0x1]  }
   0xa   :  { %v21_v2 = vld [vmem:[#allocation1] sm:$0x1]   ;;  %10 = vrot.lane.b32.xlu0 %v9_v1, %s36_s0 }
   0xb   :  { %22 = vrot.lane.b32.xlu1 %v21_v2, %s37_s8  ;;  %v6_v3 = vld [vmem:[#allocation1] sm:$0x1]  }
   0xc   :  { %v15_v4 = vld [vmem:[#allocation1] sm:$0x1]   ;;  %8 = vst.msk [vmem:[#allocation0] sm:$0x1] %vm7_vm0, %v6_v3  }
   0xe   :  { %16 = vrot.lane.b32.xlu0 %v15_v4, %s38_s9 }
  0x7c   :  { %v11_v5 = vpop.permute.xlu0 %10  }
  0x7d   :  { %v23_v6 = vpop.permute.xlu1 %22   ;;  %14 = vst.msk [vmem:[#allocation0 + $0x1] sm:$0x1] %vm7_vm0, %v11_v5  }
  0x7e   :  { %26 = vst.msk [vmem:[#allocation0 + $0x3] sm:$0x1] %vm7_vm0, %v23_v6  }
  0x80   :  { %v17_v7 = vpop.permute.xlu0 %16  }
  0x81   :  { %20 = vst.msk [vmem:[#allocation0 + $0x2] sm:$0x1] %vm7_vm0, %v17_v7  }
  0x88   :  { %v30_v8 = vld [vmem:[#allocation0] sm:$0xf] }
  0x89   :  { %32 = vst [vmem:[%s56_s1] sm:$0xf] %v30_v8 }

// kernel: generator_transformer_forward.5
= control target key start
LH: loop header
LB: loop body
LE: loop exit
PB: predicated region body
PF: predicated region fallthrough
CT: control target
= control target key end

     0   :  { %s407_s0 = inlined_call_operand.vmem [shape: f32[16,128], index: 0, kind: input, shape index: {}]   ;;  %s408_s1 = inlined_call_operand.vmem [shape: f32[1,128], index: 1, kind: input, shape index: {}]   ;;  %s409_s2 = inlined_call_operand.vmem [shape: f32[1,128], index: 2, kind: input, shape index: {}]   ;;  %s410_s3 = inlined_call_operand.vmem [shape: f32[128,128], index: 3, kind: input, shape index: {}]   ;;  %s411_s4 = inlined_call_operand.vmem [shape: f32[1,128], index: 4, kind: input, shape index: {}]   ;;  %s412_s5 = inlined_call_operand.hbm [shape: f32[16,128], index: 5, kind: output, shape index: {}]  }
   0x1   :  { %v21_v0 = vld [vmem:[%s407_s0] sm:$0xff] }
   0x2   :  { %10 = vsyncpa [#allocation3], 0  ;;  %25 = vadd.xlane.f32.xlu0 %v21_v0  ;;  %v22_v1 = vld [vmem:[%s407_s0 + $0x8] sm:$0xff]  ;;  %v64_v2 = vld [vmem:[%s410_s3] sm:$0xff]  ;;  %s299_s7 = smov [#allocation2]  }
   0x3   :  { %v65_v3 = vld [vmem:[%s410_s3 + $0x8] sm:$0xff]  ;;  %v66_v4 = vld [vmem:[%s410_s3 + $0x10] sm:$0xff]  ;;  %v67_v6 = vld [vmem:[%s410_s3 + $0x18] sm:$0xff]  ;;  %s169_s8 = sshll.u32 %s299_s7, 4  ;;  %s170_s8 = int_to_ptr.vmem [resolvable:$true] %s169_s8 }
   0x4   :  { %v236_v5 = vpack.c.bf16 %v65_v3, %v64_v2  ;;  %v240_v7 = vpack.c.bf16 %v67_v6, %v66_v4  ;;  %v68_v16 = vld [vmem:[%s410_s3 + $0x20] sm:$0xff]  ;;  %v69_v17 = vld [vmem:[%s410_s3 + $0x28] sm:$0xff]  ;;  %v70_v19 = vld [vmem:[%s410_s3 + $0x30] sm:$0xff]  ;;  %p280_p1 = scmp.lt.s32.totalorder %s170_s8, %s170_s8 }
   0x5   :  { %v244_v18 = vpack.c.bf16 %v69_v17, %v68_v16  ;;  %v71_v20 = vld [vmem:[%s410_s3 + $0x38] sm:$0xff]  ;;  %v72_v22 = vld [vmem:[%s410_s3 + $0x40] sm:$0xff]  ;;  %v73_v23 = vld [vmem:[%s410_s3 + $0x48] sm:$0xff] }
   0x6   :  { %27 = vadd.xlane.f32.xlu0 %v22_v1  ;;  %237 = vmatprep.subr.bf16.mxu0 %v236_v5  ;;  %v248_v21 = vpack.c.bf16 %v71_v20, %v70_v19  ;;  %v252_v24 = vpack.c.bf16 %v73_v23, %v72_v22  ;;  %v74_v25 = vld [vmem:[%s410_s3 + $0x50] sm:$0xff]  ;;  %v75_v26 = vld [vmem:[%s410_s3 + $0x58] sm:$0xff]  ;;  %v76_v27 = vld [vmem:[%s410_s3 + $0x60] sm:$0xff] }
   0x7   :  { %239 = vmatpush3.bf16.msra.mxu0 %v236_v5  ;;  %v256_v28 = vpack.c.bf16 %v75_v26, %v74_v25  ;;  %v77_v29 = vld [vmem:[%s410_s3 + $0x68] sm:$0xff]  ;;  %v78_v31 = vld [vmem:[%s410_s3 + $0x70] sm:$0xff]  ;;  %v79_v32 = vld [vmem:[%s410_s3 + $0x78] sm:$0xff] }
   0x8   :  { %241 = vmatprep.subr.bf16.mxu0 %v240_v7  ;;  %v260_v30 = vpack.c.bf16 %v77_v29, %v76_v27  ;;  %v264_v33 = vpack.c.bf16 %v79_v32, %v78_v31  ;;  %v180_v41 = vld [vmem:[%s408_s1] ss:$0 sm:$0xff]  ;;  %s275_s1 = scalar_lea.vmem %s170_s8, 256 }
   0x9   :  { %v181_v43 = vld [vmem:[%s409_s2] ss:$0 sm:$0xff]  ;;  %p276_p0 = scmp.ne.s32.totalorder %s170_s8, %s275_s1  ;;  %p281_p2 = scmp.lt.s32.totalorder %s275_s1, %s275_s1 }
   0xa   :  { %v182_v50 = vld [vmem:[%s411_s4] ss:$0 sm:$0xff] }
   0xb   :  { %243 = vmatpush3.bf16.msra.mxu0 %v240_v7  ;;  %p282_p3 = por %p281_p2, %p280_p1 }
   0xc   :  { %245 = vmatprep.subr.bf16.mxu0 %v244_v18 }
   0xd   :  { %p283_p4 = pnand %p282_p3, %p276_p0 }
   0xf   :  { %247 = vmatpush3.bf16.msra.mxu0 %v244_v18 }
  0x10   :  { %249 = vmatprep.subr.bf16.mxu0 %v248_v21 }
  0x13   :  { %251 = vmatpush3.bf16.msra.mxu0 %v248_v21 }
  0x14   :  { %253 = vmatprep.subr.bf16.mxu0 %v252_v24 }
  0x17   :  { %255 = vmatpush3.bf16.msra.mxu0 %v252_v24 }
  0x18   :  { %257 = vmatprep.subr.bf16.mxu0 %v256_v28 }
  0x1b   :  { %259 = vmatpush3.bf16.msra.mxu0 %v256_v28 }
  0x1c   :  { %261 = vmatprep.subr.bf16.mxu0 %v260_v30 }
  0x1f   :  { %263 = vmatpush3.bf16.msra.mxu0 %v260_v30 }
  0x20   :  { %265 = vmatprep.subr.bf16.mxu0 %v264_v33 }
  0x23   :  { %267 = vmatpush3.bf16.msra.mxu0 %v264_v33 }
  0x8f   :  { %v26_v8 = vpop.xlane.xlu0 %25 }
  0x90   :  { %v30_v9 = vmul.f32 0.0078125, %v26_v8 }
  0x92   :  { %v32_v10 = vsub.f32 %v21_v0, %v30_v9 }
  0x93   :  { %v28_v11 = vpop.xlane.xlu0 %27 }
  0x94   :  { %v31_v12 = vmul.f32 0.0078125, %v28_v11  ;;  %v34_v13 = vmul.f32 %v32_v10, %v32_v10 }
  0x96   :  { %v33_v14 = vsub.f32 %v22_v1, %v31_v12  ;;  %36 = vadd.xlane.f32.xlu1 %v34_v13 }
  0x98   :  { %v35_v15 = vmul.f32 %v33_v14, %v33_v14 }
  0x9a   :  { %38 = vadd.xlane.f32.xlu1 %v35_v15 }
 0x123   :  { %v37_v34 = vpop.xlane.xlu1 %36 }
 0x124   :  { %v40_v35 = vmul.f32 0.0078125, %v37_v34 }
 0x126   :  { %v42_v36 = vadd.f32 1e-05, %v40_v35 }
 0x127   :  { %v39_v37 = vpop.xlane.xlu1 %38 }
 0x128   :  { %271 = vrsqrt.f32 %v42_v36  ;;  %v41_v38 = vmul.f32 0.0078125, %v39_v37 }
 0x12a   :  { %v43_v39 = vadd.f32 1e-05, %v41_v38 }
 0x12c   :  { %273 = vrsqrt.f32 %v43_v39 }
 0x132   :  { %v272_v40 = vpop.eup %271 }
 0x133   :  { %v46_v42 = vmul.f32 %v272_v40, %v32_v10 }
 0x135   :  { %v54_v44 = vmul.f32 %v180_v41, %v46_v42 }
 0x136   :  { %v274_v45 = vpop.eup %273 }
 0x137   :  { %v47_v46 = vmul.f32 %v274_v45, %v33_v14  ;;  %v62_v47 = vadd.f32 %v181_v43, %v54_v44 }
 0x139   :  { %v55_v48 = vmul.f32 %v180_v41, %v47_v46  ;;  %233 = vmatprep.mubr.f32.mxu0 %v62_v47 }
 0x13b   :  { %v63_v49 = vadd.f32 %v181_v43, %v55_v48 }
 0x13d   :  { %234 = vmatmul.mubr.f32.vlgmr.msra.gmra.mrb[0].mxu0 %v63_v49 }
 0x210   :  { %v235_v51 = vpop.f32.mrb[0].mxu0 }
 0x211   :  { %v159_v52 = vadd.f32 %v235_v51, %v182_v50  ;;  %v153_v53 = vpop.f32.mrb[1].mxu0 }
 0x212   :  { %v154_v54 = vadd.f32 %v182_v50, %v153_v53 }
 0x213   :  { %163 = vst [vmem:[#allocation2 + $0x8] sm:$0xff] %v159_v52 }
 0x214   :  { %162 = vst [vmem:[#allocation2] sm:$0xff] %v154_v54 }
 0x215   :  { %286 = shalt.err (!%p283_p4)
}
 0x216   :  { %s287_s4 = scalar_lea.hbm %s412_s5, 256 }
 0x217   :  { %p288_p5 = scmp.ne.s32.totalorder %s412_s5, %s287_s4  ;;  %p291_p6 = scmp.lt.u32.totalorder %s287_s4, %s412_s5 }
 0x219   :  { %p293_p7 = pnand %p291_p6, %p288_p5 }
 0x21b   :  { %296 = shalt.err (!%p293_p7)
}
 0x21c   :  { %s300_s14 = smov 128   ;;  %s301_s15 = smov 8  }
 0x21d   :  { %175 = dma.vmem_to_hbm [thread:$0]  %s170_s8, 256, %s412_s5, [#allocation3], %s300_s14, %s300_s14, %s301_s15  }
 0x21e   :  { %297 = dma.done.wait [#allocation3], 256  }
 0x21f   :  { %298 = vsyncadd [#allocation3], 4294967040 }
 0x220   :  { %179 = vsyncpa [#allocation3], 1 }

// kernel: generator_transformer_forward.3
= control target key start
LH: loop header
LB: loop body
LE: loop exit
PB: predicated region body
PF: predicated region fallthrough
CT: control target
= control target key end

     0   :  { %v225_v0 = vmov 0   ;;  %v16_v27 = vlaneseq  ;;  %v226_v30 = vmov 1.0   ;;  %s313_s0 = inlined_call_operand.vmem [shape: s32[16,1], index: 0, kind: input, shape index: {}]   ;;  %s314_s1 = inlined_call_operand.vmem [shape: f32[128,128], index: 1, kind: input, shape index: {}]   ;;  %s315_s2 = inlined_call_operand.vmem [shape: f32[16,128], index: 2, kind: input, shape index: {}]   ;;  %s316_s3 = inlined_call_operand.vmem [shape: f32[16,128], index: 3, kind: output, shape index: {}]  }
   0x1   :  { %224 = vset.pattern.permute.xlu0 %v225_v0  ;;  %v14_v1 = vld [vmem:[%s313_s0] sm:$0xff]  ;;  %v31_v3 = vld [vmem:[%s314_s1 + $0x8] sm:$0xff]  ;;  %v32_v4 = vld [vmem:[%s314_s1 + $0x10] sm:$0xff] }
   0x2   :  { %v30_v2 = vld [vmem:[%s314_s1] sm:$0xff]  ;;  %19 = vperm.xlu0 %224, %v14_v1   ;;  %v33_v5 = vld [vmem:[%s314_s1 + $0x18] sm:$0xff]  ;;  %v15_v6 = vld [vmem:[%s313_s0 + $0x8] sm:$0xff]  ;;  %v17_v28 = vand.u32 127, %v16_v27 }
   0x3   :  { %v190_v7 = vpack.c.bf16 %v31_v3, %v30_v2  ;;  %v194_v8 = vpack.c.bf16 %v33_v5, %v32_v4  ;;  %v34_v9 = vld [vmem:[%s314_s1 + $0x20] sm:$0xff]  ;;  %v35_v10 = vld [vmem:[%s314_s1 + $0x28] sm:$0xff]  ;;  %v36_v12 = vld [vmem:[%s314_s1 + $0x30] sm:$0xff] }
   0x4   :  { %v198_v11 = vpack.c.bf16 %v35_v10, %v34_v9  ;;  %v37_v13 = vld [vmem:[%s314_s1 + $0x38] sm:$0xff]  ;;  %v38_v15 = vld [vmem:[%s314_s1 + $0x40] sm:$0xff]  ;;  %v39_v16 = vld [vmem:[%s314_s1 + $0x48] sm:$0xff] }
   0x5   :  { %191 = vmatprep.subr.bf16.mxu0 %v190_v7  ;;  %v202_v14 = vpack.c.bf16 %v37_v13, %v36_v12  ;;  %v206_v17 = vpack.c.bf16 %v39_v16, %v38_v15  ;;  %v40_v18 = vld [vmem:[%s314_s1 + $0x50] sm:$0xff]  ;;  %v41_v19 = vld [vmem:[%s314_s1 + $0x58] sm:$0xff]  ;;  %v42_v21 = vld [vmem:[%s314_s1 + $0x60] sm:$0xff] }
   0x6   :  { %22 = vperm.xlu0 %224, %v15_v6   ;;  %193 = vmatpush3.bf16.msra.mxu0 %v190_v7  ;;  %v210_v20 = vpack.c.bf16 %v41_v19, %v40_v18  ;;  %v43_v22 = vld [vmem:[%s314_s1 + $0x68] sm:$0xff]  ;;  %v44_v24 = vld [vmem:[%s314_s1 + $0x70] sm:$0xff]  ;;  %v45_v25 = vld [vmem:[%s314_s1 + $0x78] sm:$0xff] }
   0x7   :  { %195 = vmatprep.subr.bf16.mxu0 %v194_v8  ;;  %v214_v23 = vpack.c.bf16 %v43_v22, %v42_v21  ;;  %v218_v26 = vpack.c.bf16 %v45_v25, %v44_v24  ;;  %v124_v33 = vld [vmem:[%s315_s2 + $0x8] sm:$0xff]  ;;  %v123_v36 = vld [vmem:[%s315_s2] sm:$0xff] }
   0xa   :  { %197 = vmatpush3.bf16.msra.mxu0 %v194_v8 }
   0xb   :  { %199 = vmatprep.subr.bf16.mxu0 %v198_v11 }
   0xe   :  { %201 = vmatpush3.bf16.msra.mxu0 %v198_v11 }
   0xf   :  { %203 = vmatprep.subr.bf16.mxu0 %v202_v14 }
  0x12   :  { %205 = vmatpush3.bf16.msra.mxu0 %v202_v14 }
  0x13   :  { %207 = vmatprep.subr.bf16.mxu0 %v206_v17 }
  0x16   :  { %209 = vmatpush3.bf16.msra.mxu0 %v206_v17 }
  0x17   :  { %211 = vmatprep.subr.bf16.mxu0 %v210_v20 }
  0x1a   :  { %213 = vmatpush3.bf16.msra.mxu0 %v210_v20 }
  0x1b   :  { %215 = vmatprep.subr.bf16.mxu0 %v214_v23 }
  0x1e   :  { %217 = vmatpush3.bf16.msra.mxu0 %v214_v23 }
  0x1f   :  { %219 = vmatprep.subr.bf16.mxu0 %v218_v26 }
  0x22   :  { %221 = vmatpush3.bf16.msra.mxu0 %v218_v26 }
  0x81   :  { %v20_v29 = vpop.permute.xlu0 %19 }
  0x82   :  { %vm24_vm0 = vcmp.eq.s32.totalorder %v17_v28, %v20_v29 }
  0x83   :  { %187 = vmatprep.mubr.msk.f32.mxu0 %vm24_vm0, %v226_v30 }
  0x85   :  { %v23_v31 = vpop.permute.xlu0 %22 }
  0x86   :  { %vm25_vm1 = vcmp.eq.s32.totalorder %v17_v28, %v23_v31 }
  0x87   :  { %188 = vmatmul.mubr.msk.f32.vlgmr.msra.gmra.mrb[0].mxu0 %vm25_vm1, %v226_v30 }
 0x15a   :  { %v189_v32 = vpop.f32.mrb[0].mxu0 }
 0x15b   :  { %v122_v34 = vmul.f32 11.313708, %v189_v32  ;;  %v112_v35 = vpop.f32.mrb[1].mxu0 }
 0x15c   :  { %v121_v37 = vmul.f32 11.313708, %v112_v35 }
 0x15d   :  { %v126_v38 = vadd.f32 %v124_v33, %v122_v34 }
 0x15e   :  { %v125_v39 = vadd.f32 %v123_v36, %v121_v37 }
 0x15f   :  { %128 = vst [vmem:[%s316_s3 + $0x8] sm:$0xff] %v126_v38 }
 0x160   :  { %127 = vst [vmem:[%s316_s3] sm:$0xff] %v125_v39 }

// kernel: generator_transformer_forward.4
= control target key start
LH: loop header
LB: loop body
LE: loop exit
PB: predicated region body
PF: predicated region fallthrough
CT: control target
= control target key end

     0   :  { %s7669_s27 = smov 0   ;;  %s8998_s0 = inlined_call_operand.vmem [shape: f32[16,128], index: 0, kind: input, shape index: {}]   ;;  %s8999_s1 = inlined_call_operand.vmem [shape: f32[2,8,8], index: 1, kind: input, shape index: {}]   ;;  %s9000_s2 = inlined_call_operand.vmem [shape: f32[2,4,128,32], index: 2, kind: input, shape index: {}]   ;;  %s9001_s3 = inlined_call_operand.vmem [shape: f32[2,4,128,32], index: 3, kind: input, shape index: {}]   ;;  %s9002_s4 = inlined_call_operand.vmem [shape: f32[2,4,128,32], index: 4, kind: input, shape index: {}]   ;;  %s9003_s5 = inlined_call_operand.vmem [shape: f32[2,4,1,32], index: 5, kind: input, shape index: {}]   ;;  %s9004_s6 = inlined_call_operand.vmem [shape: f32[2,4,1,32], index: 6, kind: input, shape index: {}]   ;;  %s9005_s7 = inlined_call_operand.vmem [shape: f32[2,4,1,32], index: 7, kind: input, shape index: {}]   ;;  %s9006_s8 = inlined_call_operand.vmem [shape: f32[2,4,32,128], index: 8, kind: input, shape index: {}]   ;;  %s9007_s9 = inlined_call_operand.vmem [shape: f32[2,1,128], index: 9, kind: input, shape index: {}]   ;;  %s9008_s10 = inlined_call_operand.vmem [shape: f32[2,128,256], index: 10, kind: input, shape index: {}]   ;;  %s9009_s11 = inlined_call_operand.vmem [shape: f32[2,1,256], index: 11, kind: input, shape index: {}]   ;;  %s9010_s12 = inlined_call_operand.vmem [shape: f32[2,256,128], index: 12, kind: input, shape index: {}]   ;;  %s9011_s13 = inlined_call_operand.vmem [shape: f32[2,1,128], index: 13, kind: input, shape index: {}]   ;;  %s9012_s14 = inlined_call_operand.vmem [shape: f32[2,1,128], index: 14, kind: input, shape index: {}]   ;;  %s9013_s15 = inlined_call_operand.vmem [shape: f32[2,1,128], index: 15, kind: input, shape index: {}]   ;;  %s9014_s16 = inlined_call_operand.vmem [shape: f32[2,1,128], index: 16, kind: input, shape index: {}]   ;;  %s9015_s17 = inlined_call_operand.vmem [shape: f32[2,1,128], index: 17, kind: input, shape index: {}]   ;;  %s9016_s18 = inlined_call_operand.vmem [shape: f32[16,128], index: 18, kind: output, shape index: {}]  }
   0x1   :  { %9093 = sst [smem:[#allocation72_spill]] %s8998_s0 }
   0x2   :  { %9094 = sst [smem:[#allocation73_spill]] %s8999_s1 }
   0x3   :  { %9095 = sst [smem:[#allocation74_spill]] %s9000_s2 }
   0x4   :  { %9096 = sst [smem:[#allocation75_spill]] %s9001_s3 }
   0x5   :  { %9097 = sst [smem:[#allocation76_spill]] %s9002_s4 }
   0x6   :  { %9098 = sst [smem:[#allocation77_spill]] %s9003_s5 }
   0x7   :  { %9099 = sst [smem:[#allocation78_spill]] %s9004_s6 }
   0x8   :  { %9100 = sst [smem:[#allocation79_spill]] %s9005_s7 }
   0x9   :  { %9101 = sst [smem:[#allocation80_spill]] %s9006_s8 }
   0xa   :  { %9102 = sst [smem:[#allocation81_spill]] %s9008_s10 }
   0xb   :  { %9103 = sst [smem:[#allocation82_spill]] %s9009_s11 }
   0xc   :  { %9104 = sst [smem:[#allocation83_spill]] %s9016_s18 }
   0xd LB: > { %9105 = sst [smem:[#allocation3_spill]] %s7569_s27  ;;  %s7675_s28 = sadd.s32 4294967295, %s7569_s27   ;;  %s7569_s27 = sphi %s7669_s27, %s28_s27  }
   0xe   : > { %p5218_p0 = scmp.ge.s32.totalorder %s7569_s27, 1  ;;  %p641_p1 = scmp.lt.s32.totalorder %s7569_s27, 3 }
  0x10   : > { %p642_p2 = pnand %p5218_p0, %p641_p1 }
  0x12   : > { %645 = sbr.rel (%p642_p2) target bundleno = 3515 (0xdbb), region = 92 }
  0x19   : > { %p749_p3 = scmp.lt.s32.totalorder %s7675_s28, 1  ;;  %s9106_s20 = sld [smem:[#allocation74_spill]] }
  0x1a   : > { %s9108_s3 = sld [smem:[#allocation75_spill]]  ;;  %s9109_s4 = sld [smem:[#allocation76_spill]] }
  0x1b   : > { %s7681_s29 = scalar_select %p749_p3, %s7675_s28, 1 }
  0x1c   : > { %s9111_s5 = sld [smem:[#allocation77_spill]]  ;;  %s9113_s6 = sld [smem:[#allocation78_spill]] }
  0x1d   : > { %s5290_s30 = sshll.u32 %s7681_s29, 9  ;;  %s5225_s0 = sshll.u32 %s7681_s29, 2 }
  0x1e   : > { %s9114_s7 = sld [smem:[#allocation79_spill]]  ;;  %s5293_s24 = sshll.u32 %s7681_s29, 7 }
  0x1f   : > { %s7688_s21 = scalar_lea.vmem %s9106_s20, %s5290_s30  ;;  %s9115_s8 = sld [smem:[#allocation80_spill]] }
  0x20   : > { %9107 = sst [smem:[#allocation4_spill]] %s7688_s21  ;;  %s7693_s23 = scalar_lea.vmem %s9108_s3, %s5290_s30 }
  0x21   : > { %s7698_s26 = scalar_lea.vmem %s9109_s4, %s5290_s30  ;;  %s9116_s10 = sld [smem:[#allocation81_spill]] }
  0x22   : > { %9110 = sst [smem:[#allocation5_spill]] %s7698_s26  ;;  %s7703_s19 = scalar_lea.vmem %s9111_s5, %s5225_s0 }
  0x23   : > { %9112 = sst [smem:[#allocation6_spill]] %s7703_s19  ;;  %s7708_s21 = scalar_lea.vmem %s9113_s6, %s5225_s0 }
  0x24   : > { %s7713_s3 = scalar_lea.vmem %s9114_s7, %s5225_s0  ;;  %s5294_s5 = sshll.u32 %s7681_s29, 8 }
  0x25   : > { %s7723_s27 = scalar_lea.vmem %s9115_s8, %s5293_s24  ;;  %s5232_s6 = sshll.u32 %s7681_s29, 1 }
  0x26   : > { %s9118_s11 = sld [smem:[#allocation82_spill]]  ;;  %s7740_s30 = scalar_lea.vmem %s9010_s12, %s5294_s5 }
  0x27   : > { %s7729_s20 = scalar_lea.vmem %s9116_s10, %s5294_s5  ;;  %s800_s18 = scalar_lea.vmem %s9011_s13, %s7681_s29 }
  0x28   : > { %9117 = sst [smem:[#allocation7_spill]] %s7729_s20  ;;  %s803_s19 = scalar_lea.vmem %s9012_s14, %s7681_s29 }
  0x29   : > { %s806_s20 = scalar_lea.vmem %s9013_s15, %s7681_s29  ;;  %s809_s0 = scalar_lea.vmem %s9014_s16, %s7681_s29 }
  0x2a   : > { %s812_s5 = scalar_lea.vmem %s9015_s17, %s7681_s29  ;;  %p5235_p4 = scmp.ne.s32.totalorder %s7675_s28, 0 }
  0x2b   : > { %s9119_s24 = sld [smem:[#allocation72_spill]] (!%p5235_p4) }
  0x2c   : > { %s7735_s2 = scalar_lea.vmem %s9118_s11, %s5232_s6  ;;  %816 = sbr.rel (%p5235_p4) target bundleno = 51 (0x33), region = 96 }
  0x31   : > { %v817_v0 = vld [vmem:[%s9119_s24] sm:$0xff] (!%p5235_p4)  ;;  %v818_v1 = vld [vmem:[%s9119_s24 + $0x8] sm:$0xff] (!%p5235_p4) }
  0x32   : > { %819 = vst [vmem:[#allocation2] sm:$0xff] (!%p5235_p4), %v817_v0  ;;  %820 = vst [vmem:[#allocation2 + $0x8] sm:$0xff] (!%p5235_p4), %v818_v1 }
  0x33 PF: > { %s9120_s10 = sld [smem:[#allocation4_spill]]  ;;  %v9069_v5 = vmov 0.0|0.0   ;;  %vm7572_vm0 = vmmov 0   ;;  %v9025_v13 = vmov 0.0   ;;  %s9139_s11 = sld [smem:[#allocation5_spill]]  ;;  %vm1955_vm1 = vcmask 261120  }
  0x34   : > { %6822 = vmatprep.subr.bf16.mxu0 %v9069_v5  ;;  %6846 = vmatprep.subr.bf16.mxu1 %v9069_v5  ;;  %s9188_s22 = sld [smem:[#allocation73_spill]]  ;;  %vm2269_vm2 = vcmask 64512   ;;  %s9254_s25 = scalar_lea.vmem %s9007_s9, %s7681_s29 }
  0x35   : > { %5846 = vmatprep.mubr.msk.f32.mxu0 %vm7572_vm0, %v9025_v13  ;;  %5881 = vmatprep.mubr.msk.f32.mxu1 %vm7572_vm0, %v9025_v13  ;;  %s9255_s26 = sld [smem:[#allocation7_spill]]  ;;  %p5287_p5 = scmp.ne.s32.totalorder %s7675_s28, 1 }
  0x39   : > { %v823_v2 = vld [vmem:[%s9120_s10] sm:$0xff]  ;;  %v824_v3 = vld [vmem:[%s9120_s10 + $0x8] sm:$0xff]  ;;  %v825_v8 = vld [vmem:[%s9120_s10 + $0x10] sm:$0xff] }
  0x3a   : > { %v839_v4 = vld [vmem:[%s9120_s10 + $0x80] sm:$0xff]  ;;  %v7774_v6 = vpack.c.bf16 %v824_v3, %v823_v2  ;;  %v840_v7 = vld [vmem:[%s9120_s10 + $0x88] sm:$0xff]  ;;  %v826_v9 = vld [vmem:[%s9120_s10 + $0x18] sm:$0xff] }
  0x3b   : > { %v7779_v10 = vpack.c.bf16 %v840_v7, %v839_v4  ;;  %v841_v11 = vld [vmem:[%s9120_s10 + $0x90] sm:$0xff]  ;;  %v842_v12 = vld [vmem:[%s9120_s10 + $0x98] sm:$0xff]  ;;  %v7788_v14 = vpack.c.bf16 %v826_v9, %v825_v8  ;;  %v827_v16 = vld [vmem:[%s9120_s10 + $0x20] sm:$0xff] }
  0x3c   : > { %6824 = vmatpush3.bf16.msra.mxu0 %v7774_v6  ;;  %v7792_v15 = vpack.c.bf16 %v842_v12, %v841_v11  ;;  %v828_v17 = vld [vmem:[%s9120_s10 + $0x28] sm:$0xff]  ;;  %v843_v18 = vld [vmem:[%s9120_s10 + $0xa0] sm:$0xff]  ;;  %v829_v22 = vld [vmem:[%s9120_s10 + $0x30] sm:$0xff] }
  0x3d   : > { %6848 = vmatpush3.bf16.msra.mxu1 %v7779_v10  ;;  %6825 = vmatprep.subr.bf16.mxu0 %v9069_v5  ;;  %v844_v19 = vld [vmem:[%s9120_s10 + $0xa8] sm:$0xff]  ;;  %v7800_v20 = vpack.c.bf16 %v828_v17, %v827_v16  ;;  %v830_v23 = vld [vmem:[%s9120_s10 + $0x38] sm:$0xff]  ;;  %v845_v24 = vld [vmem:[%s9120_s10 + $0xb0] sm:$0xff] }
  0x3e   : > { %6849 = vmatprep.subr.bf16.mxu1 %v9069_v5  ;;  %v7804_v21 = vpack.c.bf16 %v844_v19, %v843_v18  ;;  %v846_v25 = vld [vmem:[%s9120_s10 + $0xb8] sm:$0xff]  ;;  %v7812_v26 = vpack.c.bf16 %v830_v23, %v829_v22  ;;  %v831_v28 = vld [vmem:[%s9120_s10 + $0x40] sm:$0xff]  ;;  %v832_v29 = vld [vmem:[%s9120_s10 + $0x48] sm:$0xff] }
  0x3f   : > { %v7816_v27 = vpack.c.bf16 %v846_v25, %v845_v24  ;;  %v847_v30 = vld [vmem:[%s9120_s10 + $0xc0] sm:$0xff]  ;;  %v848_v31 = vld [vmem:[%s9120_s10 + $0xc8] sm:$0xff]  ;;  %v7824_v32 = vpack.c.bf16 %v832_v29, %v831_v28  ;;  %v833_v34 = vld [vmem:[%s9120_s10 + $0x50] sm:$0xff] }
  0x40   : > { %6827 = vmatpush3.bf16.msra.mxu0 %v7788_v14  ;;  %v7828_v33 = vpack.c.bf16 %v848_v31, %v847_v30  ;;  %v834_v35 = vld [vmem:[%s9120_s10 + $0x58] sm:$0xff]  ;;  %v849_v36 = vld [vmem:[%s9120_s10 + $0xd0] sm:$0xff]  ;;  %v835_v40 = vld [vmem:[%s9120_s10 + $0x60] sm:$0xff] }
  0x41   : > { %6851 = vmatpush3.bf16.msra.mxu1 %v7792_v15  ;;  %6828 = vmatprep.subr.bf16.mxu0 %v9069_v5  ;;  %v850_v37 = vld [vmem:[%s9120_s10 + $0xd8] sm:$0xff]  ;;  %v7836_v38 = vpack.c.bf16 %v834_v35, %v833_v34  ;;  %v836_v41 = vld [vmem:[%s9120_s10 + $0x68] sm:$0xff]  ;;  %v851_v42 = vld [vmem:[%s9120_s10 + $0xe0] sm:$0xff] }
  0x42   : > { %6852 = vmatprep.subr.bf16.mxu1 %v9069_v5  ;;  %v7840_v39 = vpack.c.bf16 %v850_v37, %v849_v36  ;;  %v852_v43 = vld [vmem:[%s9120_s10 + $0xe8] sm:$0xff]  ;;  %v7848_v44 = vpack.c.bf16 %v836_v41, %v835_v40  ;;  %v837_v46 = vld [vmem:[%s9120_s10 + $0x70] sm:$0xff]  ;;  %v838_v47 = vld [vmem:[%s9120_s10 + $0x78] sm:$0xff] }
  0x43   : > { %v7852_v45 = vpack.c.bf16 %v852_v43, %v851_v42  ;;  %v853_v48 = vld [vmem:[%s9120_s10 + $0xf0] sm:$0xff]  ;;  %v854_v49 = vld [vmem:[%s9120_s10 + $0xf8] sm:$0xff]  ;;  %v7860_v50 = vpack.c.bf16 %v838_v47, %v837_v46  ;;  %v855_v52 = vld [vmem:[%s9120_s10 + $0x100] sm:$0xff] }
  0x44   : > { %6830 = vmatpush3.bf16.msra.mxu0 %v7800_v20  ;;  %v7864_v51 = vpack.c.bf16 %v854_v49, %v853_v48  ;;  %v856_v53 = vld [vmem:[%s9120_s10 + $0x108] sm:$0xff]  ;;  %v871_v54 = vld [vmem:[%s9120_s10 + $0x180] sm:$0xff]  ;;  %v857_v59 = vld [vmem:[%s9120_s10 + $0x110] sm:$0xff] }
  0x45   : > { %6854 = vmatpush3.bf16.msra.mxu1 %v7804_v21  ;;  %6831 = vmatprep.subr.bf16.mxu0 %v9069_v5  ;;  %v872_v55 = vld [vmem:[%s9120_s10 + $0x188] sm:$0xff]  ;;  %v7872_v56 = vld [vmem:[#allocation2] sm:$0xff]  ;;  %v7874_v57 = vpack.c.bf16 %v856_v53, %v855_v52  ;;  %v858_v60 = vld [vmem:[%s9120_s10 + $0x118] sm:$0xff] }
  0x46   : > { %6855 = vmatprep.subr.bf16.mxu1 %v9069_v5  ;;  %v7878_v58 = vpack.c.bf16 %v872_v55, %v871_v54  ;;  %v873_v61 = vld [vmem:[%s9120_s10 + $0x190] sm:$0xff]  ;;  %v874_v62 = vld [vmem:[%s9120_s10 + $0x198] sm:$0xff]  ;;  %v7888_v63 = vpack.c.bf16 %v858_v60, %v857_v59  ;;  %v859_v1 = vld [vmem:[%s9120_s10 + $0x120] sm:$0xff] }
  0x47   : > { %v7892_v0 = vpack.c.bf16 %v874_v62, %v873_v61  ;;  %v860_v2 = vld [vmem:[%s9120_s10 + $0x128] sm:$0xff]  ;;  %v875_v3 = vld [vmem:[%s9120_s10 + $0x1a0] sm:$0xff]  ;;  %v861_v9 = vld [vmem:[%s9120_s10 + $0x130] sm:$0xff] }
  0x48   : > { %6833 = vmatpush3.bf16.msra.mxu0 %v7812_v26  ;;  %v876_v4 = vld [vmem:[%s9120_s10 + $0x1a8] sm:$0xff]  ;;  %v7904_v7 = vpack.c.bf16 %v860_v2, %v859_v1  ;;  %v862_v11 = vld [vmem:[%s9120_s10 + $0x138] sm:$0xff]  ;;  %v877_v12 = vld [vmem:[%s9120_s10 + $0x1b0] sm:$0xff] }
  0x49   : > { %6857 = vmatpush3.bf16.msra.mxu1 %v7816_v27  ;;  %6834 = vmatprep.subr.bf16.mxu0 %v9069_v5  ;;  %v7908_v8 = vpack.c.bf16 %v876_v4, %v875_v3  ;;  %v878_v16 = vld [vmem:[%s9120_s10 + $0x1b8] sm:$0xff]  ;;  %v7916_v17 = vpack.c.bf16 %v862_v11, %v861_v9  ;;  %v863_v19 = vld [vmem:[%s9120_s10 + $0x140] sm:$0xff]  ;;  %v864_v22 = vld [vmem:[%s9120_s10 + $0x148] sm:$0xff] }
  0x4a   : > { %6858 = vmatprep.subr.bf16.mxu1 %v9069_v5  ;;  %v7920_v18 = vpack.c.bf16 %v878_v16, %v877_v12  ;;  %v879_v23 = vld [vmem:[%s9120_s10 + $0x1c0] sm:$0xff]  ;;  %v880_v24 = vld [vmem:[%s9120_s10 + $0x1c8] sm:$0xff]  ;;  %v7928_v25 = vpack.c.bf16 %v864_v22, %v863_v19  ;;  %v865_v29 = vld [vmem:[%s9120_s10 + $0x150] sm:$0xff] }
  0x4b   : > { %v7932_v28 = vpack.c.bf16 %v880_v24, %v879_v23  ;;  %v866_v30 = vld [vmem:[%s9120_s10 + $0x158] sm:$0xff]  ;;  %v881_v31 = vld [vmem:[%s9120_s10 + $0x1d0] sm:$0xff]  ;;  %v867_v37 = vld [vmem:[%s9120_s10 + $0x160] sm:$0xff] }
  0x4c   : > { %6836 = vmatpush3.bf16.msra.mxu0 %v7824_v32  ;;  %v882_v34 = vld [vmem:[%s9120_s10 + $0x1d8] sm:$0xff]  ;;  %v7940_v35 = vpack.c.bf16 %v866_v30, %v865_v29  ;;  %v868_v40 = vld [vmem:[%s9120_s10 + $0x168] sm:$0xff]  ;;  %v883_v41 = vld [vmem:[%s9120_s10 + $0x1e0] sm:$0xff] }
  0x4d   : > { %6860 = vmatpush3.bf16.msra.mxu1 %v7828_v33  ;;  %6837 = vmatprep.subr.bf16.mxu0 %v9069_v5  ;;  %v7944_v36 = vpack.c.bf16 %v882_v34, %v881_v31  ;;  %v884_v42 = vld [vmem:[%s9120_s10 + $0x1e8] sm:$0xff]  ;;  %v7952_v43 = vpack.c.bf16 %v868_v40, %v867_v37  ;;  %v869_v47 = vld [vmem:[%s9120_s10 + $0x170] sm:$0xff]  ;;  %v870_v48 = vld [vmem:[%s9120_s10 + $0x178] sm:$0xff] }
  0x4e   : > { %6861 = vmatprep.subr.bf16.mxu1 %v9069_v5  ;;  %v7956_v46 = vpack.c.bf16 %v884_v42, %v883_v41  ;;  %v885_v49 = vld [vmem:[%s9120_s10 + $0x1f0] sm:$0xff]  ;;  %v886_v52 = vld [vmem:[%s9120_s10 + $0x1f8] sm:$0xff]  ;;  %v7964_v53 = vpack.c.bf16 %v870_v48, %v869_v47  ;;  %v887_v55 = vld [vmem:[%s7693_s23] sm:$0xff] }
  0x4f   : > { %v7968_v54 = vpack.c.bf16 %v886_v52, %v885_v49  ;;  %v888_v59 = vld [vmem:[%s7693_s23 + $0x8] sm:$0xff]  ;;  %v903_v60 = vld [vmem:[%s7693_s23 + $0x80] sm:$0xff]  ;;  %v889_v2 = vld [vmem:[%s7693_s23 + $0x10] sm:$0xff] }
  0x50   : > { %6839 = vmatpush3.bf16.msra.mxu0 %v7836_v38  ;;  %v904_v61 = vld [vmem:[%s7693_s23 + $0x88] sm:$0xff]  ;;  %v7976_v62 = vpack.c.bf16 %v888_v59, %v887_v55  ;;  %v890_v3 = vld [vmem:[%s7693_s23 + $0x18] sm:$0xff]  ;;  %v905_v4 = vld [vmem:[%s7693_s23 + $0x90] sm:$0xff] }
  0x51   : > { %6863 = vmatpush3.bf16.msra.mxu1 %v7840_v39  ;;  %6840 = vmatprep.subr.bf16.mxu0 %v9069_v5  ;;  %v7980_v1 = vpack.c.bf16 %v904_v61, %v903_v60  ;;  %v906_v9 = vld [vmem:[%s7693_s23 + $0x98] sm:$0xff]  ;;  %v7990_v11 = vpack.c.bf16 %v890_v3, %v889_v2  ;;  %v891_v16 = vld [vmem:[%s7693_s23 + $0x20] sm:$0xff]  ;;  %v892_v19 = vld [vmem:[%s7693_s23 + $0x28] sm:$0xff] }
  0x52   : > { %6864 = vmatprep.subr.bf16.mxu1 %v9069_v5  ;;  %v7994_v12 = vpack.c.bf16 %v906_v9, %v905_v4  ;;  %v907_v22 = vld [vmem:[%s7693_s23 + $0xa0] sm:$0xff]  ;;  %v908_v23 = vld [vmem:[%s7693_s23 + $0xa8] sm:$0xff]  ;;  %v8006_v24 = vpack.c.bf16 %v892_v19, %v891_v16  ;;  %v893_v30 = vld [vmem:[%s7693_s23 + $0x30] sm:$0xff] }
  0x53   : > { %v8010_v29 = vpack.c.bf16 %v908_v23, %v907_v22  ;;  %v894_v31 = vld [vmem:[%s7693_s23 + $0x38] sm:$0xff]  ;;  %v909_v34 = vld [vmem:[%s7693_s23 + $0xb0] sm:$0xff]  ;;  %v895_v42 = vld [vmem:[%s7693_s23 + $0x40] sm:$0xff] }
  0x54   : > { %6842 = vmatpush3.bf16.msra.mxu0 %v7848_v44  ;;  %v910_v37 = vld [vmem:[%s7693_s23 + $0xb8] sm:$0xff]  ;;  %v8018_v40 = vpack.c.bf16 %v894_v31, %v893_v30  ;;  %v896_v47 = vld [vmem:[%s7693_s23 + $0x48] sm:$0xff]  ;;  %v911_v48 = vld [vmem:[%s7693_s23 + $0xc0] sm:$0xff] }
  0x55   : > { %6866 = vmatpush3.bf16.msra.mxu1 %v7852_v45  ;;  %6843 = vmatprep.subr.bf16.mxu0 %v9069_v5  ;;  %v8022_v41 = vpack.c.bf16 %v910_v37, %v909_v34  ;;  %v912_v49 = vld [vmem:[%s7693_s23 + $0xc8] sm:$0xff]  ;;  %v8030_v52 = vpack.c.bf16 %v896_v47, %v895_v42  ;;  %v897_v59 = vld [vmem:[%s7693_s23 + $0x50] sm:$0xff]  ;;  %v898_v60 = vld [vmem:[%s7693_s23 + $0x58] sm:$0xff] }
  0x56   : > { %6867 = vmatprep.subr.bf16.mxu1 %v9069_v5  ;;  %v8034_v55 = vpack.c.bf16 %v912_v49, %v911_v48  ;;  %v913_v61 = vld [vmem:[%s7693_s23 + $0xd0] sm:$0xff]  ;;  %v914_v2 = vld [vmem:[%s7693_s23 + $0xd8] sm:$0xff]  ;;  %v8042_v3 = vpack.c.bf16 %v898_v60, %v897_v59  ;;  %v899_v9 = vld [vmem:[%s7693_s23 + $0x60] sm:$0xff] }
  0x57   : > { %v8046_v4 = vpack.c.bf16 %v914_v2, %v913_v61  ;;  %v900_v16 = vld [vmem:[%s7693_s23 + $0x68] sm:$0xff]  ;;  %v915_v19 = vld [vmem:[%s7693_s23 + $0xe0] sm:$0xff]  ;;  %v901_v31 = vld [vmem:[%s7693_s23 + $0x70] sm:$0xff] }
  0x58   : > { %6845 = vmatpush3.bf16.msra.mxu0 %v7860_v50  ;;  %9121 = vst [vmem:[#allocation8_spill] sm:$0xff] %v8034_v55  ;;  %v916_v22 = vld [vmem:[%s7693_s23 + $0xe8] sm:$0xff]  ;;  %v8054_v23 = vpack.c.bf16 %v900_v16, %v899_v9  ;;  %v902_v34 = vld [vmem:[%s7693_s23 + $0x78] sm:$0xff]  ;;  %v917_v37 = vld [vmem:[%s7693_s23 + $0xf0] sm:$0xff] }
  0x59   : > { %6869 = vmatpush3.bf16.msra.mxu1 %v7864_v51  ;;  %6870 = vmatprep.subr.bf16.mxu0 %v9069_v5  ;;  %9122 = vst [vmem:[#allocation9_spill] sm:$0xff] %v8046_v4  ;;  %v8058_v30 = vpack.c.bf16 %v916_v22, %v915_v19  ;;  %v918_v42 = vld [vmem:[%s7693_s23 + $0xf8] sm:$0xff]  ;;  %v8066_v47 = vpack.c.bf16 %v902_v34, %v901_v31  ;;  %v919_v49 = vld [vmem:[%s7693_s23 + $0x100] sm:$0xff]  ;;  %v920_v59 = vld [vmem:[%s7693_s23 + $0x108] sm:$0xff] }
  0x5a   : > { %6894 = vmatprep.subr.bf16.mxu1 %v9069_v5  ;;  %9123 = vst [vmem:[#allocation10_spill] sm:$0xff] %v8054_v23  ;;  %v8070_v48 = vpack.c.bf16 %v918_v42, %v917_v37  ;;  %v935_v60 = vld [vmem:[%s7693_s23 + $0x180] sm:$0xff]  ;;  %v936_v61 = vld [vmem:[%s7693_s23 + $0x188] sm:$0xff]  ;;  %v8078_v2 = vpack.c.bf16 %v920_v59, %v919_v49  ;;  %v921_v16 = vld [vmem:[%s7693_s23 + $0x110] sm:$0xff] }
  0x5b   : > { %5847 = vmatmul.mubr.f32.vlgmr.msra.gmra.mrb[0].mxu0 %v7872_v56  ;;  %9124 = vst [vmem:[#allocation11_spill] sm:$0xff] %v8058_v30  ;;  %9125 = vst [vmem:[#allocation12_spill] sm:$0xff] %v8066_v47  ;;  %v8082_v9 = vpack.c.bf16 %v936_v61, %v935_v60  ;;  %v922_v19 = vld [vmem:[%s7693_s23 + $0x118] sm:$0xff]  ;;  %v937_v22 = vld [vmem:[%s7693_s23 + $0x190] sm:$0xff] }
  0x5c   : > { %5882 = vmatmul.mubr.f32.vlgmr.msra.gmra.mrb[0].mxu1 %v7872_v56  ;;  %6872 = vmatpush3.bf16.msra.mxu0 %v7874_v57  ;;  %9126 = vst [vmem:[#allocation13_spill] sm:$0xff] %v8070_v48  ;;  %9127 = vst [vmem:[#allocation14_spill] sm:$0xff] %v8078_v2  ;;  %v938_v31 = vld [vmem:[%s7693_s23 + $0x198] sm:$0xff]  ;;  %v8092_v34 = vpack.c.bf16 %v922_v19, %v921_v16  ;;  %v923_v42 = vld [vmem:[%s7693_s23 + $0x120] sm:$0xff] }
  0x5d   : > { %6896 = vmatpush3.bf16.msra.mxu1 %v7878_v58  ;;  %6873 = vmatprep.subr.bf16.mxu0 %v9069_v5  ;;  %9128 = vst [vmem:[#allocation15_spill] sm:$0xff] %v8082_v9  ;;  %v8096_v37 = vpack.c.bf16 %v938_v31, %v937_v22  ;;  %v924_v49 = vld [vmem:[%s7693_s23 + $0x128] sm:$0xff]  ;;  %v939_v59 = vld [vmem:[%s7693_s23 + $0x1a0] sm:$0xff]  ;;  %v925_v19 = vld [vmem:[%s7693_s23 + $0x130] sm:$0xff] }
  0x5e   : > { %6897 = vmatprep.subr.bf16.mxu1 %v9069_v5  ;;  %5916 = vmatprep.mubr.msk.f32.mxu0 %vm7572_vm0, %v9025_v13  ;;  %9129 = vst [vmem:[#allocation16_spill] sm:$0xff] %v8092_v34  ;;  %v940_v60 = vld [vmem:[%s7693_s23 + $0x1a8] sm:$0xff]  ;;  %v8108_v61 = vpack.c.bf16 %v924_v49, %v923_v42  ;;  %v926_v22 = vld [vmem:[%s7693_s23 + $0x138] sm:$0xff]  ;;  %v941_v31 = vld [vmem:[%s7693_s23 + $0x1b0] sm:$0xff] }
  0x5f   : > { %5951 = vmatprep.mubr.msk.f32.mxu1 %vm7572_vm0, %v9025_v13  ;;  %9130 = vst [vmem:[#allocation17_spill] sm:$0xff] %v8096_v37  ;;  %v8112_v16 = vpack.c.bf16 %v940_v60, %v939_v59  ;;  %v8120_v42 = vpack.c.bf16 %v926_v22, %v925_v19  ;;  %v927_v59 = vld [vmem:[%s7693_s23 + $0x140] sm:$0xff]  ;;  %v928_v60 = vld [vmem:[%s7693_s23 + $0x148] sm:$0xff]  ;;  %v929_v22 = vld [vmem:[%s7693_s23 + $0x150] sm:$0xff] }
  0x60   : > { %6875 = vmatpush3.bf16.msra.mxu0 %v7888_v63  ;;  %9131 = vst [vmem:[#allocation18_spill] sm:$0xff] %v8108_v61  ;;  %v8132_v19 = vpack.c.bf16 %v928_v60, %v927_v59  ;;  %v932_v60 = vld [vmem:[%s7693_s23 + $0x168] sm:$0xff] }
  0x61   : > { %6899 = vmatpush3.bf16.msra.mxu1 %v7892_v0  ;;  %6876 = vmatprep.subr.bf16.mxu0 %v9069_v5  ;;  %9132 = vst [vmem:[#allocation19_spill] sm:$0xff] %v8112_v16  ;;  %9133 = vst [vmem:[#allocation20_spill] sm:$0xff] %v8120_v42 }
  0x62   : > { %6900 = vmatprep.subr.bf16.mxu1 %v9069_v5  ;;  %9135 = vst [vmem:[#allocation22_spill] sm:$0xff] %v8132_v19 }
  0x64   : > { %6878 = vmatpush3.bf16.msra.mxu0 %v7904_v7 }
  0x65   : > { %6902 = vmatpush3.bf16.msra.mxu1 %v7908_v8  ;;  %6879 = vmatprep.subr.bf16.mxu0 %v9069_v5 }
  0x66   : > { %6903 = vmatprep.subr.bf16.mxu1 %v9069_v5 }
  0x68   : > { %6881 = vmatpush3.bf16.msra.mxu0 %v7916_v17 }
  0x69   : > { %6905 = vmatpush3.bf16.msra.mxu1 %v7920_v18  ;;  %6882 = vmatprep.subr.bf16.mxu0 %v9069_v5 }
  0x6a   : > { %6906 = vmatprep.subr.bf16.mxu1 %v9069_v5 }
  0x6c   : > { %6884 = vmatpush3.bf16.msra.mxu0 %v7928_v25 }
  0x6d   : > { %6908 = vmatpush3.bf16.msra.mxu1 %v7932_v28  ;;  %6885 = vmatprep.subr.bf16.mxu0 %v9069_v5 }
  0x6e   : > { %6909 = vmatprep.subr.bf16.mxu1 %v9069_v5 }
  0x70   : > { %6887 = vmatpush3.bf16.msra.mxu0 %v7940_v35 }
  0x71   : > { %6911 = vmatpush3.bf16.msra.mxu1 %v7944_v36  ;;  %6888 = vmatprep.subr.bf16.mxu0 %v9069_v5 }
  0x72   : > { %6912 = vmatprep.subr.bf16.mxu1 %v9069_v5 }
  0x74   : > { %6890 = vmatpush3.bf16.msra.mxu0 %v7952_v43 }
  0x75   : > { %6914 = vmatpush3.bf16.msra.mxu1 %v7956_v46  ;;  %6891 = vmatprep.subr.bf16.mxu0 %v9069_v5 }
  0x76   : > { %6915 = vmatprep.subr.bf16.mxu1 %v9069_v5 }
  0x78   : > { %6893 = vmatpush3.bf16.msra.mxu0 %v7964_v53 }
  0x79   : > { %6917 = vmatpush3.bf16.msra.mxu1 %v7968_v54  ;;  %6918 = vmatprep.subr.bf16.mxu0 %v9069_v5 }
  0x7a   : > { %6942 = vmatprep.subr.bf16.mxu1 %v9069_v5 }
  0x7b   : > { %5917 = vmatmul.mubr.f32.vlgmr.msra.gmra.mrb[2].mxu0 %v7872_v56 }
  0x7c   : > { %5952 = vmatmul.mubr.f32.vlgmr.msra.gmra.mrb[2].mxu1 %v7872_v56  ;;  %6920 = vmatpush3.bf16.msra.mxu0 %v7976_v62 }
  0x7d   : > { %6944 = vmatpush3.bf16.msra.mxu1 %v7980_v1  ;;  %6921 = vmatprep.subr.bf16.mxu0 %v9069_v5 }
  0x7e   : > { %6945 = vmatprep.subr.bf16.mxu1 %v9069_v5  ;;  %5986 = vmatprep.mubr.msk.f32.mxu0 %vm7572_vm0, %v9025_v13 }
  0x7f   : > { %6021 = vmatprep.mubr.msk.f32.mxu1 %vm7572_vm0, %v9025_v13 }
  0x80   : > { %6923 = vmatpush3.bf16.msra.mxu0 %v7990_v11 }
  0x81   : > { %6947 = vmatpush3.bf16.msra.mxu1 %v7994_v12  ;;  %6924 = vmatprep.subr.bf16.mxu0 %v9069_v5 }
  0x82   : > { %6948 = vmatprep.subr.bf16.mxu1 %v9069_v5 }
  0x84   : > { %6926 = vmatpush3.bf16.msra.mxu0 %v8006_v24 }
  0x85   : > { %6950 = vmatpush3.bf16.msra.mxu1 %v8010_v29  ;;  %6927 = vmatprep.subr.bf16.mxu0 %v9069_v5 }
  0x86   : > { %6951 = vmatprep.subr.bf16.mxu1 %v9069_v5 }
  0x88   : > { %6929 = vmatpush3.bf16.msra.mxu0 %v8018_v40 }
  0x89   : > { %6953 = vmatpush3.bf16.msra.mxu1 %v8022_v41  ;;  %6930 = vmatprep.subr.bf16.mxu0 %v9069_v5 }
  0x8a   : > { %6954 = vmatprep.subr.bf16.mxu1 %v9069_v5 }
  0x8c   : > { %6932 = vmatpush3.bf16.msra.mxu0 %v8030_v52 }
  0x8d   : > { %6956 = vmatpush3.bf16.msra.mxu1 %v8034_v55  ;;  %6933 = vmatprep.subr.bf16.mxu0 %v9069_v5 }
  0x8e   : > { %6957 = vmatprep.subr.bf16.mxu1 %v9069_v5 }
  0x90   : > { %6935 = vmatpush3.bf16.msra.mxu0 %v8042_v3 }
  0x91   : > { %6959 = vmatpush3.bf16.msra.mxu1 %v8046_v4  ;;  %6936 = vmatprep.subr.bf16.mxu0 %v9069_v5 }
  0x92   : > { %6960 = vmatprep.subr.bf16.mxu1 %v9069_v5 }
  0x94   : > { %6938 = vmatpush3.bf16.msra.mxu0 %v8054_v23 }
  0x95   : > { %6962 = vmatpush3.bf16.msra.mxu1 %v8058_v30  ;;  %6939 = vmatprep.subr.bf16.mxu0 %v9069_v5 }
  0x96   : > { %6963 = vmatprep.subr.bf16.mxu1 %v9069_v5 }
  0x98   : > { %6941 = vmatpush3.bf16.msra.mxu0 %v8066_v47 }
  0x99   : > { %6965 = vmatpush3.bf16.msra.mxu1 %v8070_v48  ;;  %6966 = vmatprep.subr.bf16.mxu0 %v9069_v5 }
  0x9a   : > { %6990 = vmatprep.subr.bf16.mxu1 %v9069_v5 }
  0x9b   : > { %5987 = vmatmul.mubr.f32.vlgmr.msra.gmra.mrb[4].mxu0 %v7872_v56 }
  0x9c   : > { %6022 = vmatmul.mubr.f32.vlgmr.msra.gmra.mrb[4].mxu1 %v7872_v56  ;;  %6968 = vmatpush3.bf16.msra.mxu0 %v8078_v2 }
  0x9d   : > { %6992 = vmatpush3.bf16.msra.mxu1 %v8082_v9  ;;  %6969 = vmatprep.subr.bf16.mxu0 %v9069_v5  ;;  %v944_v9 = vld [vmem:[%s7693_s23 + $0x1c8] sm:$0xff] }
  0x9e   : > { %6993 = vmatprep.subr.bf16.mxu1 %v9069_v5  ;;  %6056 = vmatprep.mubr.msk.f32.mxu0 %vm7572_vm0, %v9025_v13 }
  0x9f   : > { %6091 = vmatprep.mubr.msk.f32.mxu1 %vm7572_vm0, %v9025_v13  ;;  %v942_v13 = vld [vmem:[%s7693_s23 + $0x1b8] sm:$0xff] }
  0xa0   : > { %6971 = vmatpush3.bf16.msra.mxu0 %v8092_v34  ;;  %v8124_v49 = vpack.c.bf16 %v942_v13, %v941_v31  ;;  %v930_v31 = vld [vmem:[%s7693_s23 + $0x158] sm:$0xff]  ;;  %v9148_v34 = vmov 0.0  }
  0xa1   : > { %6995 = vmatpush3.bf16.msra.mxu1 %v8096_v37  ;;  %6972 = vmatprep.subr.bf16.mxu0 %v9069_v5  ;;  %v943_v37 = vld [vmem:[%s7693_s23 + $0x1c0] sm:$0xff]  ;;  %v8144_v59 = vpack.c.bf16 %v930_v31, %v929_v22  ;;  %v934_v31 = vld [vmem:[%s7693_s23 + $0x178] sm:$0xff] }
  0xa2   : > { %6996 = vmatprep.subr.bf16.mxu1 %v9069_v5  ;;  %9134 = vst [vmem:[#allocation21_spill] sm:$0xff] %v8124_v49  ;;  %v8136_v13 = vpack.c.bf16 %v944_v9, %v943_v37  ;;  %v931_v37 = vld [vmem:[%s7693_s23 + $0x160] sm:$0xff] }
  0xa3   : > { %9137 = vst [vmem:[#allocation24_spill] sm:$0xff] %v8144_v59  ;;  %v8156_v22 = vpack.c.bf16 %v932_v60, %v931_v37  ;;  %v952_v60 = vld [vmem:[%s9139_s11 + $0x8] sm:$0xff] }
  0xa4   : > { %6974 = vmatpush3.bf16.msra.mxu0 %v8108_v61  ;;  %9136 = vst [vmem:[#allocation23_spill] sm:$0xff] %v8136_v13  ;;  %v946_v61 = vld [vmem:[%s7693_s23 + $0x1d8] sm:$0xff] }
  0xa5   : > { %6998 = vmatpush3.bf16.msra.mxu1 %v8112_v16  ;;  %6975 = vmatprep.subr.bf16.mxu0 %v9069_v5  ;;  %v945_v16 = vld [vmem:[%s7693_s23 + $0x1d0] sm:$0xff]  ;;  %9140 = vst [vmem:[#allocation26_spill] sm:$0xff] %v8156_v22 }
  0xa6   : > { %6999 = vmatprep.subr.bf16.mxu1 %v9069_v5  ;;  %v8148_v9 = vpack.c.bf16 %v946_v61, %v945_v16  ;;  %v933_v16 = vld [vmem:[%s7693_s23 + $0x170] sm:$0xff] }
  0xa7   : > { %v8168_v37 = vpack.c.bf16 %v934_v31, %v933_v16  ;;  %v969_v31 = vld [vmem:[%s9139_s11 + $0x90] sm:$0xff] }
  0xa8   : > { %6977 = vmatpush3.bf16.msra.mxu0 %v8120_v42  ;;  %9138 = vst [vmem:[#allocation25_spill] sm:$0xff] %v8148_v9  ;;  %v948_v42 = vld [vmem:[%s7693_s23 + $0x1e8] sm:$0xff] }
  0xa9   : > { %7001 = vmatpush3.bf16.msra.mxu1 %v8124_v49  ;;  %6978 = vmatprep.subr.bf16.mxu0 %v9069_v5  ;;  %v947_v49 = vld [vmem:[%s7693_s23 + $0x1e0] sm:$0xff]  ;;  %9142 = vst [vmem:[#allocation28_spill] sm:$0xff] %v8168_v37 }
  0xaa   : > { %7002 = vmatprep.subr.bf16.mxu1 %v9069_v5  ;;  %v8160_v61 = vpack.c.bf16 %v948_v42, %v947_v49  ;;  %v951_v49 = vld [vmem:[%s9139_s11] sm:$0xff] }
  0xac   : > { %6980 = vmatpush3.bf16.msra.mxu0 %v8132_v19  ;;  %9141 = vst [vmem:[#allocation27_spill] sm:$0xff] %v8160_v61  ;;  %v950_v19 = vld [vmem:[%s7693_s23 + $0x1f8] sm:$0xff] }
  0xad   : > { %7004 = vmatpush3.bf16.msra.mxu1 %v8136_v13  ;;  %6981 = vmatprep.subr.bf16.mxu0 %v9069_v5  ;;  %v949_v13 = vld [vmem:[%s7693_s23 + $0x1f0] sm:$0xff]  ;;  %s9177_s23 = sld [smem:[#allocation6_spill]] }
  0xae   : > { %7005 = vmatprep.subr.bf16.mxu1 %v9069_v5  ;;  %v8172_v42 = vpack.c.bf16 %v950_v19, %v949_v13  ;;  %v953_v19 = vld [vmem:[%s9139_s11 + $0x10] sm:$0xff]  ;;  %v954_v13 = vld [vmem:[%s9139_s11 + $0x18] sm:$0xff] }
  0xb0   : > { %6983 = vmatpush3.bf16.msra.mxu0 %v8144_v59  ;;  %9143 = vst [vmem:[#allocation29_spill] sm:$0xff] %v8172_v42  ;;  %v968_v59 = vld [vmem:[%s9139_s11 + $0x88] sm:$0xff] }
  0xb1   : > { %7007 = vmatpush3.bf16.msra.mxu1 %v8148_v9  ;;  %6984 = vmatprep.subr.bf16.mxu0 %v9069_v5  ;;  %v967_v9 = vld [vmem:[%s9139_s11 + $0x80] sm:$0xff] }
  0xb2   : > { %7008 = vmatprep.subr.bf16.mxu1 %v9069_v5  ;;  %v8184_v16 = vpack.c.bf16 %v968_v59, %v967_v9  ;;  %v955_v9 = vld [vmem:[%s9139_s11 + $0x20] sm:$0xff] }
  0xb4   : > { %6986 = vmatpush3.bf16.msra.mxu0 %v8156_v22  ;;  %v8180_v22 = vpack.c.bf16 %v952_v60, %v951_v49  ;;  %9145 = vst [vmem:[#allocation31_spill] sm:$0xff] %v8184_v16  ;;  %v8194_v49 = vpack.c.bf16 %v954_v13, %v953_v19  ;;  %v956_v60 = vld [vmem:[%s9139_s11 + $0x28] sm:$0xff]  ;;  %v957_v13 = vld [vmem:[%s9139_s11 + $0x30] sm:$0xff] }
  0xb5   : > { %7010 = vmatpush3.bf16.msra.mxu1 %v8160_v61  ;;  %6987 = vmatprep.subr.bf16.mxu0 %v9069_v5  ;;  %v970_v61 = vld [vmem:[%s9139_s11 + $0x98] sm:$0xff] }
  0xb6   : > { %7011 = vmatprep.subr.bf16.mxu1 %v9069_v5  ;;  %9144 = vst [vmem:[#allocation30_spill] sm:$0xff] %v8180_v22  ;;  %9146 = vst [vmem:[#allocation32_spill] sm:$0xff] %v8194_v49  ;;  %v8198_v59 = vpack.c.bf16 %v970_v61, %v969_v31  ;;  %v8210_v61 = vpack.c.bf16 %v956_v60, %v955_v9  ;;  %v958_v31 = vld [vmem:[%s9139_s11 + $0x38] sm:$0xff]  ;;  %v960_v60 = vld [vmem:[%s9139_s11 + $0x48] sm:$0xff] }
  0xb7   : > { %v8222_v9 = vpack.c.bf16 %v958_v31, %v957_v13  ;;  %v962_v31 = vld [vmem:[%s9139_s11 + $0x58] sm:$0xff] }
  0xb8   : > { %6989 = vmatpush3.bf16.msra.mxu0 %v8168_v37  ;;  %9147 = vst [vmem:[#allocation33_spill] sm:$0xff] %v8198_v59  ;;  %v972_v37 = vld [vmem:[%s9139_s11 + $0xa8] sm:$0xff]  ;;  %9149 = vst [vmem:[#allocation34_spill] sm:$0xff] %v8210_v61 }
  0xb9   : > { %7013 = vmatpush3.bf16.msra.mxu1 %v8172_v42  ;;  %7014 = vmatprep.subr.bf16.mxu0 %v9069_v5  ;;  %v971_v42 = vld [vmem:[%s9139_s11 + $0xa0] sm:$0xff]  ;;  %9151 = vst [vmem:[#allocation36_spill] sm:$0xff] %v8222_v9 }
  0xba   : > { %7038 = vmatprep.subr.bf16.mxu1 %v9069_v5  ;;  %v8214_v19 = vpack.c.bf16 %v972_v37, %v971_v42  ;;  %v959_v42 = vld [vmem:[%s9139_s11 + $0x40] sm:$0xff] }
  0xbb   : > { %6057 = vmatmul.mubr.f32.vlgmr.msra.gmra.mrb[6].mxu0 %v7872_v56  ;;  %v8234_v13 = vpack.c.bf16 %v960_v60, %v959_v42  ;;  %v964_v60 = vld [vmem:[%s9139_s11 + $0x68] sm:$0xff] }
  0xbc   : > { %6092 = vmatmul.mubr.f32.vlgmr.msra.gmra.mrb[6].mxu1 %v7872_v56  ;;  %7016 = vmatpush3.bf16.msra.mxu0 %v8180_v22  ;;  %9150 = vst [vmem:[#allocation35_spill] sm:$0xff] %v8214_v19  ;;  %v974_v22 = vld [vmem:[%s9139_s11 + $0xb8] sm:$0xff] }
  0xbd   : > { %7040 = vmatpush3.bf16.msra.mxu1 %v8184_v16  ;;  %7017 = vmatprep.subr.bf16.mxu0 %v9069_v5  ;;  %v973_v16 = vld [vmem:[%s9139_s11 + $0xb0] sm:$0xff]  ;;  %9153 = vst [vmem:[#allocation38_spill] sm:$0xff] %v8234_v13 }
  0xbe   : > { %7041 = vmatprep.subr.bf16.mxu1 %v9069_v5  ;;  %6126 = vmatprep.mubr.msk.f32.mxu0 %vm7572_vm0, %v9148_v34  ;;  %v8226_v37 = vpack.c.bf16 %v974_v22, %v973_v16  ;;  %v961_v16 = vld [vmem:[%s9139_s11 + $0x50] sm:$0xff] }
  0xbf   : > { %6161 = vmatprep.mubr.msk.f32.mxu1 %vm7572_vm0, %v9148_v34  ;;  %v8246_v42 = vpack.c.bf16 %v962_v31, %v961_v16  ;;  %v966_v31 = vld [vmem:[%s9139_s11 + $0x78] sm:$0xff] }
  0xc0   : > { %7019 = vmatpush3.bf16.msra.mxu0 %v8194_v49  ;;  %9152 = vst [vmem:[#allocation37_spill] sm:$0xff] %v8226_v37  ;;  %v976_v49 = vld [vmem:[%s9139_s11 + $0xc8] sm:$0xff] }
  0xc1   : > { %7043 = vmatpush3.bf16.msra.mxu1 %v8198_v59  ;;  %7020 = vmatprep.subr.bf16.mxu0 %v9069_v5  ;;  %v975_v59 = vld [vmem:[%s9139_s11 + $0xc0] sm:$0xff]  ;;  %9155 = vst [vmem:[#allocation40_spill] sm:$0xff] %v8246_v42 }
  0xc2   : > { %7044 = vmatprep.subr.bf16.mxu1 %v9069_v5  ;;  %v8238_v22 = vpack.c.bf16 %v976_v49, %v975_v59  ;;  %v963_v59 = vld [vmem:[%s9139_s11 + $0x60] sm:$0xff] }
  0xc3   : > { %v8258_v16 = vpack.c.bf16 %v964_v60, %v963_v59  ;;  %v984_v60 = vld [vmem:[%s9139_s11 + $0x108] sm:$0xff] }
  0xc4   : > { %7022 = vmatpush3.bf16.msra.mxu0 %v8210_v61  ;;  %9154 = vst [vmem:[#allocation39_spill] sm:$0xff] %v8238_v22  ;;  %v978_v61 = vld [vmem:[%s9139_s11 + $0xd8] sm:$0xff] }
  0xc5   : > { %7046 = vmatpush3.bf16.msra.mxu1 %v8214_v19  ;;  %7023 = vmatprep.subr.bf16.mxu0 %v9069_v5  ;;  %v977_v19 = vld [vmem:[%s9139_s11 + $0xd0] sm:$0xff]  ;;  %9157 = vst [vmem:[#allocation42_spill] sm:$0xff] %v8258_v16 }
  0xc6   : > { %7047 = vmatprep.subr.bf16.mxu1 %v9069_v5  ;;  %v8250_v49 = vpack.c.bf16 %v978_v61, %v977_v19  ;;  %v965_v19 = vld [vmem:[%s9139_s11 + $0x70] sm:$0xff] }
  0xc7   : > { %v8270_v59 = vpack.c.bf16 %v966_v31, %v965_v19  ;;  %v1001_v31 = vld [vmem:[%s9139_s11 + $0x190] sm:$0xff] }
  0xc8   : > { %7025 = vmatpush3.bf16.msra.mxu0 %v8222_v9  ;;  %9156 = vst [vmem:[#allocation41_spill] sm:$0xff] %v8250_v49  ;;  %v980_v9 = vld [vmem:[%s9139_s11 + $0xe8] sm:$0xff] }
  0xc9   : > { %7049 = vmatpush3.bf16.msra.mxu1 %v8226_v37  ;;  %7026 = vmatprep.subr.bf16.mxu0 %v9069_v5  ;;  %v979_v37 = vld [vmem:[%s9139_s11 + $0xe0] sm:$0xff]  ;;  %9159 = vst [vmem:[#allocation44_spill] sm:$0xff] %v8270_v59 }
  0xca   : > { %7050 = vmatprep.subr.bf16.mxu1 %v9069_v5  ;;  %v8262_v61 = vpack.c.bf16 %v980_v9, %v979_v37  ;;  %v983_v37 = vld [vmem:[%s9139_s11 + $0x100] sm:$0xff] }
  0xcc   : > { %7028 = vmatpush3.bf16.msra.mxu0 %v8234_v13  ;;  %9158 = vst [vmem:[#allocation43_spill] sm:$0xff] %v8262_v61  ;;  %v982_v13 = vld [vmem:[%s9139_s11 + $0xf8] sm:$0xff] }
  0xcd   : > { %7052 = vmatpush3.bf16.msra.mxu1 %v8238_v22  ;;  %7029 = vmatprep.subr.bf16.mxu0 %v9069_v5  ;;  %v981_v22 = vld [vmem:[%s9139_s11 + $0xf0] sm:$0xff] }
  0xce   : > { %7053 = vmatprep.subr.bf16.mxu1 %v9069_v5  ;;  %v8274_v9 = vpack.c.bf16 %v982_v13, %v981_v22  ;;  %v985_v13 = vld [vmem:[%s9139_s11 + $0x110] sm:$0xff]  ;;  %v986_v22 = vld [vmem:[%s9139_s11 + $0x118] sm:$0xff] }
  0xd0   : > { %7031 = vmatpush3.bf16.msra.mxu0 %v8246_v42  ;;  %9160 = vst [vmem:[#allocation45_spill] sm:$0xff] %v8274_v9  ;;  %v1000_v42 = vld [vmem:[%s9139_s11 + $0x188] sm:$0xff] }
  0xd1   : > { %7055 = vmatpush3.bf16.msra.mxu1 %v8250_v49  ;;  %7032 = vmatprep.subr.bf16.mxu0 %v9069_v5  ;;  %v999_v49 = vld [vmem:[%s9139_s11 + $0x180] sm:$0xff] }
  0xd2   : > { %7056 = vmatprep.subr.bf16.mxu1 %v9069_v5  ;;  %v8286_v19 = vpack.c.bf16 %v1000_v42, %v999_v49  ;;  %v987_v49 = vld [vmem:[%s9139_s11 + $0x120] sm:$0xff] }
  0xd4   : > { %7034 = vmatpush3.bf16.msra.mxu0 %v8258_v16  ;;  %v8282_v16 = vpack.c.bf16 %v984_v60, %v983_v37  ;;  %9162 = vst [vmem:[#allocation47_spill] sm:$0xff] %v8286_v19  ;;  %v8296_v37 = vpack.c.bf16 %v986_v22, %v985_v13  ;;  %v988_v60 = vld [vmem:[%s9139_s11 + $0x128] sm:$0xff]  ;;  %v989_v22 = vld [vmem:[%s9139_s11 + $0x130] sm:$0xff] }
  0xd5   : > { %7058 = vmatpush3.bf16.msra.mxu1 %v8262_v61  ;;  %7035 = vmatprep.subr.bf16.mxu0 %v9069_v5  ;;  %v1002_v61 = vld [vmem:[%s9139_s11 + $0x198] sm:$0xff] }
  0xd6   : > { %7059 = vmatprep.subr.bf16.mxu1 %v9069_v5  ;;  %9161 = vst [vmem:[#allocation46_spill] sm:$0xff] %v8282_v16  ;;  %9163 = vst [vmem:[#allocation48_spill] sm:$0xff] %v8296_v37  ;;  %v8300_v42 = vpack.c.bf16 %v1002_v61, %v1001_v31  ;;  %v8312_v61 = vpack.c.bf16 %v988_v60, %v987_v49  ;;  %v990_v31 = vld [vmem:[%s9139_s11 + $0x138] sm:$0xff]  ;;  %v992_v60 = vld [vmem:[%s9139_s11 + $0x148] sm:$0xff] }
  0xd7   : > { %v8324_v49 = vpack.c.bf16 %v990_v31, %v989_v22  ;;  %v994_v31 = vld [vmem:[%s9139_s11 + $0x158] sm:$0xff] }
  0xd8   : > { %7037 = vmatpush3.bf16.msra.mxu0 %v8270_v59  ;;  %9164 = vst [vmem:[#allocation49_spill] sm:$0xff] %v8300_v42  ;;  %v1004_v59 = vld [vmem:[%s9139_s11 + $0x1a8] sm:$0xff]  ;;  %9165 = vst [vmem:[#allocation50_spill] sm:$0xff] %v8312_v61 }
  0xd9   : > { %7061 = vmatpush3.bf16.msra.mxu1 %v8274_v9  ;;  %7062 = vmatprep.subr.bf16.mxu0 %v9069_v5  ;;  %v1003_v9 = vld [vmem:[%s9139_s11 + $0x1a0] sm:$0xff]  ;;  %9167 = vst [vmem:[#allocation52_spill] sm:$0xff] %v8324_v49 }
  0xda   : > { %7086 = vmatprep.subr.bf16.mxu1 %v9069_v5  ;;  %v8316_v13 = vpack.c.bf16 %v1004_v59, %v1003_v9  ;;  %v991_v9 = vld [vmem:[%s9139_s11 + $0x140] sm:$0xff] }
  0xdb   : > { %6127 = vmatmul.mubr.f32.vlgmr.msra.gmra.mrb[8].mxu0 %v7872_v56  ;;  %v8336_v22 = vpack.c.bf16 %v992_v60, %v991_v9  ;;  %v996_v60 = vld [vmem:[%s9139_s11 + $0x168] sm:$0xff] }
  0xdc   : > { %6162 = vmatmul.mubr.f32.vlgmr.msra.gmra.mrb[8].mxu1 %v7872_v56  ;;  %7064 = vmatpush3.bf16.msra.mxu0 %v8282_v16  ;;  %9166 = vst [vmem:[#allocation51_spill] sm:$0xff] %v8316_v13  ;;  %v1006_v16 = vld [vmem:[%s9139_s11 + $0x1b8] sm:$0xff] }
  0xdd   : > { %7088 = vmatpush3.bf16.msra.mxu1 %v8286_v19  ;;  %7065 = vmatprep.subr.bf16.mxu0 %v9069_v5  ;;  %v1005_v19 = vld [vmem:[%s9139_s11 + $0x1b0] sm:$0xff]  ;;  %9169 = vst [vmem:[#allocation54_spill] sm:$0xff] %v8336_v22 }
  0xde   : > { %7089 = vmatprep.subr.bf16.mxu1 %v9069_v5  ;;  %6196 = vmatprep.mubr.msk.f32.mxu0 %vm7572_vm0, %v9148_v34  ;;  %v8328_v59 = vpack.c.bf16 %v1006_v16, %v1005_v19  ;;  %v993_v19 = vld [vmem:[%s9139_s11 + $0x150] sm:$0xff] }
  0xdf   : > { %6231 = vmatprep.mubr.msk.f32.mxu1 %vm7572_vm0, %v9148_v34  ;;  %v8348_v9 = vpack.c.bf16 %v994_v31, %v993_v19  ;;  %v997_v31 = vld [vmem:[%s9139_s11 + $0x170] sm:$0xff] }
  0xe0   : > { %7067 = vmatpush3.bf16.msra.mxu0 %v8296_v37  ;;  %9168 = vst [vmem:[#allocation53_spill] sm:$0xff] %v8328_v59  ;;  %v1008_v37 = vld [vmem:[%s9139_s11 + $0x1c8] sm:$0xff] }
  0xe1   : > { %7091 = vmatpush3.bf16.msra.mxu1 %v8300_v42  ;;  %7068 = vmatprep.subr.bf16.mxu0 %v9069_v5  ;;  %v1007_v42 = vld [vmem:[%s9139_s11 + $0x1c0] sm:$0xff]  ;;  %9171 = vst [vmem:[#allocation56_spill] sm:$0xff] %v8348_v9 }
  0xe2   : > { %7092 = vmatprep.subr.bf16.mxu1 %v9069_v5  ;;  %v8340_v16 = vpack.c.bf16 %v1008_v37, %v1007_v42  ;;  %v995_v42 = vld [vmem:[%s9139_s11 + $0x160] sm:$0xff] }
  0xe4   : > { %7070 = vmatpush3.bf16.msra.mxu0 %v8312_v61  ;;  %9170 = vst [vmem:[#allocation55_spill] sm:$0xff] %v8340_v16  ;;  %v1010_v61 = vld [vmem:[%s9139_s11 + $0x1d8] sm:$0xff] }
  0xe5   : > { %7094 = vmatpush3.bf16.msra.mxu1 %v8316_v13  ;;  %7071 = vmatprep.subr.bf16.mxu0 %v9069_v5  ;;  %v1009_v13 = vld [vmem:[%s9139_s11 + $0x1d0] sm:$0xff] }
  0xe6   : > { %7095 = vmatprep.subr.bf16.mxu1 %v9069_v5  ;;  %v8352_v37 = vpack.c.bf16 %v1010_v61, %v1009_v13  ;;  %v1013_v61 = vld [vmem:[%s9139_s11 + $0x1f0] sm:$0xff]  ;;  %v1014_v13 = vld [vmem:[%s9139_s11 + $0x1f8] sm:$0xff] }
  0xe8   : > { %7073 = vmatpush3.bf16.msra.mxu0 %v8324_v49  ;;  %9172 = vst [vmem:[#allocation57_spill] sm:$0xff] %v8352_v37  ;;  %v1012_v49 = vld [vmem:[%s9139_s11 + $0x1e8] sm:$0xff] }
  0xe9   : > { %7097 = vmatpush3.bf16.msra.mxu1 %v8328_v59  ;;  %7074 = vmatprep.subr.bf16.mxu0 %v9069_v5  ;;  %v1011_v59 = vld [vmem:[%s9139_s11 + $0x1e0] sm:$0xff] }
  0xea   : > { %7098 = vmatprep.subr.bf16.mxu1 %v9069_v5  ;;  %v8364_v19 = vpack.c.bf16 %v1012_v49, %v1011_v59 }
  0xec   : > { %7076 = vmatpush3.bf16.msra.mxu0 %v8336_v22  ;;  %v8360_v22 = vpack.c.bf16 %v996_v60, %v995_v42  ;;  %9174 = vst [vmem:[#allocation59_spill] sm:$0xff] %v8364_v19  ;;  %v8376_v42 = vpack.c.bf16 %v1014_v13, %v1013_v61 }
  0xed   : > { %7100 = vmatpush3.bf16.msra.mxu1 %v8340_v16  ;;  %7077 = vmatprep.subr.bf16.mxu0 %v9069_v5  ;;  %v998_v16 = vld [vmem:[%s9139_s11 + $0x178] sm:$0xff] }
  0xee   : > { %7101 = vmatprep.subr.bf16.mxu1 %v9069_v5  ;;  %9173 = vst [vmem:[#allocation58_spill] sm:$0xff] %v8360_v22  ;;  %v8372_v2 = vpack.c.bf16 %v998_v16, %v997_v31  ;;  %9176 = vst [vmem:[#allocation61_spill] sm:$0xff] %v8376_v42 }
  0xf0   : > { %7079 = vmatpush3.bf16.msra.mxu0 %v8348_v9  ;;  %9175 = vst [vmem:[#allocation60_spill] sm:$0xff] %v8372_v2  ;;  %v8400_v9 = vld [vmem:[%s9177_s23 + $0x1] ss:$0 sm:$0xff] }
  0xf1   : > { %7103 = vmatpush3.bf16.msra.mxu1 %v8352_v37  ;;  %7080 = vmatprep.subr.bf16.mxu0 %v9069_v5  ;;  %9181 = vst [vmem:[#allocation65_spill] sm:$0xff] %v8400_v9 }
  0xf2   : > { %7104 = vmatprep.subr.bf16.mxu1 %v9069_v5 }
  0xf4   : > { %7082 = vmatpush3.bf16.msra.mxu0 %v8360_v22 }
  0xf5   : > { %7106 = vmatpush3.bf16.msra.mxu1 %v8364_v19  ;;  %7083 = vmatprep.subr.bf16.mxu0 %v9069_v5  ;;  %v8393_v19 = vld [vmem:[%s7708_s21 + $0x1] ss:$0 sm:$0xff] }
  0xf6   : > { %7107 = vmatprep.subr.bf16.mxu1 %v9069_v5  ;;  %9179 = vst [vmem:[#allocation63_spill] sm:$0xff] %v8393_v19 }
  0xf8   : > { %7085 = vmatpush3.bf16.msra.mxu0 %v8372_v2  ;;  %v8396_v2 = vld [vmem:[%s9177_s23] ss:$0 sm:$0xff] }
  0xf9   : > { %7109 = vmatpush3.bf16.msra.mxu1 %v8376_v42  ;;  %6234 = vmatprep.subr.mxu0 %v9148_v34  ;;  %v8390_v42 = vld [vmem:[%s7708_s21] ss:$0 sm:$0xff]  ;;  %9180 = vst [vmem:[#allocation64_spill] sm:$0xff] %v8396_v2 }
  0xfa   : > { %6239 = vmatprep.subr.mxu1 %v9148_v34  ;;  %9178 = vst [vmem:[#allocation62_spill] sm:$0xff] %v8390_v42 }
  0xfb   : > { %6197 = vmatmul.mubr.f32.vlgmr.msra.gmra.mrb[10].mxu0 %v7872_v56 }
  0xfc   : > { %6232 = vmatmul.mubr.f32.vlgmr.msra.gmra.mrb[10].mxu1 %v7872_v56  ;;  %6236 = vmatprep.mubr.msk.f32.mxu0 %vm7572_vm0, %v9148_v34 }
  0xfd   : > { %6241 = vmatprep.mubr.msk.f32.mxu1 %vm7572_vm0, %v9148_v34 }
 0x12e   : > { %v1133_v49 = vpop.f32.mrb[0].mxu0 }
 0x12f   : > { %v5848_v59 = vpop.f32.mrb[1].mxu0  ;;  %v1203_v16 = vpop.f32.mrb[0].mxu1 }
 0x130   : > { %v5883_v60 = vpop.f32.mrb[1].mxu1 }
 0x14e   : > { %v1273_v31 = vpop.f32.mrb[2].mxu0 }
 0x14f   : > { %v5918_v61 = vpop.f32.mrb[3].mxu0  ;;  %v1343_v13 = vpop.f32.mrb[2].mxu1 }
 0x150   : > { %v5953_v5 = vpop.f32.mrb[3].mxu1  ;;  %v1134_v61 = vadd.f32 %v8396_v2, %v1133_v49 }
 0x16e   : > { %v1437_v56 = vpop.f32.mrb[4].mxu0 }
 0x16f   : > { %v1438_v37 = vadd.f32 %v8390_v42, %v1437_v56  ;;  %v1507_v22 = vpop.f32.mrb[4].mxu1  ;;  %v5988_v59 = vpop.f32.mrb[5].mxu0  ;;  %v1204_v56 = vadd.f32 %v8400_v9, %v1203_v16 }
 0x170   : > { %v1508_v60 = vadd.f32 %v8393_v19, %v1507_v22  ;;  %v6023_v5 = vpop.f32.mrb[5].mxu1  ;;  %v8416_v22 = vld [vmem:[%s7708_s21 + $0x2] ss:$0 sm:$0xff] }
 0x171   : > { %6235 = vmatpush3.xpose.msk.msra.mxu0 %vm1955_vm1, %v1438_v37  ;;  %9182 = vst [vmem:[#allocation66_spill] sm:$0xff] %v8416_v22  ;;  %v8419_v37 = vld [vmem:[%s7708_s21 + $0x3] ss:$0 sm:$0xff]  ;;  %v8422_v59 = vld [vmem:[%s9177_s23 + $0x2] ss:$0 sm:$0xff] }
 0x172   : > { %6240 = vmatpush3.xpose.msk.msra.mxu1 %vm1955_vm1, %v1508_v60  ;;  %6244 = vmatprep.subr.mxu0 %v9148_v34  ;;  %9183 = vst [vmem:[#allocation67_spill] sm:$0xff] %v8419_v37  ;;  %9184 = vst [vmem:[#allocation68_spill] sm:$0xff] %v8422_v59  ;;  %v1274_v19 = vadd.f32 %v8422_v59, %v1273_v31  ;;  %v8445_v31 = vld [vmem:[%s7713_s3 + $0x1] ss:$0 sm:$0xff] }
 0x173   : > { %6249 = vmatprep.subr.mxu1 %v9148_v34  ;;  %9187 = vst [vmem:[#allocation71_spill] sm:$0xff] %v8445_v31 }
 0x174   : > { %6237 = vmatmul.mubr.msk.f32.vlgmr.msra.gmra.mrb[12].mxu0 %vm1955_vm1, %v1134_v61  ;;  %v8426_v61 = vld [vmem:[%s9177_s23 + $0x3] ss:$0 sm:$0xff] }
 0x175   : > { %6242 = vmatmul.mubr.msk.f32.vlgmr.msra.gmra.mrb[12].mxu1 %vm1955_vm1, %v1204_v56  ;;  %6246 = vmatprep.mubr.msk.f32.mxu0 %vm7572_vm0, %v9148_v34  ;;  %9185 = vst [vmem:[#allocation69_spill] sm:$0xff] %v8426_v61  ;;  %v1344_v2 = vadd.f32 %v8426_v61, %v1343_v13 }
 0x176   : > { %6251 = vmatprep.mubr.msk.f32.mxu1 %vm7572_vm0, %v9148_v34 }
 0x18e   : > { %v1577_v49 = vpop.f32.mrb[6].mxu0 }
 0x18f   : > { %v1578_v16 = vadd.f32 %v8416_v22, %v1577_v49  ;;  %v1647_v60 = vpop.f32.mrb[6].mxu1  ;;  %v6058_v5 = vpop.f32.mrb[7].mxu0 }
 0x190   : > { %v1648_v56 = vadd.f32 %v8419_v37, %v1647_v60  ;;  %v6093_v9 = vpop.f32.mrb[7].mxu1 }
 0x191   : > { %6245 = vmatpush3.xpose.msk.msra.mxu0 %vm1955_vm1, %v1578_v16  ;;  %v8442_v9 = vld [vmem:[%s7713_s3] ss:$0 sm:$0xff] }
 0x192   : > { %6250 = vmatpush3.xpose.msk.msra.mxu1 %vm1955_vm1, %v1648_v56  ;;  %6254 = vmatprep.subr.mxu0 %v9148_v34  ;;  %9186 = vst [vmem:[#allocation70_spill] sm:$0xff] %v8442_v9 }
 0x193   : > { %6259 = vmatprep.subr.mxu1 %v9148_v34 }
 0x194   : > { %6247 = vmatmul.mubr.msk.f32.vlgmr.msra.gmra.mrb[14].mxu0 %vm1955_vm1, %v1274_v19 }
 0x195   : > { %6252 = vmatmul.mubr.msk.f32.vlgmr.msra.gmra.mrb[14].mxu1 %vm1955_vm1, %v1344_v2  ;;  %6256 = vmatprep.mubr.msk.f32.mxu0 %vm7572_vm0, %v9148_v34 }
 0x196   : > { %6261 = vmatprep.mubr.msk.f32.mxu1 %vm7572_vm0, %v9148_v34 }
 0x1ae   : > { %v1741_v49 = vpop.f32.mrb[8].mxu0 }
 0x1af   : > { %v1811_v16 = vpop.f32.mrb[8].mxu1  ;;  %v1742_v13 = vadd.f32 %v8442_v9, %v1741_v49  ;;  %v6128_v60 = vpop.f32.mrb[9].mxu0  ;;  %v2264_v49 = vld [vmem:[%s9188_s22] sm:$0xff] }
 0x1b0   : > { %v1812_v5 = vadd.f32 %v8445_v31, %v1811_v16  ;;  %v6163_v19 = vpop.f32.mrb[9].mxu1 }
 0x1b1   : > { %6255 = vmatpush3.msra.mxu0 %v1742_v13 }
 0x1b2   : > { %6260 = vmatpush3.msra.mxu1 %v1812_v5  ;;  %6264 = vmatprep.subr.mxu0 %v9148_v34 }
 0x1b3   : > { %6269 = vmatprep.subr.mxu1 %v9148_v34 }
 0x1ce   : > { %v8451_v2 = vpop.f32.mrb[10].mxu0 }
 0x1cf   : > { %v8453_v56 = vpop.f32.mrb[10].mxu1  ;;  %v6198_v61 = vpop.f32.mrb[11].mxu0 }
 0x1d0   : > { %v6233_v37 = vpop.f32.mrb[11].mxu1 }
 0x247   : > { %v2028_v59 = vpop.f32.mrb[12].mxu0 }
 0x248   : > { %v2104_v22 = vpop.f32.mrb[12].mxu1  ;;  %v6238_v42 = vpop.f32.mrb[13].mxu0  ;;  %v2260_v16 = vmul.f32 0.17677669, %v2028_v59 }
 0x249   : > { %v2261_v13 = vmul.f32 0.17677669, %v2104_v22  ;;  %v6243_v60 = vpop.f32.mrb[13].mxu1 }
 0x24a   : > { %v2265_v31 = vadd.f32 %v2264_v49, %v2260_v16 }
 0x24b   : > { %v2266_v5 = vadd.f32 %v2264_v49, %v2261_v13 }
 0x24c   : > { %v2270_v9 = vsel %vm2269_vm2, %v2265_v31, -inf }
 0x24d   : > { %v2273_v19 = vsel %vm2269_vm2, %v2266_v5, -inf }
 0x24e   : > { %2274 = vmax.xlane.f32.xlu0 %v2273_v19 }
 0x252   : > { %2271 = vmax.xlane.f32.xlu0 %v2270_v9 }
 0x267   : > { %v2180_v37 = vpop.f32.mrb[14].mxu0 }
 0x268   : > { %v2262_v61 = vmul.f32 0.17677669, %v2180_v37  ;;  %v2256_v48 = vpop.f32.mrb[14].mxu1  ;;  %v6248_v42 = vpop.f32.mrb[15].mxu0 }
 0x269   : > { %v2263_v30 = vmul.f32 0.17677669, %v2256_v48  ;;  %v6253_v47 = vpop.f32.mrb[15].mxu1 }
 0x26a   : > { %v2267_v4 = vadd.f32 %v2264_v49, %v2262_v61 }
 0x26b   : > { %v2268_v22 = vadd.f32 %v2264_v49, %v2263_v30 }
 0x26c   : > { %v2276_v59 = vsel %vm2269_vm2, %v2267_v4, -inf }
 0x26d   : > { %2277 = vmax.xlane.f32.xlu1 %v2276_v59  ;;  %v2279_v13 = vsel %vm2269_vm2, %v2268_v22, -inf }
 0x271   : > { %2280 = vmax.xlane.f32.xlu1 %v2279_v13 }
 0x2db   : > { %v2275_v60 = vpop.xlane.xlu0 %2274 }
 0x2dc   : > { %v2283_v16 = vsub.f32 %v2266_v5, %v2275_v60 }
 0x2de   : > { %v2288_v19 = vmul.f32 1.442695, %v2283_v16 }
 0x2df   : > { %v2272_v23 = vpop.xlane.xlu0 %2271 }
 0x2e0   : > { %7521 = vpow2.f32 %v2288_v19  ;;  %v2282_v9 = vsub.f32 %v2265_v31, %v2272_v23 }
 0x2e2   : > { %v2286_v55 = vmul.f32 1.442695, %v2282_v9 }
 0x2e4   : > { %7523 = vpow2.f32 %v2286_v55 }
 0x2ea   : > { %v7522_v37 = vpop.eup %7521 }
 0x2eb   : > { %v2297_v48 = vsel %vm2269_vm2, %v7522_v37, 0.0 }
 0x2ec   : > { %2298 = vadd.xlane.f32.xlu0 %v2297_v48 }
 0x2ee   : > { %v7524_v47 = vpop.eup %7523 }
 0x2ef   : > { %v2294_v61 = vsel %vm2269_vm2, %v7524_v47, 0.0 }
 0x2f0   : > { %2295 = vadd.xlane.f32.xlu1 %v2294_v61  ;;  %v8472_v61 = vld [vmem:[%s7713_s3 + $0x2] ss:$0 sm:$0xff] }
 0x2fa   : > { %v2278_v30 = vpop.xlane.xlu1 %2277 }
 0x2fb   : > { %v2284_v49 = vsub.f32 %v2267_v4, %v2278_v30  ;;  %v8467_v4 = vld [vmem:[%s7713_s3 + $0x3] ss:$0 sm:$0xff] }
 0x2fd   : > { %v2290_v42 = vmul.f32 1.442695, %v2284_v49 }
 0x2fe   : > { %v2281_v59 = vpop.xlane.xlu1 %2280 }
 0x2ff   : > { %7525 = vpow2.f32 %v2290_v42  ;;  %v2285_v5 = vsub.f32 %v2268_v22, %v2281_v59  ;;  %v1952_v22 = vadd.f32 %v8467_v4, %v8453_v56  ;;  %v9189_v42 = vmov 0.0|0.0  }
 0x301   : > { %v2292_v13 = vmul.f32 1.442695, %v2285_v5  ;;  %v1032_v5 = vld [vmem:[%s7723_s27 + $0x28] sm:$0xff] }
 0x303   : > { %7527 = vpow2.f32 %v2292_v13 }
 0x309   : > { %v7526_v23 = vpop.eup %7525 }
 0x30a   : > { %v2300_v55 = vsel %vm2269_vm2, %v7526_v23, 0.0 }
 0x30b   : > { %2301 = vadd.xlane.f32.xlu0 %v2300_v55 }
 0x30d   : > { %v7528_v31 = vpop.eup %7527 }
 0x30e   : > { %v2303_v60 = vsel %vm2269_vm2, %v7528_v31, 0.0 }
 0x30f   : > { %2304 = vadd.xlane.f32.xlu1 %v2303_v60 }
 0x379   : > { %v2299_v16 = vpop.xlane.xlu0 %2298 }
 0x37a   : > { %7529 = vrcp.f32 %v2299_v16  ;;  %v1034_v16 = vld [vmem:[%s7723_s27 + $0x38] sm:$0xff] }
 0x37d   : > { %v2296_v19 = vpop.xlane.xlu1 %2295 }
 0x37e   : > { %7531 = vrcp.f32 %v2296_v19  ;;  %v1027_v19 = vld [vmem:[%s7723_s27] sm:$0xff] }
 0x384   : > { %v7530_v9 = vpop.eup %7529 }
 0x385   : > { %v2311_v48 = vmul.f32 %v7530_v9, %v7522_v37  ;;  %v1882_v37 = vadd.f32 %v8472_v61, %v8451_v2  ;;  %v1033_v2 = vld [vmem:[%s7723_s27 + $0x30] sm:$0xff]  ;;  %v1028_v9 = vld [vmem:[%s7723_s27 + $0x8] sm:$0xff] }
 0x387   : > { %6262 = vmatmul.mubr.msk.f32.vlgmr.msra.gmra.mrb[16].mxu1 %vm2269_vm2, %v2311_v48 }
 0x388   : > { %v7532_v30 = vpop.eup %7531  ;;  %6270 = vmatpush3.msra.mxu1 %v1952_v22  ;;  %6271 = vmatprep.mubr.msk.f32.mxu1 %vm7572_vm0, %v9148_v34  ;;  %v8494_v22 = vpack.c.bf16 %v1034_v16, %v1033_v2  ;;  %v1039_v2 = vld [vmem:[%s7723_s27 + $0x60] sm:$0xff] }
 0x389   : > { %v2310_v49 = vmul.f32 %v7532_v30, %v7524_v47  ;;  %7116 = vmatprep.subr.bf16.mxu1 %v9189_v42  ;;  %v1031_v47 = vld [vmem:[%s7723_s27 + $0x20] sm:$0xff]  ;;  %v8496_v30 = vpack.c.bf16 %v1028_v9, %v1027_v19 }
 0x38a   : > { %v8486_v55 = vpack.c.bf16 %v1032_v5, %v1031_v47  ;;  %v1037_v5 = vld [vmem:[%s7723_s27 + $0x50] sm:$0xff] }
 0x38b   : > { %6257 = vmatmul.mubr.msk.f32.vlgmr.msra.gmra.mrb[16].mxu0 %vm2269_vm2, %v2310_v49  ;;  %v1030_v49 = vld [vmem:[%s7723_s27 + $0x18] sm:$0xff] }
 0x38c   : > { %6265 = vmatpush3.msra.mxu0 %v1882_v37  ;;  %6266 = vmatprep.mubr.msk.f32.mxu0 %vm7572_vm0, %v9148_v34 }
 0x38d   : > { %7110 = vmatprep.subr.bf16.mxu0 %v9189_v42 }
 0x398   : > { %v2302_v56 = vpop.xlane.xlu0 %2301 }
 0x399   : > { %7533 = vrcp.f32 %v2302_v56  ;;  %v1035_v56 = vld [vmem:[%s7723_s27 + $0x40] sm:$0xff] }
 0x39c   : > { %v2305_v59 = vpop.xlane.xlu1 %2304 }
 0x39d   : > { %7535 = vrcp.f32 %v2305_v59  ;;  %v1036_v59 = vld [vmem:[%s7723_s27 + $0x48] sm:$0xff] }
 0x39e   : > { %v8516_v47 = vpack.c.bf16 %v1036_v59, %v1035_v56 }
 0x3a3   : > { %v7534_v13 = vpop.eup %7533 }
 0x3a4   : > { %v2312_v60 = vmul.f32 %v7534_v13, %v7526_v23  ;;  %v1038_v13 = vld [vmem:[%s7723_s27 + $0x58] sm:$0xff] }
 0x3a5   : > { %v8524_v9 = vpack.c.bf16 %v1038_v13, %v1037_v5 }
 0x3a6   : > { %6267 = vmatmul.mubr.msk.f32.vlgmr.msra.gmra.mrb[18].mxu0 %vm2269_vm2, %v2312_v60  ;;  %v1040_v60 = vld [vmem:[%s7723_s27 + $0x68] sm:$0xff] }
 0x3a7   : > { %v7536_v48 = vpop.eup %7535  ;;  %7112 = vmatpush3.bf16.msra.mxu0 %v8486_v55  ;;  %6282 = vmatprep.mubr.msk.f32.mxu0 %vm7572_vm0, %v9148_v34 }
 0x3a8   : > { %v2313_v23 = vmul.f32 %v7536_v48, %v7528_v31  ;;  %7113 = vmatprep.subr.bf16.mxu0 %v9189_v42  ;;  %v1029_v31 = vld [vmem:[%s7723_s27 + $0x10] sm:$0xff]  ;;  %v8526_v48 = vpack.c.bf16 %v1040_v60, %v1039_v2 }
 0x3a9   : > { %v8510_v37 = vpack.c.bf16 %v1030_v49, %v1029_v31  ;;  %v1042_v31 = vld [vmem:[%s7723_s27 + $0x78] sm:$0xff] }
 0x3aa   : > { %6272 = vmatmul.mubr.msk.f32.vlgmr.msra.gmra.mrb[18].mxu1 %vm2269_vm2, %v2313_v23  ;;  %v1041_v23 = vld [vmem:[%s7723_s27 + $0x70] sm:$0xff] }
 0x3ab   : > { %7115 = vmatpush3.bf16.msra.mxu0 %v8494_v22  ;;  %7118 = vmatpush3.bf16.msra.mxu1 %v8496_v30  ;;  %v8536_v59 = vpack.c.bf16 %v1042_v31, %v1041_v23  ;;  %v9233_v23 = vld [vmem:[#allocation52_spill] sm:$0xff]  ;;  %v9234_v31 = vld [vmem:[#allocation51_spill] sm:$0xff] }
 0x3ac   : > { %7119 = vmatprep.subr.bf16.mxu1 %v9189_v42  ;;  %6293 = vmatprep.mubr.msk.f32.mxu1 %vm7572_vm0, %v9148_v34 }
 0x3ad   : > { %7122 = vmatprep.subr.bf16.mxu0 %v9189_v42 }
 0x3af   : > { %7121 = vmatpush3.bf16.msra.mxu1 %v8510_v37 }
 0x3b0   : > { %7128 = vmatprep.subr.bf16.mxu1 %v9189_v42 }
 0x45a   : > { %v2456_v16 = vpop.f32.mrb[16].mxu1 }
 0x45b   : > { %v6263_v19 = vpop.f32.mrb[17].mxu1  ;;  %6283 = vmatmul.mubr.msk.f32.vlgmr.msra.gmra.mrb[20].mxu0 %vm1955_vm1, %v2456_v16  ;;  %v9231_v16 = vld [vmem:[#allocation50_spill] sm:$0xff] }
 0x45c   : > { %7124 = vmatpush3.bf16.msra.mxu0 %v8516_v47  ;;  %6304 = vmatprep.mubr.msk.f32.mxu0 %vm7572_vm0, %v9148_v34  ;;  %v9232_v19 = vld [vmem:[#allocation49_spill] sm:$0xff] }
 0x45d   : > { %7125 = vmatprep.subr.bf16.mxu0 %v9189_v42 }
 0x45e   : > { %v2383_v49 = vpop.f32.mrb[16].mxu0 }
 0x45f   : > { %v6258_v56 = vpop.f32.mrb[17].mxu0  ;;  %6294 = vmatmul.mubr.msk.f32.vlgmr.msra.gmra.mrb[20].mxu1 %vm1955_vm1, %v2383_v49  ;;  %v9235_v49 = vld [vmem:[#allocation54_spill] sm:$0xff] }
 0x460   : > { %7127 = vmatpush3.bf16.msra.mxu0 %v8524_v9  ;;  %7130 = vmatpush3.bf16.msra.mxu1 %v8526_v48  ;;  %v9236_v56 = vld [vmem:[#allocation53_spill] sm:$0xff] }
 0x461   : > { %7131 = vmatprep.subr.bf16.mxu1 %v9189_v42  ;;  %7134 = vmatprep.subr.bf16.mxu0 %v9189_v42 }
 0x462   : > { %6315 = vmatprep.mubr.msk.f32.mxu1 %vm7572_vm0, %v9148_v34 }
 0x464   : > { %7133 = vmatpush3.bf16.msra.mxu1 %v8536_v59 }
 0x465   : > { %7158 = vmatprep.subr.bf16.mxu1 %v9189_v42 }
 0x479   : > { %v2529_v5 = vpop.f32.mrb[18].mxu0 }
 0x47a   : > { %v6268_v13 = vpop.f32.mrb[19].mxu0  ;;  %6305 = vmatmul.mubr.msk.f32.vlgmr.msra.gmra.mrb[22].mxu0 %vm1955_vm1, %v2529_v5 }
 0x47b   : > { %7136 = vmatpush3.bf16.msra.mxu0 %v7774_v6  ;;  %6350 = vmatprep.mubr.msk.f32.mxu0 %vm7572_vm0, %v9148_v34  ;;  %v8578_v6 = vld [vmem:[#allocation2 + $0x8] sm:$0xff] }
 0x47c   : > { %7137 = vmatprep.subr.bf16.mxu0 %v9189_v42 }
 0x47d   : > { %v2602_v2 = vpop.f32.mrb[18].mxu1 }
 0x47e   : > { %v6273_v60 = vpop.f32.mrb[19].mxu1  ;;  %6316 = vmatmul.mubr.msk.f32.vlgmr.msra.gmra.mrb[22].mxu1 %vm1955_vm1, %v2602_v2  ;;  %v9237_v2 = vld [vmem:[#allocation56_spill] sm:$0xff] }
 0x47f   : > { %7139 = vmatpush3.bf16.msra.mxu0 %v7788_v14  ;;  %7160 = vmatpush3.bf16.msra.mxu1 %v7779_v10  ;;  %v9190_v10 = vld [vmem:[#allocation8_spill] sm:$0xff]  ;;  %v9191_v14 = vld [vmem:[#allocation10_spill] sm:$0xff]  ;;  %v9238_v60 = vld [vmem:[#allocation55_spill] sm:$0xff] }
 0x480   : > { %7140 = vmatprep.subr.bf16.mxu0 %v9189_v42  ;;  %7161 = vmatprep.subr.bf16.mxu1 %v9189_v42 }
 0x481   : > { %6385 = vmatprep.mubr.msk.f32.mxu1 %vm7572_vm0, %v9148_v34 }
 0x483   : > { %7142 = vmatpush3.bf16.msra.mxu0 %v7800_v20  ;;  %7163 = vmatpush3.bf16.msra.mxu1 %v7792_v15  ;;  %v9192_v15 = vld [vmem:[#allocation9_spill] sm:$0xff]  ;;  %v9193_v20 = vld [vmem:[#allocation12_spill] sm:$0xff] }
 0x484   : > { %7143 = vmatprep.subr.bf16.mxu0 %v9189_v42  ;;  %7164 = vmatprep.subr.bf16.mxu1 %v9189_v42 }
 0x487   : > { %7145 = vmatpush3.bf16.msra.mxu0 %v7812_v26  ;;  %7166 = vmatpush3.bf16.msra.mxu1 %v7804_v21  ;;  %v9194_v21 = vld [vmem:[#allocation11_spill] sm:$0xff]  ;;  %v9195_v26 = vld [vmem:[#allocation13_spill] sm:$0xff] }
 0x488   : > { %7146 = vmatprep.subr.bf16.mxu0 %v9189_v42  ;;  %7167 = vmatprep.subr.bf16.mxu1 %v9189_v42 }
 0x48b   : > { %7148 = vmatpush3.bf16.msra.mxu0 %v7824_v32  ;;  %7169 = vmatpush3.bf16.msra.mxu1 %v7816_v27  ;;  %v9196_v27 = vld [vmem:[#allocation14_spill] sm:$0xff]  ;;  %v9197_v32 = vld [vmem:[#allocation16_spill] sm:$0xff] }
 0x48c   : > { %7149 = vmatprep.subr.bf16.mxu0 %v9189_v42  ;;  %7170 = vmatprep.subr.bf16.mxu1 %v9189_v42 }
 0x48f   : > { %7151 = vmatpush3.bf16.msra.mxu0 %v7836_v38  ;;  %7172 = vmatpush3.bf16.msra.mxu1 %v7828_v33  ;;  %v9198_v33 = vld [vmem:[#allocation15_spill] sm:$0xff]  ;;  %v9199_v38 = vld [vmem:[#allocation18_spill] sm:$0xff] }
 0x490   : > { %7152 = vmatprep.subr.bf16.mxu0 %v9189_v42  ;;  %7173 = vmatprep.subr.bf16.mxu1 %v9189_v42 }
 0x493   : > { %7154 = vmatpush3.bf16.msra.mxu0 %v7848_v44  ;;  %7175 = vmatpush3.bf16.msra.mxu1 %v7840_v39  ;;  %v9200_v39 = vld [vmem:[#allocation17_spill] sm:$0xff]  ;;  %v9201_v44 = vld [vmem:[#allocation20_spill] sm:$0xff] }
 0x494   : > { %7155 = vmatprep.subr.bf16.mxu0 %v9189_v42  ;;  %7176 = vmatprep.subr.bf16.mxu1 %v9189_v42 }
 0x497   : > { %7157 = vmatpush3.bf16.msra.mxu0 %v7860_v50  ;;  %7178 = vmatpush3.bf16.msra.mxu1 %v7852_v45  ;;  %v9202_v45 = vld [vmem:[#allocation19_spill] sm:$0xff]  ;;  %v9203_v50 = vld [vmem:[#allocation22_spill] sm:$0xff] }
 0x498   : > { %7179 = vmatprep.subr.bf16.mxu1 %v9189_v42  ;;  %7182 = vmatprep.subr.bf16.mxu0 %v9189_v42 }
 0x49a   : > { %6351 = vmatmul.mubr.f32.vlgmr.msra.gmra.mrb[24].mxu0 %v8578_v6 }
 0x49b   : > { %7181 = vmatpush3.bf16.msra.mxu1 %v7864_v51  ;;  %7184 = vmatpush3.bf16.msra.mxu0 %v7874_v57  ;;  %v9204_v51 = vld [vmem:[#allocation21_spill] sm:$0xff]  ;;  %v9205_v57 = vld [vmem:[#allocation24_spill] sm:$0xff] }
 0x49c   : > { %7185 = vmatprep.subr.bf16.mxu0 %v9189_v42  ;;  %7206 = vmatprep.subr.bf16.mxu1 %v9189_v42 }
 0x49d   : > { %6420 = vmatprep.mubr.msk.f32.mxu0 %vm7572_vm0, %v9148_v34 }
 0x49e   : > { %6386 = vmatmul.mubr.f32.vlgmr.msra.gmra.mrb[24].mxu1 %v8578_v6 }
 0x49f   : > { %7187 = vmatpush3.bf16.msra.mxu0 %v7888_v63  ;;  %7208 = vmatpush3.bf16.msra.mxu1 %v7878_v58  ;;  %v9206_v58 = vld [vmem:[#allocation23_spill] sm:$0xff]  ;;  %v9207_v63 = vld [vmem:[#allocation26_spill] sm:$0xff] }
 0x4a0   : > { %7188 = vmatprep.subr.bf16.mxu0 %v9189_v42  ;;  %7209 = vmatprep.subr.bf16.mxu1 %v9189_v42 }
 0x4a1   : > { %6455 = vmatprep.mubr.msk.f32.mxu1 %vm7572_vm0, %v9148_v34 }
 0x4a3   : > { %7190 = vmatpush3.bf16.msra.mxu0 %v7904_v7  ;;  %7211 = vmatpush3.bf16.msra.mxu1 %v7892_v0  ;;  %v9208_v0 = vld [vmem:[#allocation25_spill] sm:$0xff]  ;;  %v9209_v7 = vld [vmem:[#allocation28_spill] sm:$0xff] }
 0x4a4   : > { %7191 = vmatprep.subr.bf16.mxu0 %v9189_v42  ;;  %7212 = vmatprep.subr.bf16.mxu1 %v9189_v42 }
 0x4a7   : > { %7193 = vmatpush3.bf16.msra.mxu0 %v7916_v17  ;;  %7214 = vmatpush3.bf16.msra.mxu1 %v7908_v8  ;;  %v9210_v8 = vld [vmem:[#allocation27_spill] sm:$0xff]  ;;  %v9211_v17 = vld [vmem:[#allocation29_spill] sm:$0xff] }
 0x4a8   : > { %7194 = vmatprep.subr.bf16.mxu0 %v9189_v42  ;;  %7215 = vmatprep.subr.bf16.mxu1 %v9189_v42 }
 0x4ab   : > { %7196 = vmatpush3.bf16.msra.mxu0 %v7928_v25  ;;  %7217 = vmatpush3.bf16.msra.mxu1 %v7920_v18  ;;  %v9212_v18 = vld [vmem:[#allocation30_spill] sm:$0xff]  ;;  %v9213_v25 = vld [vmem:[#allocation32_spill] sm:$0xff] }
 0x4ac   : > { %7197 = vmatprep.subr.bf16.mxu0 %v9189_v42  ;;  %7218 = vmatprep.subr.bf16.mxu1 %v9189_v42 }
 0x4af   : > { %7199 = vmatpush3.bf16.msra.mxu0 %v7940_v35  ;;  %7220 = vmatpush3.bf16.msra.mxu1 %v7932_v28  ;;  %v9214_v28 = vld [vmem:[#allocation31_spill] sm:$0xff]  ;;  %v9215_v35 = vld [vmem:[#allocation34_spill] sm:$0xff] }
 0x4b0   : > { %7200 = vmatprep.subr.bf16.mxu0 %v9189_v42  ;;  %7221 = vmatprep.subr.bf16.mxu1 %v9189_v42 }
 0x4b3   : > { %7202 = vmatpush3.bf16.msra.mxu0 %v7952_v43  ;;  %7223 = vmatpush3.bf16.msra.mxu1 %v7944_v36  ;;  %v9216_v36 = vld [vmem:[#allocation33_spill] sm:$0xff]  ;;  %v9217_v43 = vld [vmem:[#allocation36_spill] sm:$0xff] }
 0x4b4   : > { %7203 = vmatprep.subr.bf16.mxu0 %v9189_v42  ;;  %7224 = vmatprep.subr.bf16.mxu1 %v9189_v42 }
 0x4b7   : > { %7205 = vmatpush3.bf16.msra.mxu0 %v7964_v53  ;;  %7226 = vmatpush3.bf16.msra.mxu1 %v7956_v46  ;;  %v9218_v46 = vld [vmem:[#allocation35_spill] sm:$0xff]  ;;  %v9219_v53 = vld [vmem:[#allocation38_spill] sm:$0xff] }
 0x4b8   : > { %7227 = vmatprep.subr.bf16.mxu1 %v9189_v42  ;;  %7230 = vmatprep.subr.bf16.mxu0 %v9189_v42 }
 0x4ba   : > { %6421 = vmatmul.mubr.f32.vlgmr.msra.gmra.mrb[26].mxu0 %v8578_v6 }
 0x4bb   : > { %7229 = vmatpush3.bf16.msra.mxu1 %v7968_v54  ;;  %7232 = vmatpush3.bf16.msra.mxu0 %v7976_v62  ;;  %v9220_v54 = vld [vmem:[#allocation37_spill] sm:$0xff]  ;;  %v9221_v62 = vld [vmem:[#allocation40_spill] sm:$0xff] }
 0x4bc   : > { %7233 = vmatprep.subr.bf16.mxu0 %v9189_v42  ;;  %7254 = vmatprep.subr.bf16.mxu1 %v9189_v42 }
 0x4bd   : > { %6490 = vmatprep.mubr.msk.f32.mxu0 %vm7572_vm0, %v9148_v34 }
 0x4be   : > { %6456 = vmatmul.mubr.f32.vlgmr.msra.gmra.mrb[26].mxu1 %v8578_v6 }
 0x4bf   : > { %7235 = vmatpush3.bf16.msra.mxu0 %v7990_v11  ;;  %7256 = vmatpush3.bf16.msra.mxu1 %v7980_v1  ;;  %v9222_v1 = vld [vmem:[#allocation39_spill] sm:$0xff]  ;;  %v9223_v11 = vld [vmem:[#allocation42_spill] sm:$0xff] }
 0x4c0   : > { %7236 = vmatprep.subr.bf16.mxu0 %v9189_v42  ;;  %7257 = vmatprep.subr.bf16.mxu1 %v9189_v42 }
 0x4c1   : > { %6525 = vmatprep.mubr.msk.f32.mxu1 %vm7572_vm0, %v9148_v34 }
 0x4c3   : > { %7238 = vmatpush3.bf16.msra.mxu0 %v8006_v24  ;;  %7259 = vmatpush3.bf16.msra.mxu1 %v7994_v12  ;;  %v9224_v12 = vld [vmem:[#allocation41_spill] sm:$0xff]  ;;  %v9225_v24 = vld [vmem:[#allocation44_spill] sm:$0xff] }
 0x4c4   : > { %7239 = vmatprep.subr.bf16.mxu0 %v9189_v42  ;;  %7260 = vmatprep.subr.bf16.mxu1 %v9189_v42 }
 0x4c7   : > { %7241 = vmatpush3.bf16.msra.mxu0 %v8018_v40  ;;  %7262 = vmatpush3.bf16.msra.mxu1 %v8010_v29  ;;  %v9226_v29 = vld [vmem:[#allocation43_spill] sm:$0xff]  ;;  %v9227_v40 = vld [vmem:[#allocation45_spill] sm:$0xff] }
 0x4c8   : > { %7242 = vmatprep.subr.bf16.mxu0 %v9189_v42  ;;  %7263 = vmatprep.subr.bf16.mxu1 %v9189_v42 }
 0x4cb   : > { %7244 = vmatpush3.bf16.msra.mxu0 %v8030_v52  ;;  %7265 = vmatpush3.bf16.msra.mxu1 %v8022_v41  ;;  %v9228_v41 = vld [vmem:[#allocation46_spill] sm:$0xff]  ;;  %v9229_v52 = vld [vmem:[#allocation48_spill] sm:$0xff] }
 0x4cc   : > { %7245 = vmatprep.subr.bf16.mxu0 %v9189_v42  ;;  %7266 = vmatprep.subr.bf16.mxu1 %v9189_v42 }
 0x4cf   : > { %7247 = vmatpush3.bf16.msra.mxu0 %v8042_v3  ;;  %7268 = vmatpush3.bf16.msra.mxu1 %v9190_v10  ;;  %v9230_v3 = vld [vmem:[#allocation47_spill] sm:$0xff] }
 0x4d0   : > { %7248 = vmatprep.subr.bf16.mxu0 %v9189_v42  ;;  %7269 = vmatprep.subr.bf16.mxu1 %v9189_v42 }
 0x4d3   : > { %7250 = vmatpush3.bf16.msra.mxu0 %v9191_v14  ;;  %7271 = vmatpush3.bf16.msra.mxu1 %v9192_v15 }
 0x4d4   : > { %7251 = vmatprep.subr.bf16.mxu0 %v9189_v42  ;;  %7272 = vmatprep.subr.bf16.mxu1 %v9189_v42 }
 0x4d7   : > { %7253 = vmatpush3.bf16.msra.mxu0 %v9193_v20  ;;  %7274 = vmatpush3.bf16.msra.mxu1 %v9194_v21  ;;  %v9239_v20 = vld [vmem:[#allocation58_spill] sm:$0xff]  ;;  %v9240_v21 = vld [vmem:[#allocation57_spill] sm:$0xff] }
 0x4d8   : > { %7275 = vmatprep.subr.bf16.mxu1 %v9189_v42  ;;  %7278 = vmatprep.subr.bf16.mxu0 %v9189_v42 }
 0x4da   : > { %6491 = vmatmul.mubr.f32.vlgmr.msra.gmra.mrb[28].mxu0 %v8578_v6 }
 0x4db   : > { %7277 = vmatpush3.bf16.msra.mxu1 %v9195_v26  ;;  %7280 = vmatpush3.bf16.msra.mxu0 %v9196_v27  ;;  %v9241_v26 = vld [vmem:[#allocation60_spill] sm:$0xff]  ;;  %v9242_v27 = vld [vmem:[#allocation59_spill] sm:$0xff] }
 0x4dc   : > { %7281 = vmatprep.subr.bf16.mxu0 %v9189_v42  ;;  %7302 = vmatprep.subr.bf16.mxu1 %v9189_v42 }
 0x4dd   : > { %6560 = vmatprep.mubr.msk.f32.mxu0 %vm7572_vm0, %v9148_v34 }
 0x4de   : > { %6526 = vmatmul.mubr.f32.vlgmr.msra.gmra.mrb[28].mxu1 %v8578_v6 }
 0x4df   : > { %7283 = vmatpush3.bf16.msra.mxu0 %v9197_v32  ;;  %7304 = vmatpush3.bf16.msra.mxu1 %v9198_v33  ;;  %v9243_v32 = vld [vmem:[#allocation61_spill] sm:$0xff] }
 0x4e0   : > { %7284 = vmatprep.subr.bf16.mxu0 %v9189_v42  ;;  %7305 = vmatprep.subr.bf16.mxu1 %v9189_v42 }
 0x4e1   : > { %6595 = vmatprep.mubr.msk.f32.mxu1 %vm7572_vm0, %v9148_v34 }
 0x4e3   : > { %7286 = vmatpush3.bf16.msra.mxu0 %v9199_v38  ;;  %7307 = vmatpush3.bf16.msra.mxu1 %v9200_v39 }
 0x4e4   : > { %7287 = vmatprep.subr.bf16.mxu0 %v9189_v42  ;;  %7308 = vmatprep.subr.bf16.mxu1 %v9189_v42 }
 0x4e7   : > { %7289 = vmatpush3.bf16.msra.mxu0 %v9201_v44  ;;  %7310 = vmatpush3.bf16.msra.mxu1 %v9202_v45 }
 0x4e8   : > { %7290 = vmatprep.subr.bf16.mxu0 %v9189_v42  ;;  %7311 = vmatprep.subr.bf16.mxu1 %v9189_v42 }
 0x4eb   : > { %7292 = vmatpush3.bf16.msra.mxu0 %v9203_v50  ;;  %7313 = vmatpush3.bf16.msra.mxu1 %v9204_v51 }
 0x4ec   : > { %7293 = vmatprep.subr.bf16.mxu0 %v9189_v42  ;;  %7314 = vmatprep.subr.bf16.mxu1 %v9189_v42 }
 0x4ef   : > { %7295 = vmatpush3.bf16.msra.mxu0 %v9205_v57  ;;  %7316 = vmatpush3.bf16.msra.mxu1 %v9206_v58 }
 0x4f0   : > { %7296 = vmatprep.subr.bf16.mxu0 %v9189_v42  ;;  %7317 = vmatprep.subr.bf16.mxu1 %v9189_v42 }
 0x4f3   : > { %7298 = vmatpush3.bf16.msra.mxu0 %v9207_v63  ;;  %7319 = vmatpush3.bf16.msra.mxu1 %v9208_v0 }
 0x4f4   : > { %7299 = vmatprep.subr.bf16.mxu0 %v9189_v42  ;;  %7320 = vmatprep.subr.bf16.mxu1 %v9189_v42 }
 0x4f7   : > { %7301 = vmatpush3.bf16.msra.mxu0 %v9209_v7  ;;  %7322 = vmatpush3.bf16.msra.mxu1 %v9210_v8 }
 0x4f8   : > { %7323 = vmatprep.subr.bf16.mxu1 %v9189_v42  ;;  %7326 = vmatprep.subr.bf16.mxu0 %v9189_v42 }
 0x4fa   : > { %6561 = vmatmul.mubr.f32.vlgmr.msra.gmra.mrb[30].mxu0 %v8578_v6 }
 0x4fb   : > { %7325 = vmatpush3.bf16.msra.mxu1 %v9211_v17  ;;  %7328 = vmatpush3.bf16.msra.mxu0 %v9212_v18 }
 0x4fc   : > { %7329 = vmatprep.subr.bf16.mxu0 %v9189_v42  ;;  %7350 = vmatprep.subr.bf16.mxu1 %v9189_v42 }
 0x4fd   : > { %6630 = vmatprep.mubr.msk.f32.mxu0 %vm7572_vm0, %v9148_v34 }
 0x4fe   : > { %6596 = vmatmul.mubr.f32.vlgmr.msra.gmra.mrb[30].mxu1 %v8578_v6 }
 0x4ff   : > { %7331 = vmatpush3.bf16.msra.mxu0 %v9213_v25  ;;  %7352 = vmatpush3.bf16.msra.mxu1 %v9214_v28 }
 0x500   : > { %7332 = vmatprep.subr.bf16.mxu0 %v9189_v42  ;;  %7353 = vmatprep.subr.bf16.mxu1 %v9189_v42 }
 0x501   : > { %6665 = vmatprep.mubr.msk.f32.mxu1 %vm7572_vm0, %v9148_v34 }
 0x503   : > { %7334 = vmatpush3.bf16.msra.mxu0 %v9215_v35  ;;  %7355 = vmatpush3.bf16.msra.mxu1 %v9216_v36  ;;  %v9245_v35 = vld [vmem:[#allocation64_spill] sm:$0xff] }
 0x504   : > { %7335 = vmatprep.subr.bf16.mxu0 %v9189_v42  ;;  %7356 = vmatprep.subr.bf16.mxu1 %v9189_v42 }
 0x507   : > { %7337 = vmatpush3.bf16.msra.mxu0 %v9217_v43  ;;  %7358 = vmatpush3.bf16.msra.mxu1 %v9218_v46  ;;  %v9246_v46 = vld [vmem:[#allocation63_spill] sm:$0xff] }
 0x508   : > { %7338 = vmatprep.subr.bf16.mxu0 %v9189_v42  ;;  %7359 = vmatprep.subr.bf16.mxu1 %v9189_v42 }
 0x50b   : > { %7340 = vmatpush3.bf16.msra.mxu0 %v9219_v53  ;;  %7361 = vmatpush3.bf16.msra.mxu1 %v9220_v54 }
 0x50c   : > { %7341 = vmatprep.subr.bf16.mxu0 %v9189_v42  ;;  %7362 = vmatprep.subr.bf16.mxu1 %v9189_v42 }
 0x50f   : > { %7343 = vmatpush3.bf16.msra.mxu0 %v9221_v62  ;;  %7364 = vmatpush3.bf16.msra.mxu1 %v9222_v1  ;;  %v9247_v62 = vld [vmem:[#allocation65_spill] sm:$0xff] }
 0x510   : > { %7344 = vmatprep.subr.bf16.mxu0 %v9189_v42  ;;  %7365 = vmatprep.subr.bf16.mxu1 %v9189_v42 }
 0x513   : > { %7346 = vmatpush3.bf16.msra.mxu0 %v9223_v11  ;;  %7367 = vmatpush3.bf16.msra.mxu1 %v9224_v12  ;;  %v9248_v12 = vld [vmem:[#allocation66_spill] sm:$0xff] }
 0x514   : > { %7347 = vmatprep.subr.bf16.mxu0 %v9189_v42  ;;  %7368 = vmatprep.subr.bf16.mxu1 %v9189_v42 }
 0x517   : > { %7349 = vmatpush3.bf16.msra.mxu0 %v9225_v24  ;;  %7370 = vmatpush3.bf16.msra.mxu1 %v9226_v29 }
 0x518   : > { %7371 = vmatprep.subr.bf16.mxu1 %v9189_v42  ;;  %7374 = vmatprep.subr.bf16.mxu0 %v9189_v42 }
 0x51a   : > { %6631 = vmatmul.mubr.f32.vlgmr.msra.gmra.mrb[32].mxu0 %v8578_v6 }
 0x51b   : > { %7373 = vmatpush3.bf16.msra.mxu1 %v9227_v40  ;;  %7376 = vmatpush3.bf16.msra.mxu0 %v9228_v41  ;;  %v9249_v40 = vld [vmem:[#allocation68_spill] sm:$0xff] }
 0x51c   : > { %7377 = vmatprep.subr.bf16.mxu0 %v9189_v42  ;;  %7398 = vmatprep.subr.bf16.mxu1 %v9189_v42 }
 0x51d   : > { %6700 = vmatprep.mubr.msk.f32.mxu0 %vm7572_vm0, %v9148_v34 }
 0x51e   : > { %6666 = vmatmul.mubr.f32.vlgmr.msra.gmra.mrb[32].mxu1 %v8578_v6 }
 0x51f   : > { %7379 = vmatpush3.bf16.msra.mxu0 %v9229_v52  ;;  %7400 = vmatpush3.bf16.msra.mxu1 %v9230_v3  ;;  %v9250_v3 = vld [vmem:[#allocation67_spill] sm:$0xff] }
 0x520   : > { %7380 = vmatprep.subr.bf16.mxu0 %v9189_v42  ;;  %7401 = vmatprep.subr.bf16.mxu1 %v9189_v42 }
 0x521   : > { %6735 = vmatprep.mubr.msk.f32.mxu1 %vm7572_vm0, %v9148_v34 }
 0x523   : > { %7382 = vmatpush3.bf16.msra.mxu0 %v9231_v16  ;;  %7403 = vmatpush3.bf16.msra.mxu1 %v9232_v19 }
 0x524   : > { %7383 = vmatprep.subr.bf16.mxu0 %v9189_v42  ;;  %7404 = vmatprep.subr.bf16.mxu1 %v9189_v42 }
 0x527   : > { %7385 = vmatpush3.bf16.msra.mxu0 %v9233_v23  ;;  %7406 = vmatpush3.bf16.msra.mxu1 %v9234_v31  ;;  %v9251_v23 = vld [vmem:[#allocation69_spill] sm:$0xff] }
 0x528   : > { %7386 = vmatprep.subr.bf16.mxu0 %v9189_v42  ;;  %7407 = vmatprep.subr.bf16.mxu1 %v9189_v42 }
 0x52b   : > { %7388 = vmatpush3.bf16.msra.mxu0 %v9235_v49  ;;  %7409 = vmatpush3.bf16.msra.mxu1 %v9236_v56  ;;  %v9252_v56 = vld [vmem:[#allocation70_spill] sm:$0xff] }
 0x52c   : > { %7389 = vmatprep.subr.bf16.mxu0 %v9189_v42  ;;  %7410 = vmatprep.subr.bf16.mxu1 %v9189_v42 }
 0x52e   : > { %v2675_v5 = vpop.f32.mrb[20].mxu0 }
 0x52f   : > { %v6284_v13 = vpop.f32.mrb[21].mxu0  ;;  %7391 = vmatpush3.bf16.msra.mxu0 %v9237_v2  ;;  %7412 = vmatpush3.bf16.msra.mxu1 %v9238_v60  ;;  %v9253_v60 = vld [vmem:[#allocation71_spill] sm:$0xff] }
 0x530   : > { %7392 = vmatprep.subr.bf16.mxu0 %v9189_v42  ;;  %7413 = vmatprep.subr.bf16.mxu1 %v9189_v42 }
 0x532   : > { %v2748_v10 = vpop.f32.mrb[20].mxu1 }
 0x533   : > { %v2749_v14 = vadd.f32 %v2748_v10, %v2675_v5  ;;  %v6295_v15 = vpop.f32.mrb[21].mxu1  ;;  %7394 = vmatpush3.bf16.msra.mxu0 %v9239_v20  ;;  %7415 = vmatpush3.bf16.msra.mxu1 %v9240_v21 }
 0x534   : > { %7395 = vmatprep.subr.bf16.mxu0 %v9189_v42  ;;  %7416 = vmatprep.subr.bf16.mxu1 %v9189_v42 }
 0x537   : > { %7397 = vmatpush3.bf16.msra.mxu0 %v9241_v26  ;;  %7418 = vmatpush3.bf16.msra.mxu1 %v9242_v27 }
 0x538   : > { %7419 = vmatprep.subr.bf16.mxu1 %v9189_v42  ;;  %6738 = vmatprep.subr.mxu0 %v9148_v34 }
 0x53a   : > { %6701 = vmatmul.mubr.f32.vlgmr.msra.gmra.mrb[34].mxu0 %v8578_v6 }
 0x53b   : > { %7421 = vmatpush3.bf16.msra.mxu1 %v9243_v32  ;;  %6740 = vmatprep.mubr.msk.f32.mxu0 %vm7572_vm0, %v9148_v34  ;;  %v5272_v32 = vld [vmem:[%s9188_s22 + $0x8] sm:$0xff] }
 0x53c   : > { %6743 = vmatprep.subr.mxu1 %v9148_v34 }
 0x53e   : > { %6736 = vmatmul.mubr.f32.vlgmr.msra.gmra.mrb[34].mxu1 %v8578_v6  ;;  %v9244_v6 = vld [vmem:[#allocation62_spill] sm:$0xff] }
 0x53f   : > { %6745 = vmatprep.mubr.msk.f32.mxu1 %vm7572_vm0, %v9148_v34 }
 0x54d   : > { %v2821_v33 = vpop.f32.mrb[22].mxu0 }
 0x54e   : > { %v2825_v38 = vadd.f32 %v2821_v33, %v2749_v14  ;;  %v6306_v39 = vpop.f32.mrb[23].mxu0 }
 0x551   : > { %v2895_v44 = vpop.f32.mrb[22].mxu1 }
 0x552   : > { %v8780_v45 = vadd.f32 %v2895_v44, %v2825_v38  ;;  %v6317_v50 = vpop.f32.mrb[23].mxu1 }
 0x56d   : > { %v2966_v51 = vpop.f32.mrb[24].mxu0 }
 0x56e   : > { %v6352_v57 = vpop.f32.mrb[25].mxu0  ;;  %v2967_v36 = vadd.f32 %v9245_v35, %v2966_v51 }
 0x571   : > { %v3036_v58 = vpop.f32.mrb[24].mxu1 }
 0x572   : > { %v6387_v63 = vpop.f32.mrb[25].mxu1  ;;  %v3037_v1 = vadd.f32 %v9247_v62, %v3036_v58 }
 0x58d   : > { %v3106_v0 = vpop.f32.mrb[26].mxu0 }
 0x58e   : > { %v6422_v7 = vpop.f32.mrb[27].mxu0  ;;  %v3107_v41 = vadd.f32 %v9249_v40, %v3106_v0 }
 0x591   : > { %v3176_v8 = vpop.f32.mrb[26].mxu1 }
 0x592   : > { %v6457_v17 = vpop.f32.mrb[27].mxu1  ;;  %v3177_v31 = vadd.f32 %v9251_v23, %v3176_v8  ;;  %v8832_v23 = vld [vmem:[%s9254_s25] ss:$0 sm:$0xff] }
 0x5ad   : > { %v3246_v18 = vpop.f32.mrb[28].mxu0 }
 0x5ae   : > { %v3247_v25 = vadd.f32 %v9244_v6, %v3246_v18  ;;  %v6492_v28 = vpop.f32.mrb[29].mxu0 }
 0x5b0   : > { %6739 = vmatpush3.xpose.msk.msra.mxu0 %vm1955_vm1, %v3247_v25 }
 0x5b1   : > { %v3316_v43 = vpop.f32.mrb[28].mxu1  ;;  %6748 = vmatprep.subr.mxu0 %v9148_v34 }
 0x5b2   : > { %v3317_v53 = vadd.f32 %v9246_v46, %v3316_v43  ;;  %v6527_v54 = vpop.f32.mrb[29].mxu1 }
 0x5b3   : > { %6741 = vmatmul.mubr.msk.f32.vlgmr.msra.gmra.mrb[36].mxu0 %vm1955_vm1, %v2967_v36 }
 0x5b4   : > { %6744 = vmatpush3.xpose.msk.msra.mxu1 %vm1955_vm1, %v3317_v53  ;;  %6750 = vmatprep.mubr.msk.f32.mxu0 %vm7572_vm0, %v9148_v34 }
 0x5b5   : > { %6753 = vmatprep.subr.mxu1 %v9148_v34 }
 0x5b7   : > { %6746 = vmatmul.mubr.msk.f32.vlgmr.msra.gmra.mrb[36].mxu1 %vm1955_vm1, %v3037_v1 }
 0x5b8   : > { %6755 = vmatprep.mubr.msk.f32.mxu1 %vm7572_vm0, %v9148_v34 }
 0x5cd   : > { %v3386_v11 = vpop.f32.mrb[30].mxu0 }
 0x5ce   : > { %v3387_v24 = vadd.f32 %v9248_v12, %v3386_v11  ;;  %v6562_v29 = vpop.f32.mrb[31].mxu0 }
 0x5d0   : > { %6749 = vmatpush3.xpose.msk.msra.mxu0 %vm1955_vm1, %v3387_v24 }
 0x5d1   : > { %v3456_v52 = vpop.f32.mrb[30].mxu1  ;;  %6758 = vmatprep.subr.mxu0 %v9148_v34 }
 0x5d2   : > { %v3457_v16 = vadd.f32 %v9250_v3, %v3456_v52  ;;  %v6597_v19 = vpop.f32.mrb[31].mxu1 }
 0x5d3   : > { %6751 = vmatmul.mubr.msk.f32.vlgmr.msra.gmra.mrb[38].mxu0 %vm1955_vm1, %v3107_v41 }
 0x5d4   : > { %6754 = vmatpush3.xpose.msk.msra.mxu1 %vm1955_vm1, %v3457_v16  ;;  %6760 = vmatprep.mubr.msk.f32.mxu0 %vm7572_vm0, %v9148_v34 }
 0x5d5   : > { %6763 = vmatprep.subr.mxu1 %v9148_v34 }
 0x5d7   : > { %6756 = vmatmul.mubr.msk.f32.vlgmr.msra.gmra.mrb[38].mxu1 %vm1955_vm1, %v3177_v31 }
 0x5d8   : > { %6765 = vmatprep.mubr.msk.f32.mxu1 %vm7572_vm0, %v9148_v34 }
 0x5ed   : > { %v3526_v49 = vpop.f32.mrb[32].mxu0 }
 0x5ee   : > { %v3527_v5 = vadd.f32 %v9252_v56, %v3526_v49  ;;  %v6632_v13 = vpop.f32.mrb[33].mxu0  ;;  %v4691_v49 = vadd.f32 %v8832_v23, %v8780_v45 }
 0x5ef   : > { %v7561_v13 = vld [vmem:[#allocation2] sm:$0xff] }
 0x5f0   : > { %6759 = vmatpush3.msra.mxu0 %v3527_v5 }
 0x5f1   : > { %v3596_v2 = vpop.f32.mrb[32].mxu1  ;;  %6768 = vmatprep.subr.mxu0 %v9148_v34 }
 0x5f2   : > { %v3597_v10 = vadd.f32 %v9253_v60, %v3596_v2  ;;  %v6667_v14 = vpop.f32.mrb[33].mxu1  ;;  %v4693_v2 = vadd.f32 %v7561_v13, %v4691_v49  ;;  %v4752_v49 = vld [vmem:[%s9255_s26 + $0x80] sm:$0xff]  ;;  %v4759_v13 = vld [vmem:[%s9255_s26 + $0xb8] sm:$0xff] }
 0x5f4   : > { %6764 = vmatpush3.msra.mxu1 %v3597_v10 }
 0x5f5   : > { %6773 = vmatprep.subr.mxu1 %v9148_v34 }
 0x60d   : > { %v8814_v15 = vpop.f32.mrb[34].mxu0 }
 0x60e   : > { %v6702_v20 = vpop.f32.mrb[35].mxu0 }
 0x611   : > { %v8816_v21 = vpop.f32.mrb[34].mxu1 }
 0x612   : > { %v6737_v26 = vpop.f32.mrb[35].mxu1 }
 0x686   : > { %v3812_v27 = vpop.f32.mrb[36].mxu0 }
 0x687   : > { %v4044_v33 = vmul.f32 0.17677669, %v3812_v27  ;;  %v6742_v38 = vpop.f32.mrb[37].mxu0  ;;  %v3667_v27 = vadd.f32 %v8472_v61, %v8814_v15 }
 0x689   : > { %v4050_v39 = vadd.f32 %v5272_v32, %v4044_v33  ;;  %v3737_v33 = vadd.f32 %v8467_v4, %v8816_v21 }
 0x68a   : > { %v3888_v44 = vpop.f32.mrb[36].mxu1 }
 0x68b   : > { %v4045_v50 = vmul.f32 0.17677669, %v3888_v44  ;;  %v6747_v51 = vpop.f32.mrb[37].mxu1  ;;  %v4054_v57 = vsel %vm2269_vm2, %v4050_v39, -inf }
 0x68c   : > { %4055 = vmax.xlane.f32.xlu1 %v4054_v57 }
 0x68d   : > { %v4051_v58 = vadd.f32 %v5272_v32, %v4045_v50 }
 0x68f   : > { %v4057_v63 = vsel %vm2269_vm2, %v4051_v58, -inf }
 0x690   : > { %4058 = vmax.xlane.f32.xlu0 %v4057_v63 }
 0x6a6   : > { %v3964_v0 = vpop.f32.mrb[38].mxu0 }
 0x6a7   : > { %v4046_v7 = vmul.f32 0.17677669, %v3964_v0  ;;  %v6752_v8 = vpop.f32.mrb[39].mxu0  ;;  %v4736_v0 = vld [vmem:[%s9255_s26] sm:$0xff] }
 0x6a8   : > { %v4741_v8 = vld [vmem:[%s9255_s26 + $0x28] sm:$0xff] }
 0x6a9   : > { %v4052_v17 = vadd.f32 %v5272_v32, %v4046_v7  ;;  %v4738_v7 = vld [vmem:[%s9255_s26 + $0x10] sm:$0xff] }
 0x6aa   : > { %v4040_v18 = vpop.f32.mrb[38].mxu1 }
 0x6ab   : > { %v4047_v6 = vmul.f32 0.17677669, %v4040_v18  ;;  %v6757_v25 = vpop.f32.mrb[39].mxu1  ;;  %v4060_v28 = vsel %vm2269_vm2, %v4052_v17, -inf  ;;  %v7448_v18 = vpack.c.bf16 %v4738_v7, %v4736_v0  ;;  %v4862_v0 = vld [vmem:[%s7740_s30 + $0x8] sm:$0xff] }
 0x6ac   : > { %4061 = vmax.xlane.f32.xlu0 %v4060_v28  ;;  %v4740_v25 = vld [vmem:[%s9255_s26 + $0x20] sm:$0xff]  ;;  %v4742_v28 = vld [vmem:[%s9255_s26 + $0x30] sm:$0xff] }
 0x6ad   : > { %v4053_v35 = vadd.f32 %v5272_v32, %v4047_v6 }
 0x6af   : > { %v4063_v36 = vsel %vm2269_vm2, %v4053_v35, -inf }
 0x6b0   : > { %4064 = vmax.xlane.f32.xlu1 %v4063_v36  ;;  %v4747_v36 = vld [vmem:[%s9255_s26 + $0x58] sm:$0xff] }
 0x719   : > { %v4056_v43 = vpop.xlane.xlu1 %4055 }
 0x71a   : > { %v4066_v46 = vsub.f32 %v4050_v39, %v4056_v43  ;;  %v7452_v43 = vpack.c.bf16 %v4742_v28, %v4740_v25  ;;  %v4881_v25 = vld [vmem:[%s7740_s30 + $0xa0] sm:$0xff]  ;;  %v4882_v28 = vld [vmem:[%s7740_s30 + $0xa8] sm:$0xff] }
 0x71c   : > { %v4070_v53 = vmul.f32 1.442695, %v4066_v46 }
 0x71d   : > { %v4059_v54 = vpop.xlane.xlu0 %4058 }
 0x71e   : > { %7537 = vpow2.f32 %v4070_v53  ;;  %v4067_v62 = vsub.f32 %v4051_v58, %v4059_v54  ;;  %v4744_v53 = vld [vmem:[%s9255_s26 + $0x40] sm:$0xff]  ;;  %v4746_v54 = vld [vmem:[%s9255_s26 + $0x50] sm:$0xff] }
 0x720   : > { %v4072_v1 = vmul.f32 1.442695, %v4067_v62 }
 0x722   : > { %7539 = vpow2.f32 %v4072_v1  ;;  %v4749_v1 = vld [vmem:[%s9255_s26 + $0x68] sm:$0xff] }
 0x728   : > { %v7538_v11 = vpop.eup %7537 }
 0x729   : > { %v4078_v12 = vsel %vm2269_vm2, %v7538_v11, 0.0 }
 0x72a   : > { %4079 = vadd.xlane.f32.xlu1 %v4078_v12 }
 0x72c   : > { %v7540_v24 = vpop.eup %7539 }
 0x72d   : > { %v4081_v29 = vsel %vm2269_vm2, %v7540_v24, 0.0 }
 0x72e   : > { %4082 = vadd.xlane.f32.xlu0 %v4081_v29  ;;  %v7456_v29 = vpack.c.bf16 %v4746_v54, %v4744_v53  ;;  %v4867_v53 = vld [vmem:[%s7740_s30 + $0x30] sm:$0xff]  ;;  %v4868_v54 = vld [vmem:[%s7740_s30 + $0x38] sm:$0xff] }
 0x739   : > { %v4062_v40 = vpop.xlane.xlu0 %4061 }
 0x73a   : > { %v4068_v41 = vsub.f32 %v4052_v17, %v4062_v40  ;;  %v4743_v17 = vld [vmem:[%s9255_s26 + $0x38] sm:$0xff] }
 0x73b   : > { %v7450_v6 = vpack.c.bf16 %v4743_v17, %v4741_v8  ;;  %v4879_v8 = vld [vmem:[%s7740_s30 + $0x90] sm:$0xff]  ;;  %v4880_v17 = vld [vmem:[%s7740_s30 + $0x98] sm:$0xff] }
 0x73c   : > { %v4074_v52 = vmul.f32 1.442695, %v4068_v41  ;;  %v4748_v41 = vld [vmem:[%s9255_s26 + $0x60] sm:$0xff] }
 0x73d   : > { %v4065_v3 = vpop.xlane.xlu1 %4064 }
 0x73e   : > { %7541 = vpow2.f32 %v4074_v52  ;;  %v4069_v16 = vsub.f32 %v4053_v35, %v4065_v3  ;;  %v4745_v35 = vld [vmem:[%s9255_s26 + $0x48] sm:$0xff]  ;;  %v4750_v52 = vld [vmem:[%s9255_s26 + $0x70] sm:$0xff] }
 0x73f   : > { %v7454_v46 = vpack.c.bf16 %v4747_v36, %v4745_v35  ;;  %v4753_v3 = vld [vmem:[%s9255_s26 + $0x88] sm:$0xff]  ;;  %v7486_v35 = vpack.c.bf16 %v4882_v28, %v4881_v25 }
 0x740   : > { %v4076_v19 = vmul.f32 1.442695, %v4069_v16  ;;  %v4755_v16 = vld [vmem:[%s9255_s26 + $0x98] sm:$0xff]  ;;  %v4866_v36 = vld [vmem:[%s7740_s30 + $0x28] sm:$0xff] }
 0x742   : > { %7543 = vpow2.f32 %v4076_v19  ;;  %v7460_v19 = vpack.c.bf16 %v4750_v52, %v4748_v41  ;;  %v4888_v41 = vld [vmem:[%s7740_s30 + $0xd8] sm:$0xff] }
 0x748   : > { %v7542_v31 = vpop.eup %7541 }
 0x749   : > { %v4084_v56 = vsel %vm2269_vm2, %v7542_v31, 0.0 }
 0x74a   : > { %4085 = vadd.xlane.f32.xlu0 %v4084_v56  ;;  %v4754_v56 = vld [vmem:[%s9255_s26 + $0x90] sm:$0xff] }
 0x74c   : > { %v7544_v5 = vpop.eup %7543 }
 0x74d   : > { %v4087_v60 = vsel %vm2269_vm2, %v7544_v5, 0.0 }
 0x74e   : > { %4088 = vadd.xlane.f32.xlu1 %v4087_v60  ;;  %4697 = vadd.xlane.f32.xlu0 %v4693_v2 }
 0x7b7   : > { %v4080_v10 = vpop.xlane.xlu1 %4079 }
 0x7b8   : > { %7545 = vrcp.f32 %v4080_v10  ;;  %v4756_v10 = vld [vmem:[%s9255_s26 + $0xa0] sm:$0xff] }
 0x7bb   : > { %v4083_v14 = vpop.xlane.xlu0 %4082 }
 0x7bc   : > { %7547 = vrcp.f32 %v4083_v14  ;;  %v4758_v14 = vld [vmem:[%s9255_s26 + $0xb0] sm:$0xff] }
 0x7c2   : > { %v7546_v20 = vpop.eup %7545 }
 0x7c3   : > { %v4094_v26 = vmul.f32 %v7546_v20, %v7538_v11  ;;  %v4751_v11 = vld [vmem:[%s9255_s26 + $0x78] sm:$0xff]  ;;  %v4761_v20 = vld [vmem:[%s9255_s26 + $0xc8] sm:$0xff] }
 0x7c4   : > { %v7458_v40 = vpack.c.bf16 %v4751_v11, %v4749_v1  ;;  %v4886_v1 = vld [vmem:[%s7740_s30 + $0xc8] sm:$0xff]  ;;  %v7492_v11 = vpack.c.bf16 %v4868_v54, %v4867_v53 }
 0x7c5   : > { %6761 = vmatmul.mubr.msk.f32.vlgmr.msra.gmra.mrb[40].mxu0 %vm2269_vm2, %v4094_v26  ;;  %v4763_v26 = vld [vmem:[%s9255_s26 + $0xd8] sm:$0xff] }
 0x7c6   : > { %v7548_v45 = vpop.eup %7547  ;;  %6769 = vmatpush3.msra.mxu0 %v3667_v27  ;;  %6770 = vmatprep.mubr.msk.f32.mxu0 %vm7572_vm0, %v9148_v34  ;;  %v7468_v27 = vpack.c.bf16 %v4758_v14, %v4756_v10  ;;  %v4891_v10 = vld [vmem:[%s7740_s30 + $0xf0] sm:$0xff]  ;;  %v4892_v14 = vld [vmem:[%s7740_s30 + $0xf8] sm:$0xff] }
 0x7c7   : > { %v4095_v32 = vmul.f32 %v7548_v45, %v7540_v24  ;;  %7422 = vmatprep.subr.bf16.mxu0 %v9189_v42  ;;  %v7470_v45 = vpack.c.bf16 %v4763_v26, %v4761_v20  ;;  %v7506_v20 = vpack.c.bf16 %v4892_v14, %v4891_v10  ;;  %v4875_v26 = vld [vmem:[%s7740_s30 + $0x70] sm:$0xff]  ;;  %v5285_v10 = vld [vmem:[%s809_s0] ss:$0 sm:$0xff] }
 0x7c9   : > { %6766 = vmatmul.mubr.msk.f32.vlgmr.msra.gmra.mrb[40].mxu1 %vm2269_vm2, %v4095_v32  ;;  %v4760_v32 = vld [vmem:[%s9255_s26 + $0xc0] sm:$0xff] }
 0x7ca   : > { %6774 = vmatpush3.msra.mxu1 %v3737_v33  ;;  %6775 = vmatprep.mubr.msk.f32.mxu1 %vm7572_vm0, %v9148_v34  ;;  %v4762_v33 = vld [vmem:[%s9255_s26 + $0xd0] sm:$0xff] }
 0x7cb   : > { %7428 = vmatprep.subr.bf16.mxu1 %v9189_v42 }
 0x7d7   : > { %v4086_v61 = vpop.xlane.xlu0 %4085 }
 0x7d8   : > { %7549 = vrcp.f32 %v4086_v61 }
 0x7db   : > { %v4089_v15 = vpop.xlane.xlu1 %4088  ;;  %v4698_v38 = vpop.xlane.xlu0 %4697 }
 0x7dc   : > { %7551 = vrcp.f32 %v4089_v15  ;;  %v4702_v39 = vmul.f32 0.0078125, %v4698_v38  ;;  %v4765_v15 = vld [vmem:[%s9255_s26 + $0xe8] sm:$0xff]  ;;  %v4767_v38 = vld [vmem:[%s9255_s26 + $0xf8] sm:$0xff] }
 0x7de   : > { %v8850_v44 = vsub.f32 %v4693_v2, %v4702_v39  ;;  %v7464_v2 = vpack.c.bf16 %v4754_v56, %v4752_v49  ;;  %v7472_v39 = vpack.c.bf16 %v4762_v33, %v4760_v32  ;;  %v4890_v49 = vld [vmem:[%s7740_s30 + $0xe8] sm:$0xff] }
 0x7e0   : > { %v4706_v50 = vmul.f32 %v8850_v44, %v8850_v44 }
 0x7e2   : > { %v7550_v4 = vpop.eup %7549  ;;  %4708 = vadd.xlane.f32.xlu0 %v4706_v50  ;;  %v7474_v50 = vpack.c.bf16 %v4767_v38, %v4765_v15 }
 0x7e3   : > { %v4096_v21 = vmul.f32 %v7550_v4, %v7542_v31  ;;  %v7462_v31 = vpack.c.bf16 %v4755_v16, %v4753_v3  ;;  %v4764_v4 = vld [vmem:[%s9255_s26 + $0xe0] sm:$0xff]  ;;  %v4871_v16 = vld [vmem:[%s7740_s30 + $0x50] sm:$0xff] }
 0x7e5   : > { %6771 = vmatmul.mubr.msk.f32.vlgmr.msra.gmra.mrb[42].mxu0 %vm2269_vm2, %v4096_v21  ;;  %v4766_v21 = vld [vmem:[%s9255_s26 + $0xf0] sm:$0xff] }
 0x7e6   : > { %v7552_v51 = vpop.eup %7551  ;;  %7424 = vmatpush3.bf16.msra.mxu0 %v8486_v55  ;;  %6786 = vmatprep.mubr.msk.f32.mxu0 %vm7572_vm0, %v9148_v34 }
 0x7e7   : > { %v4097_v57 = vmul.f32 %v7552_v51, %v7544_v5  ;;  %7425 = vmatprep.subr.bf16.mxu0 %v9189_v42  ;;  %v4757_v5 = vld [vmem:[%s9255_s26 + $0xa8] sm:$0xff] }
 0x7e8   : > { %v7466_v60 = vpack.c.bf16 %v4759_v13, %v4757_v5  ;;  %v4873_v13 = vld [vmem:[%s7740_s30 + $0x60] sm:$0xff] }
 0x7e9   : > { %6776 = vmatmul.mubr.msk.f32.vlgmr.msra.gmra.mrb[42].mxu1 %vm2269_vm2, %v4097_v57  ;;  %v8921_v57 = vld [vmem:[%s803_s19] ss:$0 sm:$0xff] }
 0x7ea   : > { %7430 = vmatpush3.bf16.msra.mxu1 %v8496_v30  ;;  %6797 = vmatprep.mubr.msk.f32.mxu1 %vm7572_vm0, %v9148_v34  ;;  %v4737_v30 = vld [vmem:[%s9255_s26 + $0x8] sm:$0xff] }
 0x7eb   : > { %7431 = vmatprep.subr.bf16.mxu1 %v9189_v42  ;;  %7427 = vmatpush3.bf16.msra.mxu0 %v8494_v22 }
 0x7ec   : > { %7434 = vmatprep.subr.bf16.mxu0 %v9189_v42 }
 0x7ee   : > { %7433 = vmatpush3.bf16.msra.mxu1 %v8510_v37  ;;  %v4739_v37 = vld [vmem:[%s9255_s26 + $0x18] sm:$0xff] }
 0x7ef   : > { %7440 = vmatprep.subr.bf16.mxu1 %v9189_v42 }
 0x898   : > { %v4167_v55 = vpop.f32.mrb[40].mxu0 }
 0x899   : > { %v6762_v58 = vpop.f32.mrb[41].mxu0  ;;  %6798 = vmatmul.mubr.msk.f32.vlgmr.msra.gmra.mrb[44].mxu1 %vm1955_vm1, %v4167_v55  ;;  %v7476_v55 = vpack.c.bf16 %v4766_v21, %v4764_v4 }
 0x89a   : > { %7442 = vmatpush3.bf16.msra.mxu1 %v8526_v48  ;;  %6819 = vmatprep.mubr.msk.f32.mxu1 %vm7572_vm0, %v9148_v34  ;;  %v7446_v48 = vpack.c.bf16 %v4739_v37, %v4737_v30  ;;  %v4877_v30 = vld [vmem:[%s7740_s30 + $0x80] sm:$0xff]  ;;  %v4878_v37 = vld [vmem:[%s7740_s30 + $0x88] sm:$0xff] }
 0x89b   : > { %7443 = vmatprep.subr.bf16.mxu1 %v9189_v42 }
 0x89c   : > { %v4240_v22 = vpop.f32.mrb[40].mxu1 }
 0x89d   : > { %v6767_v63 = vpop.f32.mrb[41].mxu1  ;;  %6787 = vmatmul.mubr.msk.f32.vlgmr.msra.gmra.mrb[44].mxu0 %vm1955_vm1, %v4240_v22  ;;  %v8929_v22 = vld [vmem:[%s806_s20] ss:$0 sm:$0xff] }
 0x89e   : > { %7436 = vmatpush3.bf16.msra.mxu0 %v8516_v47  ;;  %6808 = vmatprep.mubr.msk.f32.mxu0 %vm7572_vm0, %v9148_v34  ;;  %v4709_v47 = vpop.xlane.xlu0 %4708  ;;  %v7478_v63 = vpack.c.bf16 %v4878_v37, %v4877_v30  ;;  %v7562_v30 = vld [vmem:[#allocation2 + $0x8] sm:$0xff] }
 0x89f   : > { %7437 = vmatprep.subr.bf16.mxu0 %v9189_v42  ;;  %7445 = vmatpush3.bf16.msra.mxu1 %v8536_v59 }
 0x8a0   : > { %7479 = vmatprep.subr.bf16.mxu1 %v7478_v63  ;;  %v4770_v63 = vlaneseq }
 0x8a2   : > { %7439 = vmatpush3.bf16.msra.mxu0 %v8524_v9  ;;  %v4712_v9 = vmul.f32 0.0078125, %v4709_v47  ;;  %v4864_v47 = vld [vmem:[%s7740_s30 + $0x18] sm:$0xff] }
 0x8a3   : > { %7447 = vmatprep.subr.bf16.mxu0 %v7446_v48  ;;  %v4861_v48 = vld [vmem:[%s7740_s30] sm:$0xff] }
 0x8a4   : > { %v4714_v24 = vadd.f32 1e-05, %v4712_v9  ;;  %v7480_v7 = vpack.c.bf16 %v4862_v0, %v4861_v48  ;;  %v4884_v9 = vld [vmem:[%s7740_s30 + $0xb8] sm:$0xff]  ;;  %v4771_v48 = vshrl.u32 %v4770_v63, 7 }
 0x8a6   : > { %7553 = vrsqrt.f32 %v4714_v24  ;;  %v4869_v24 = vld [vmem:[%s7740_s30 + $0x40] sm:$0xff]  ;;  %v4772_v0 = vsub.s32 0, %v4771_v48 }
 0x8b0   : > { %v7554_v61 = vpop.eup %7553 }
 0x8b1   : > { %v4718_v51 = vmul.f32 %v7554_v61, %v8850_v44 }
 0x8b3   : > { %v4726_v58 = vmul.f32 %v8921_v57, %v4718_v51 }
 0x8b5   : > { %v8932_v44 = vadd.f32 %v8929_v22, %v4726_v58 }
 0x8b8   : > { %v4313_v42 = vpop.f32.mrb[42].mxu0 }
 0x8b9   : > { %v6772_v59 = vpop.f32.mrb[43].mxu0  ;;  %6809 = vmatmul.mubr.msk.f32.vlgmr.msra.gmra.mrb[46].mxu0 %vm1955_vm1, %v4313_v42  ;;  %v4865_v42 = vld [vmem:[%s7740_s30 + $0x20] sm:$0xff] }
 0x8ba   : > { %7449 = vmatpush1.bf16.msra.mxu0 %v7448_v18  ;;  %4844 = vmatprep.mubr.f32.mxu0 %v9148_v34  ;;  %v4863_v18 = vld [vmem:[%s7740_s30 + $0x10] sm:$0xff] }
 0x8bb   : > { %7451 = vmatprep.subr.bf16.mxu0 %v7450_v6  ;;  %v7484_v6 = vpack.c.bf16 %v4864_v47, %v4863_v18  ;;  %v4883_v59 = vld [vmem:[%s7740_s30 + $0xb0] sm:$0xff] }
 0x8bc   : > { %v4386_v62 = vpop.f32.mrb[42].mxu1 }
 0x8bd   : > { %v6777_v12 = vpop.f32.mrb[43].mxu1  ;;  %6820 = vmatmul.mubr.msk.f32.vlgmr.msra.gmra.mrb[46].mxu1 %vm1955_vm1, %v4386_v62  ;;  %v4885_v62 = vld [vmem:[%s7740_s30 + $0xc0] sm:$0xff] }
 0x8be   : > { %7453 = vmatpush1.bf16.msra.mxu0 %v7452_v43  ;;  %7481 = vmatpush3.bf16.msra.mxu1 %v7480_v7  ;;  %v7488_v43 = vpack.c.bf16 %v4866_v36, %v4865_v42  ;;  %v7494_v12 = vpack.c.bf16 %v4886_v1, %v4885_v62  ;;  %v4768_v7 = vld [vmem:[%s7735_s2] sm:$0x3] }
 0x8bf   : > { %7455 = vmatprep.subr.bf16.mxu0 %v7454_v46  ;;  %v7490_v46 = vpack.c.bf16 %v4884_v9, %v4883_v59 }
 0x8c2   : > { %7457 = vmatpush1.bf16.msra.mxu0 %v7456_v29  ;;  %v4870_v29 = vld [vmem:[%s7740_s30 + $0x48] sm:$0xff] }
 0x8c3   : > { %7459 = vmatprep.subr.bf16.mxu0 %v7458_v40  ;;  %v4887_v40 = vld [vmem:[%s7740_s30 + $0xd0] sm:$0xff]  ;;  %v7496_v52 = vpack.c.bf16 %v4870_v29, %v4869_v24 }
 0x8c4   : > { %v7498_v3 = vpack.c.bf16 %v4888_v41, %v4887_v40 }
 0x8c6   : > { %7461 = vmatpush1.bf16.msra.mxu0 %v7460_v19  ;;  %v4872_v19 = vld [vmem:[%s7740_s30 + $0x58] sm:$0xff] }
 0x8c7   : > { %7463 = vmatprep.subr.bf16.mxu0 %v7462_v31  ;;  %v4889_v31 = vld [vmem:[%s7740_s30 + $0xe0] sm:$0xff]  ;;  %v7500_v56 = vpack.c.bf16 %v4872_v19, %v4871_v16 }
 0x8c8   : > { %v7502_v5 = vpack.c.bf16 %v4890_v49, %v4889_v31 }
 0x8ca   : > { %7465 = vmatpush1.bf16.msra.mxu0 %v7464_v2  ;;  %v4874_v2 = vld [vmem:[%s7740_s30 + $0x68] sm:$0xff] }
 0x8cb   : > { %7467 = vmatprep.subr.bf16.mxu0 %v7466_v60  ;;  %v7504_v60 = vpack.c.bf16 %v4874_v2, %v4873_v13 }
 0x8ce   : > { %7469 = vmatpush1.bf16.msra.mxu0 %v7468_v27  ;;  %v4876_v27 = vld [vmem:[%s7740_s30 + $0x78] sm:$0xff] }
 0x8cf   : > { %7471 = vmatprep.subr.bf16.mxu0 %v7470_v45  ;;  %v7508_v45 = vpack.c.bf16 %v4876_v27, %v4875_v26 }
 0x8d2   : > { %7473 = vmatpush1.bf16.msra.mxu0 %v7472_v39 }
 0x8d3   : > { %7475 = vmatprep.subr.bf16.mxu0 %v7474_v50 }
 0x8d6   : > { %7477 = vmatpush1.bf16.msra.mxu0 %v7476_v55 }
 0x8d9   : > { %4845 = vmatmul.mubr.f32.vlgmr.msra.gmra.mrb[48].mxu0 %v8932_v44 }
 0x8da   : > { %4850 = vmatprep.mubr.f32.mxu0 %v9148_v34  ;;  %v7482_v34 = vpack.c.bf16 %v4880_v17, %v4879_v8  ;;  %v4776_v8 = vsub.s32 1, %v4771_v48  ;;  %v4773_v17 = vrot.slane %v4768_v7, %v4772_v0 }
 0x8dc   : > { %7483 = vmatprep.subr.bf16.mxu1 %v7482_v34  ;;  %v4777_v18 = vrot.slane %v4768_v7, %v4776_v8 }
 0x8dd   : > { %7485 = vmatpush3.bf16.msra.mxu1 %v7484_v6 }
 0x8de   : > { %7487 = vmatprep.subr.bf16.mxu1 %v7486_v35 }
 0x8e1   : > { %7489 = vmatpush3.bf16.msra.mxu1 %v7488_v43  ;;  %v5284_v43 = vld [vmem:[%s800_s18] ss:$0 sm:$0xff] }
 0x8e2   : > { %7491 = vmatprep.subr.bf16.mxu1 %v7490_v46 }
 0x8e5   : > { %7493 = vmatpush3.bf16.msra.mxu1 %v7492_v11 }
 0x8e6   : > { %7495 = vmatprep.subr.bf16.mxu1 %v7494_v12 }
 0x8e9   : > { %7497 = vmatpush3.bf16.msra.mxu1 %v7496_v52 }
 0x8ea   : > { %7499 = vmatprep.subr.bf16.mxu1 %v7498_v3 }
 0x8ed   : > { %7501 = vmatpush3.bf16.msra.mxu1 %v7500_v56 }
 0x8ee   : > { %7503 = vmatprep.subr.bf16.mxu1 %v7502_v5 }
 0x8f1   : > { %7505 = vmatpush3.bf16.msra.mxu1 %v7504_v60 }
 0x8f2   : > { %7507 = vmatprep.subr.bf16.mxu1 %v7506_v20  ;;  %v5286_v20 = vld [vmem:[%s812_s5] ss:$0 sm:$0xff]  ;;  %s9256_s5 = sld [smem:[#allocation83_spill]] (!%p5287_p5) }
 0x8f5   : > { %7509 = vmatpush3.bf16.msra.mxu1 %v7508_v45 }
 0x96c   : > { %v4532_v32 = vpop.f32.mrb[44].mxu1 }
 0x96d   : > { %v6799_v33 = vpop.f32.mrb[45].mxu1 }
 0x970   : > { %v4459_v61 = vpop.f32.mrb[44].mxu0 }
 0x971   : > { %v4533_v15 = vadd.f32 %v4532_v32, %v4459_v61  ;;  %v6788_v38 = vpop.f32.mrb[45].mxu0 }
 0x98c   : > { %v4605_v39 = vpop.f32.mrb[46].mxu0 }
 0x98d   : > { %v4609_v50 = vadd.f32 %v4605_v39, %v4533_v15  ;;  %v6810_v4 = vpop.f32.mrb[47].mxu0 }
 0x990   : > { %v4679_v21 = vpop.f32.mrb[46].mxu1 }
 0x991   : > { %v4683_v51 = vadd.f32 %v4679_v21, %v4609_v50  ;;  %v6821_v55 = vpop.f32.mrb[47].mxu1 }
 0x993   : > { %v4692_v58 = vadd.f32 %v8832_v23, %v4683_v51 }
 0x995   : > { %v4694_v37 = vadd.f32 %v7562_v30, %v4692_v58 }
 0x997   : > { %4699 = vadd.xlane.f32.xlu1 %v4694_v37 }
 0x9ac   : > { %v4846_v34 = vpop.f32.mrb[48].mxu0 }
 0x9ad   : > { %v4847_v47 = vadd.f32 %v4846_v34, %v4773_v17  ;;  %v4848_v6 = vpop.f32.mrb[49].mxu0 }
 0x9ae   : > { %v4849_v25 = vadd.f32 %v4848_v6, %v4777_v18 }
 0x9af   : > { %v4857_v42 = vmax.f32 %v4847_v47, 0.0 }
 0x9b0   : > { %v4858_v28 = vmax.f32 %v4849_v25, 0.0 }
 0x9b2   : > { %4964 = vmatprep.mubr.f32.mxu1 %v4858_v28 }
 0x9b3   : > { %4965 = vmatmul.mubr.f32.vlgmr.msra.gmra.mrb[48].mxu1 %v4857_v42 }
 0xa24   : > { %v4700_v23 = vpop.xlane.xlu1 %4699 }
 0xa25   : > { %v4703_v35 = vmul.f32 0.0078125, %v4700_v23 }
 0xa27   : > { %v4705_v36 = vsub.f32 %v4694_v37, %v4703_v35 }
 0xa29   : > { %v4707_v59 = vmul.f32 %v4705_v36, %v4705_v36 }
 0xa2b   : > { %4710 = vadd.xlane.f32.xlu1 %v4707_v59 }
 0xa86   : > { %v5808_v9 = vpop.f32.mrb[48].mxu1 }
 0xa87   : > { %v5809_v46 = vpop.f32.mrb[49].mxu1 }
 0xa88   : > { %v5810_v53 = vadd.f32 %v5809_v46, %v5808_v9 }
 0xa8a   : > { %v4967_v54 = vadd.f32 %v5810_v53, %v5284_v43 }
 0xa8c   : > { %v4975_v62 = vadd.f32 %v4967_v54, %v8932_v44 }
 0xa8e   : > { %4979 = vadd.xlane.f32.xlu0 %v4975_v62 }
 0xab8   : > { %v4711_v1 = vpop.xlane.xlu1 %4710 }
 0xab9   : > { %v4713_v11 = vmul.f32 0.0078125, %v4711_v1 }
 0xabb   : > { %v4715_v12 = vadd.f32 1e-05, %v4713_v11 }
 0xabd   : > { %7555 = vrsqrt.f32 %v4715_v12 }
 0xac7   : > { %v7556_v24 = vpop.eup %7555 }
 0xac8   : > { %v4719_v29 = vmul.f32 %v7556_v24, %v4705_v36 }
 0xaca   : > { %v4727_v40 = vmul.f32 %v8921_v57, %v4719_v29 }
 0xacc   : > { %v4735_v41 = vadd.f32 %v8929_v22, %v4727_v40 }
 0xace   : > { %4851 = vmatmul.mubr.f32.gmra.mrb[50].mxu0 %v4735_v41 }
 0xb1b   : > { %v4980_v52 = vpop.xlane.xlu0 %4979 }
 0xb1c   : > { %v4983_v3 = vmul.f32 0.0078125, %v4980_v52 }
 0xb1e   : > { %v4985_v16 = vsub.f32 %v4975_v62, %v4983_v3 }
 0xb20   : > { %v4987_v19 = vmul.f32 %v4985_v16, %v4985_v16 }
 0xb22   : > { %4989 = vadd.xlane.f32.xlu0 %v4987_v19 }
 0xba1   : > { %v4852_v44 = vpop.f32.mrb[50].mxu0 }
 0xba2   : > { %v4853_v31 = vadd.f32 %v4852_v44, %v4773_v17  ;;  %v4854_v49 = vpop.f32.mrb[51].mxu0 }
 0xba3   : > { %v4855_v56 = vadd.f32 %v4854_v49, %v4777_v18 }
 0xba4   : > { %v4859_v13 = vmax.f32 %v4853_v31, 0.0 }
 0xba5   : > { %v4860_v5 = vmax.f32 %v4855_v56, 0.0 }
 0xba7   : > { %4969 = vmatprep.mubr.f32.mxu1 %v4860_v5 }
 0xba8   : > { %4970 = vmatmul.mubr.f32.gmra.mrb[50].mxu1 %v4859_v13 }
 0xbaf   : > { %v4990_v2 = vpop.xlane.xlu0 %4989 }
 0xbb0   : > { %v4993_v57 = vmul.f32 0.0078125, %v4990_v2 }
 0xbb2   : > { %v4995_v60 = vadd.f32 1e-05, %v4993_v57 }
 0xbb4   : > { %7557 = vrsqrt.f32 %v4995_v60 }
 0xbbe   : > { %v7558_v22 = vpop.eup %7557 }
 0xbbf   : > { %v4999_v14 = vmul.f32 %v7558_v22, %v4985_v16 }
 0xbc1   : > { %v5007_v26 = vmul.f32 %v5285_v10, %v4999_v14 }
 0xbc3   : > { %v5015_v27 = vadd.f32 %v5286_v20, %v5007_v26 }
 0xbc5   : > { %5017 = vst [vmem:[#allocation2] sm:$0xff] %v5015_v27  ;;  %5023 = vst [vmem:[%s9256_s5] sm:$0xff] (!%p5287_p5), %v5015_v27 }
 0xc7b   : > { %v5811_v45 = vpop.f32.mrb[50].mxu1 }
 0xc7c   : > { %v5812_v32 = vpop.f32.mrb[51].mxu1 }
 0xc7d   : > { %v5813_v33 = vadd.f32 %v5812_v32, %v5811_v45 }
 0xc7f   : > { %v4972_v61 = vadd.f32 %v5813_v33, %v5284_v43 }
 0xc81   : > { %v4976_v15 = vadd.f32 %v4972_v61, %v4735_v41 }
 0xc83   : > { %4981 = vadd.xlane.f32.xlu1 %v4976_v15 }
 0xd10   : > { %v4982_v38 = vpop.xlane.xlu1 %4981 }
 0xd11   : > { %v4984_v39 = vmul.f32 0.0078125, %v4982_v38 }
 0xd13   : > { %v4986_v50 = vsub.f32 %v4976_v15, %v4984_v39 }
 0xd15   : > { %v4988_v4 = vmul.f32 %v4986_v50, %v4986_v50 }
 0xd17   : > { %4991 = vadd.xlane.f32.xlu1 %v4988_v4 }
 0xda4   : > { %v4992_v21 = vpop.xlane.xlu1 %4991 }
 0xda5   : > { %v4994_v51 = vmul.f32 0.0078125, %v4992_v21 }
 0xda7   : > { %v4996_v55 = vadd.f32 1e-05, %v4994_v51 }
 0xda9   : > { %7559 = vrsqrt.f32 %v4996_v55 }
 0xdb3   : > { %v7560_v58 = vpop.eup %7559 }
 0xdb4   : > { %v5000_v30 = vmul.f32 %v7560_v58, %v4986_v50  ;;  %5022 = sbr.rel (%p5287_p5) target bundleno = 3515 (0xdbb), region = 100 }
 0xdb6   : > { %v5008_v37 = vmul.f32 %v5285_v10, %v5000_v30 }
 0xdb8   : > { %v5016_v63 = vadd.f32 %v5286_v20, %v5008_v37 }
 0xdba   : > { %5018 = vst [vmem:[#allocation2 + $0x8] sm:$0xff] %v5016_v63  ;;  %5024 = vst [vmem:[%s9256_s5 + $0x8] sm:$0xff] (!%p5287_p5), %v5016_v63 }
 0xdbb PF: > { %s9257_s3 = sld [smem:[#allocation3_spill]] }
 0xdc1   : > { %s28_s27 = sadd.s32 1, %s9257_s3  }
 0xdc2   : > { %p25_p6 = scmp.ge.s32.totalorder %s28_s27, 4  }
 0xdc4   :  { %27 = sbr.rel (!%p25_p6) target bundleno = 13 (0xd), region = 172 }

</bundles_post_ra>
